<compile_context>
chip_gen: v7x
topology: tpu7x:2x2x1
jax: 0.10.0
libtpu: 0.0.40
codegen_flags: <defaults>
</compile_context>

<pallas_src>
import numpy as np
import jax
import jax.numpy as jnp
from jax import lax
from jax.scipy.special import erf as jsp_erf
from jax.experimental import pallas as pl
from jax.experimental.pallas import tpu as pltpu


# ----------------------------------------------------------------------------
# exact-erf GELU: rational approximation identical to XLA's f32 erf (few ULP).
# The denominator reciprocal runs on the EUP (approx) + one Newton refinement.
# ----------------------------------------------------------------------------
_ERF_ALPHA = (-2.72614225801306e-10, 2.77068142495902e-08, -2.10102402082508e-06,
              -5.69250639462346e-05, -7.34990630326855e-04, -2.95459980854025e-03,
              -1.60960333262415e-02)
_ERF_BETA = (-1.45660718464996e-05, -2.13374055278905e-04, -1.68282697438203e-03,
             -7.37332916720468e-03, -1.42647390514189e-02)


def _erf_f32(x):
    xc = jnp.clip(x, -4.0, 4.0)
    x2 = xc * xc
    p = jnp.zeros_like(x2)
    for a in _ERF_ALPHA:
        p = p * x2 + a
    q = jnp.zeros_like(x2)
    for b in _ERF_BETA:
        q = q * x2 + b
    r = pl.reciprocal(q, approx=True)   # EUP slot, nearly free
    r = r * (2.0 - q * r)               # one Newton step -> ~full f32 precision
    return xc * p * r


def _gelu_exact(x):
    return 0.5 * x * (1.0 + _erf_f32(x * 0.7071067811865476))


# ----------------------------------------------------------------------------
# Pallas kernel: single invocation, whole problem resident in VMEM.
# Packed layout: rows r = (b*F + f)*H + y ; lanes l = x*C + c  (channels fastest).
# ----------------------------------------------------------------------------
def convnext_block_kernel(
    xstack_ref,  # (R, 7*Wp*C_in)   7 y-shifted, x-padded copies of x
    adw_ref,     # (7*Wp*C_in, W*C_in + W*C_out)  depthwise 7x7 + fused 1x1 residual
    pln_ref,     # (W*C_in, W*C_in) block-diag 1/C_in projector (LN channel mean)
    b2w_ref,     # (3, W*C_in, W*C_mid)  banded grouped-conv2 weights (LN gamma folded)
    b3w_ref,     # (3, W*C_mid, W*C_out) banded grouped-conv3 weights
    smat_ref,    # (2, R, R)        row-shift matrices for dy = -1 / +1 (image-aware)
    gsel_ref,    # (B, R)           per-batch row selector (GRN reduce)
    gselt_ref,   # (R, B)           its transpose (GRN broadcast)
    selc_ref,    # (W*C_mid, W*C_mid) per-channel lane selector (GRN x-reduce+bcast)
    dwb_ref,     # (1, W*C_in)      depthwise bias (tiled over x)
    b2b_ref,     # (1, W*C_mid)     conv2 bias (tiled over x)
    grng_ref,    # (1, W*C_mid)     GRN gamma (tiled over x)
    grnb_ref,    # (1, W*C_mid)     GRN bias (tiled over x)
    b3rb_ref,    # (1, W*C_out)     conv3 bias + residual bias, fused (tiled over x)
    out_ref,     # (R, W*C_out)
):
    f32 = jnp.float32
    n1 = dwb_ref.shape[1]                       # W * C_in

    # --- depthwise (1,7,7) conv + 1x1x1 residual conv: one fused MXU dot -------
    dwres = jnp.dot(xstack_ref[...], adw_ref[...], preferred_element_type=f32)
    h = dwres[:, :n1] + dwb_ref[...]            # (R, W*C_in)   depthwise output
    res = dwres[:, n1:]                         # (R, W*C_out)  residual (bias fused later)

    # --- LayerNorm over channels (biased var, eps=1e-5); gamma folded into b2w --
    p = pln_ref[...]
    mu = jnp.dot(h, p, preferred_element_type=f32)         # channel mean, broadcast in-group
    d = h - mu
    var = jnp.dot(d * d, p, preferred_element_type=f32)    # E[(x-mu)^2], broadcast in-group
    hn = d * lax.rsqrt(var + 1e-5)

    # --- grouped (1,3,3) conv C_in -> C_mid: 3 banded dots + 2 row-shift dots ---
    t0 = jnp.dot(hn, b2w_ref[0], preferred_element_type=f32)   # kernel row dy=0 (needs y-1)
    t1 = jnp.dot(hn, b2w_ref[1], preferred_element_type=f32)   # center row
    t2 = jnp.dot(hn, b2w_ref[2], preferred_element_type=f32)   # kernel row dy=2 (needs y+1)
    h2 = (t1
          + jnp.dot(smat_ref[0], t0, preferred_element_type=f32)
          + jnp.dot(smat_ref[1], t2, preferred_element_type=f32)
          + b2b_ref[...])

    # --- exact (erf) GELU -------------------------------------------------------
    h2 = _gelu_exact(h2)

    # --- GRN (faithful to the reference's degenerate size-1-axis mean) ----------
    sq = h2 * h2
    bsum = jnp.dot(gsel_ref[...], sq, preferred_element_type=f32)     # (B, W*C_mid)
    l2sq = jnp.dot(bsum, selc_ref[...], preferred_element_type=f32)   # sum over x, bcast back
    l2 = jnp.sqrt(l2sq)
    feat = l2 / jnp.maximum(l2, 1e-5)
    scale = feat * grng_ref[...]                                      # (B, W*C_mid)
    h2 = h2 * jnp.dot(gselt_ref[...], scale, preferred_element_type=f32) + grnb_ref[...] + h2

    # --- grouped (1,3,3) conv C_mid -> C_out ------------------------------------
    u0 = jnp.dot(h2, b3w_ref[0], preferred_element_type=f32)
    u1 = jnp.dot(h2, b3w_ref[1], preferred_element_type=f32)
    u2 = jnp.dot(h2, b3w_ref[2], preferred_element_type=f32)
    conv3 = (u1
             + jnp.dot(smat_ref[0], u0, preferred_element_type=f32)
             + jnp.dot(smat_ref[1], u2, preferred_element_type=f32))

    # only masked store left: 64 of 128 lanes (16 KiB total) -- not worth a relayout
    out_ref[...] = conv3 + res + b3rb_ref[...]


# ----------------------------------------------------------------------------
# Wrapper: numpy-side constant-matrix packing + lane-dense input repack.
# ----------------------------------------------------------------------------
def _grouped_to_dense(w, groups):
    """(O, I/g, 1, kh, kw) grouped Conv3d weight -> dense (kh, kw, I, O) block-diag."""
    w_np = np.asarray(w, np.float32)
    O, I_g, _, kh, kw = w_np.shape
    o_per_g = O // groups
    dense = np.zeros((kh, kw, I_g * groups, O), np.float32)
    for o in range(O):
        g = o // o_per_g
        for i in range(I_g):
            dense[:, :, g * I_g + i, o] = w_np[o, i, 0]
    return dense


def convnext_block_pallas(x, params):
    (w_ds, b_ds, ln_gamma, w2t, b2, grn_g, grn_b, w3t, b3, w_res, b_res) = params
    B, C_in, F_, H, W = x.shape
    C_mid = int(w2t.shape[0])
    C_out = int(w3t.shape[0])
    Wp = W + 6
    R = B * F_ * H
    N1, N2 = W * C_in, W * C_out

    # ---------------- constant matrices (numpy, built once per call) -----------
    # depthwise 7x7 (+ fused 1x1 residual) matrix
    wd = np.asarray(w_ds, np.float32)[:, 0, 0]                       # (C_in, 7, 7)
    adw = np.zeros((7 * Wp * C_in, N1 + N2), np.float32)
    for ky in range(7):
        base = ky * Wp * C_in
        for xo in range(W):
            for kx in range(7):
                xp = xo + kx                                         # padded-x coordinate
                for c in range(C_in):
                    adw[base + xp * C_in + c, xo * C_in + c] = wd[c, ky, kx]
    wres = np.asarray(w_res, np.float32)[:, :, 0, 0, 0]              # (C_out, C_in)
    base = 3 * Wp * C_in                                             # s = 0 copy
    for xo in range(W):
        for ci in range(C_in):
            for co in range(C_out):
                adw[base + (xo + 3) * C_in + ci, N1 + xo * C_out + co] = wres[co, ci]

    # banded grouped-conv matrices (x zero-padding baked in); LN gamma folded into conv2
    gamma_ci = np.asarray(ln_gamma, np.float32).reshape(C_in)
    w2_dense = _grouped_to_dense(w2t, groups=C_out) * gamma_ci[None, None, :, None]
    w3_dense = _grouped_to_dense(w3t, groups=C_out)

    def banded(wdense, Ci, Co):
        m = np.zeros((3, W * Ci, W * Co), np.float32)
        for dy in range(3):
            for xo in range(W):
                for dx in range(3):
                    xin = xo + dx - 1
                    if 0 <= xin < W:
                        m[dy, xin * Ci:(xin + 1) * Ci, xo * Co:(xo + 1) * Co] = wdense[dy, dx]
        return m

    b2m = banded(w2_dense, C_in, C_mid)
    b3m = banded(w3_dense, C_mid, C_out)

    # LayerNorm channel-mean projector and GRN channel selector
    p_ln = np.kron(np.eye(W, dtype=np.float32),
                   np.full((C_in, C_in), 1.0 / C_in, np.float32))
    selc = np.kron(np.ones((W, W), np.float32), np.eye(C_mid, dtype=np.float32))

    # row-shift matrices for y = -1 / +1 (zero across image boundaries)
    def shift_mat(s):
        m = np.zeros((R, R), np.float32)
        for r in range(R):
            rp = r + s
            if 0 <= rp < R and rp // H == r // H:
                m[r, rp] = 1.0
        return m
    smat = np.stack([shift_mat(-1), shift_mat(+1)])                  # (2, R, R)

    # per-batch row selectors for GRN
    rows_per_b = F_ * H
    gsel = np.zeros((B, R), np.float32)
    for b in range(B):
        gsel[b, b * rows_per_b:(b + 1) * rows_per_b] = 1.0
    gselt = np.ascontiguousarray(gsel.T)

    # lane-tiled bias / gamma vectors
    dwb_p = np.tile(np.asarray(b_ds, np.float32), W)[None]
    b2_p = np.tile(np.asarray(b2, np.float32), W)[None]
    grng_p = np.tile(np.asarray(grn_g, np.float32).reshape(C_mid), W)[None]
    grnb_p = np.tile(np.asarray(grn_b, np.float32).reshape(C_mid), W)[None]
    b3rb_p = np.tile(np.asarray(b3, np.float32) + np.asarray(b_res, np.float32), W)[None]

    # ---------------- lane-dense input repack (tiny im2col, wrapper side) ------
    x_l = jnp.transpose(x, (0, 2, 3, 4, 1))                          # (B,F,H,W,C)
    x_p = jnp.pad(x_l, ((0, 0), (0, 0), (3, 3), (3, 3), (0, 0)))     # pad H and W by 3
    copies = [x_p[:, :, 3 + s:3 + s + H, :, :].reshape(R, Wp * C_in)
              for s in range(-3, 4)]                                 # y-shift s = ky - 3
    xstack = jnp.concatenate(copies, axis=-1)                        # (R, 7*Wp*C_in)

    vmem_spec = pl.BlockSpec(memory_space=pltpu.MemorySpace.VMEM)
    out = pl.pallas_call(
        convnext_block_kernel,
        out_shape=jax.ShapeDtypeStruct((R, N2), jnp.float32),
        in_specs=[vmem_spec] * 14,
        out_specs=vmem_spec,
    )(xstack,
      jnp.asarray(adw), jnp.asarray(p_ln), jnp.asarray(b2m), jnp.asarray(b3m),
      jnp.asarray(smat), jnp.asarray(gsel), jnp.asarray(gselt), jnp.asarray(selc),
      jnp.asarray(dwb_p), jnp.asarray(b2_p), jnp.asarray(grng_p),
      jnp.asarray(grnb_p), jnp.asarray(b3rb_p))

    # (R, W*C_out) row-major == (B, F, H, W, C_out); transpose back to NCDHW.
    return jnp.transpose(out.reshape(B, F_, H, W, C_out), (0, 4, 1, 2, 3))


# ----------------------------------------------------------------------------
# Pure-JAX reference (mirrors the PyTorch module op-for-op, NCDHW layout)
# ----------------------------------------------------------------------------
def reference_ncdhw(x, w_ds, b_ds, ln_gamma, w2t, b2, grn_g, grn_b, w3t, b3,
                    w_res, b_res, dim, dim_out):
    dn = ('NCDHW', 'OIDHW', 'NCDHW')

    def conv3d(inp, w, b, pad, groups):
        y = lax.conv_general_dilated(
            inp, w, window_strides=(1, 1, 1),
            padding=[(0, 0), (pad, pad), (pad, pad)],
            dimension_numbers=dn, feature_group_count=groups,
            precision=lax.Precision.HIGHEST)
        return y + b.reshape(1, -1, 1, 1, 1)

    h = conv3d(x, w_ds, b_ds, 3, dim)                               # ds_conv
    mean = jnp.mean(h, axis=1, keepdims=True)                       # LayerNorm
    var = jnp.mean((h - mean) ** 2, axis=1, keepdims=True)
    h = (h - mean) / jnp.sqrt(var + 1e-5) * ln_gamma
    h = conv3d(h, w2t, b2, 1, dim_out)                              # grouped conv
    h = 0.5 * h * (1.0 + jsp_erf(h * 0.7071067811865476))           # exact GELU
    l2 = jnp.sqrt(jnp.sum(h * h, axis=(2, 3, 4), keepdims=True))    # GRN
    feat = l2 / jnp.maximum(jnp.mean(l2, axis=-1, keepdims=True), 1e-5)
    inner = h.shape[1]
    h = h * feat * grn_g.reshape(1, inner, 1, 1, 1) + grn_b.reshape(1, inner, 1, 1, 1) + h
    h = conv3d(h, w3t, b3, 1, dim_out)                              # grouped conv
    res = conv3d(x, w_res, b_res, 0, 1)                             # res_conv (1x1x1)
    return h + res


if __name__ == "__main__":
    # module config: dim=8, dim_out=4, mult=2 -> inner_dim=8 (nested_unet_depth=0)
    B, dim, dim_out, mult = 2, 8, 4, 2
    inner = dim_out * mult
    Fr, H, W = 2, 16, 16

    key = jax.random.PRNGKey(0)
    ks = jax.random.split(key, 12)

    # Parameter shapes follow ConvNextBlock.__init__ (values: deterministic random).
    w_ds = jax.random.normal(ks[0], (dim, 1, 1, 7, 7), jnp.float32) * 0.08
    b_ds = jax.random.normal(ks[1], (dim,), jnp.float32) * 0.05
    ln_gamma = 1.0 + 0.1 * jax.random.normal(ks[2], (1, dim, 1, 1, 1), jnp.float32)
    w2t = jax.random.normal(ks[3], (inner, dim // dim_out, 1, 3, 3), jnp.float32) * 0.15
    b2 = jax.random.normal(ks[4], (inner,), jnp.float32) * 0.05
    grn_g = 0.2 * jax.random.normal(ks[5], (inner, 1, 1, 1), jnp.float32)
    grn_b = 0.2 * jax.random.normal(ks[6], (inner, 1, 1, 1), jnp.float32)
    w3t = jax.random.normal(ks[7], (dim_out, inner // dim_out, 1, 3, 3), jnp.float32) * 0.15
    b3 = jax.random.normal(ks[8], (dim_out,), jnp.float32) * 0.05
    w_res = jax.random.normal(ks[9], (dim_out, dim, 1, 1, 1), jnp.float32) * 0.1
    b_res = jax.random.normal(ks[10], (dim_out,), jnp.float32) * 0.05
    x = jax.random.normal(ks[11], (B, dim, Fr, H, W), jnp.float32)   # NCDHW

    # TODO(synk): NestedResidualUnet path (nested_unet_depth > 0) not implemented;
    # the module default (depth 0 == Identity) is what this kernel covers.
    params = (w_ds, b_ds, ln_gamma, w2t, b2, grn_g, grn_b, w3t, b3, w_res, b_res)
    out = convnext_block_pallas(x, params)
    out = jax.block_until_ready(out)

    ref = reference_ncdhw(x, w_ds, b_ds, ln_gamma, w2t, b2, grn_g, grn_b,
                          w3t, b3, w_res, b_res, dim, dim_out)
    np.testing.assert_allclose(np.asarray(out), np.asarray(ref), rtol=2e-2, atol=2e-2)

    print("KERNEL_OK")
</pallas_src>

<mosaic_0001>
module attributes {stable_mosaic.version = 11 : i64} {
  func.func @convnext_block_kernel(%arg0: memref<64x1232xf32, #tpu.memory_space<vmem>>, %arg1: memref<1232x192xf32, #tpu.memory_space<vmem>>, %arg2: memref<128x128xf32, #tpu.memory_space<vmem>>, %arg3: memref<3x128x128xf32, #tpu.memory_space<vmem>>, %arg4: memref<3x128x64xf32, #tpu.memory_space<vmem>>, %arg5: memref<2x64x64xf32, #tpu.memory_space<vmem>>, %arg6: memref<2x64xf32, #tpu.memory_space<vmem>>, %arg7: memref<64x2xf32, #tpu.memory_space<vmem>>, %arg8: memref<128x128xf32, #tpu.memory_space<vmem>>, %arg9: memref<1x128xf32, #tpu.memory_space<vmem>>, %arg10: memref<1x128xf32, #tpu.memory_space<vmem>>, %arg11: memref<1x128xf32, #tpu.memory_space<vmem>>, %arg12: memref<1x128xf32, #tpu.memory_space<vmem>>, %arg13: memref<1x64xf32, #tpu.memory_space<vmem>>, %arg14: memref<64x64xf32, #tpu.memory_space<vmem>>) attributes {dimension_semantics = [], scalar_prefetch = 0 : i64, scratch_operands = 0 : i64, tpu.core_type = #tpu.core_type<tc>} {
    %c0 = arith.constant 0 : index
    %c0_0 = arith.constant 0 : index
    %0 = vector.load %arg0[%c0, %c0_0] : memref<64x1232xf32, #tpu.memory_space<vmem>>, vector<64x1232xf32>
    %c0_1 = arith.constant 0 : index
    %c0_2 = arith.constant 0 : index
    %1 = vector.load %arg1[%c0_1, %c0_2] : memref<1232x192xf32, #tpu.memory_space<vmem>>, vector<1232x192xf32>
    %cst = arith.constant dense<0.000000e+00> : vector<64x192xf32>
    %2 = tpu.matmul %0, %1, %cst {dimension_numbers = #tpu.dot_dimension_numbers<[1], [0], [0], [1], [0, 0, 1, 1], [], []>} : vector<64x1232xf32>, vector<1232x192xf32>, vector<64x192xf32> -> vector<64x192xf32>
    %3 = vector.extract_strided_slice %2 {offsets = [0, 0], sizes = [64, 128], strides = [1, 1]} : vector<64x192xf32> to vector<64x128xf32>
    %c0_3 = arith.constant 0 : index
    %c0_4 = arith.constant 0 : index
    %4 = vector.load %arg9[%c0_3, %c0_4] : memref<1x128xf32, #tpu.memory_space<vmem>>, vector<1x128xf32>
    %5 = vector.broadcast %4 : vector<1x128xf32> to vector<64x128xf32>
    %6 = arith.addf %3, %5 : vector<64x128xf32>
    %7 = vector.extract_strided_slice %2 {offsets = [0, 128], sizes = [64, 64], strides = [1, 1]} : vector<64x192xf32> to vector<64x64xf32>
    %c0_5 = arith.constant 0 : index
    %c0_6 = arith.constant 0 : index
    %8 = vector.load %arg2[%c0_5, %c0_6] : memref<128x128xf32, #tpu.memory_space<vmem>>, vector<128x128xf32>
    %cst_7 = arith.constant dense<0.000000e+00> : vector<64x128xf32>
    %9 = tpu.matmul %6, %8, %cst_7 {dimension_numbers = #tpu.dot_dimension_numbers<[1], [0], [0], [1], [0, 0, 1, 1], [], []>} : vector<64x128xf32>, vector<128x128xf32>, vector<64x128xf32> -> vector<64x128xf32>
    %10 = arith.subf %6, %9 : vector<64x128xf32>
    %11 = arith.mulf %10, %10 : vector<64x128xf32>
    %cst_8 = arith.constant dense<0.000000e+00> : vector<64x128xf32>
    %12 = tpu.matmul %11, %8, %cst_8 {dimension_numbers = #tpu.dot_dimension_numbers<[1], [0], [0], [1], [0, 0, 1, 1], [], []>} : vector<64x128xf32>, vector<128x128xf32>, vector<64x128xf32> -> vector<64x128xf32>
    %cst_9 = arith.constant 9.99999974E-6 : f32
    %13 = vector.broadcast %cst_9 : f32 to vector<64x128xf32>
    %14 = arith.addf %12, %13 : vector<64x128xf32>
    %15 = math.rsqrt %14 : vector<64x128xf32>
    %16 = arith.mulf %10, %15 : vector<64x128xf32>
    %c0_10 = arith.constant 0 : index
    %c0_11 = arith.constant 0 : index
    %c0_12 = arith.constant 0 : index
    %17 = vector.load %arg3[%c0_10, %c0_11, %c0_12] : memref<3x128x128xf32, #tpu.memory_space<vmem>>, vector<1x128x128xf32>
    %18 = vector.shape_cast %17 : vector<1x128x128xf32> to vector<128x128xf32>
    %cst_13 = arith.constant dense<0.000000e+00> : vector<64x128xf32>
    %19 = tpu.matmul %16, %18, %cst_13 {dimension_numbers = #tpu.dot_dimension_numbers<[1], [0], [0], [1], [0, 0, 1, 1], [], []>} : vector<64x128xf32>, vector<128x128xf32>, vector<64x128xf32> -> vector<64x128xf32>
    %c1 = arith.constant 1 : index
    %c0_14 = arith.constant 0 : index
    %c0_15 = arith.constant 0 : index
    %20 = vector.load %arg3[%c1, %c0_14, %c0_15] : memref<3x128x128xf32, #tpu.memory_space<vmem>>, vector<1x128x128xf32>
    %21 = vector.shape_cast %20 : vector<1x128x128xf32> to vector<128x128xf32>
    %cst_16 = arith.constant dense<0.000000e+00> : vector<64x128xf32>
    %22 = tpu.matmul %16, %21, %cst_16 {dimension_numbers = #tpu.dot_dimension_numbers<[1], [0], [0], [1], [0, 0, 1, 1], [], []>} : vector<64x128xf32>, vector<128x128xf32>, vector<64x128xf32> -> vector<64x128xf32>
    %c2 = arith.constant 2 : index
    %c0_17 = arith.constant 0 : index
    %c0_18 = arith.constant 0 : index
    %23 = vector.load %arg3[%c2, %c0_17, %c0_18] : memref<3x128x128xf32, #tpu.memory_space<vmem>>, vector<1x128x128xf32>
    %24 = vector.shape_cast %23 : vector<1x128x128xf32> to vector<128x128xf32>
    %cst_19 = arith.constant dense<0.000000e+00> : vector<64x128xf32>
    %25 = tpu.matmul %16, %24, %cst_19 {dimension_numbers = #tpu.dot_dimension_numbers<[1], [0], [0], [1], [0, 0, 1, 1], [], []>} : vector<64x128xf32>, vector<128x128xf32>, vector<64x128xf32> -> vector<64x128xf32>
    %c0_20 = arith.constant 0 : index
    %c0_21 = arith.constant 0 : index
    %c0_22 = arith.constant 0 : index
    %26 = vector.load %arg5[%c0_20, %c0_21, %c0_22] : memref<2x64x64xf32, #tpu.memory_space<vmem>>, vector<1x64x64xf32>
    %27 = vector.shape_cast %26 : vector<1x64x64xf32> to vector<64x64xf32>
    %cst_23 = arith.constant dense<0.000000e+00> : vector<64x128xf32>
    %28 = tpu.matmul %27, %19, %cst_23 {dimension_numbers = #tpu.dot_dimension_numbers<[1], [0], [0], [1], [0, 0, 1, 1], [], []>} : vector<64x64xf32>, vector<64x128xf32>, vector<64x128xf32> -> vector<64x128xf32>
    %29 = arith.addf %22, %28 : vector<64x128xf32>
    %c1_24 = arith.constant 1 : index
    %c0_25 = arith.constant 0 : index
    %c0_26 = arith.constant 0 : index
    %30 = vector.load %arg5[%c1_24, %c0_25, %c0_26] : memref<2x64x64xf32, #tpu.memory_space<vmem>>, vector<1x64x64xf32>
    %31 = vector.shape_cast %30 : vector<1x64x64xf32> to vector<64x64xf32>
    %cst_27 = arith.constant dense<0.000000e+00> : vector<64x128xf32>
    %32 = tpu.matmul %31, %25, %cst_27 {dimension_numbers = #tpu.dot_dimension_numbers<[1], [0], [0], [1], [0, 0, 1, 1], [], []>} : vector<64x64xf32>, vector<64x128xf32>, vector<64x128xf32> -> vector<64x128xf32>
    %33 = arith.addf %29, %32 : vector<64x128xf32>
    %c0_28 = arith.constant 0 : index
    %c0_29 = arith.constant 0 : index
    %34 = vector.load %arg10[%c0_28, %c0_29] : memref<1x128xf32, #tpu.memory_space<vmem>>, vector<1x128xf32>
    %35 = vector.broadcast %34 : vector<1x128xf32> to vector<64x128xf32>
    %36 = arith.addf %33, %35 : vector<64x128xf32>
    %cst_30 = arith.constant 5.000000e-01 : f32
    %37 = vector.broadcast %cst_30 : f32 to vector<64x128xf32>
    %38 = arith.mulf %37, %36 : vector<64x128xf32>
    %cst_31 = arith.constant 0.707106769 : f32
    %39 = vector.broadcast %cst_31 : f32 to vector<64x128xf32>
    %40 = arith.mulf %36, %39 : vector<64x128xf32>
    %cst_32 = arith.constant -4.000000e+00 : f32
    %cst_33 = arith.constant 4.000000e+00 : f32
    %41 = vector.broadcast %cst_32 : f32 to vector<64x128xf32>
    %42 = arith.maximumf %41, %40 : vector<64x128xf32>
    %43 = vector.broadcast %cst_33 : f32 to vector<64x128xf32>
    %44 = arith.minimumf %43, %42 : vector<64x128xf32>
    %45 = arith.mulf %44, %44 : vector<64x128xf32>
    %cst_34 = arith.constant 0.000000e+00 : f32
    %46 = vector.broadcast %cst_34 : f32 to vector<64x128xf32>
    %47 = arith.mulf %46, %45 : vector<64x128xf32>
    %cst_35 = arith.constant -2.72614237E-10 : f32
    %48 = vector.broadcast %cst_35 : f32 to vector<64x128xf32>
    %49 = arith.addf %47, %48 : vector<64x128xf32>
    %50 = arith.mulf %49, %45 : vector<64x128xf32>
    %cst_36 = arith.constant 2.77068146E-8 : f32
    %51 = vector.broadcast %cst_36 : f32 to vector<64x128xf32>
    %52 = arith.addf %50, %51 : vector<64x128xf32>
    %53 = arith.mulf %52, %45 : vector<64x128xf32>
    %cst_37 = arith.constant -2.10102394E-6 : f32
    %54 = vector.broadcast %cst_37 : f32 to vector<64x128xf32>
    %55 = arith.addf %53, %54 : vector<64x128xf32>
    %56 = arith.mulf %55, %45 : vector<64x128xf32>
    %cst_38 = arith.constant -5.69250624E-5 : f32
    %57 = vector.broadcast %cst_38 : f32 to vector<64x128xf32>
    %58 = arith.addf %56, %57 : vector<64x128xf32>
    %59 = arith.mulf %58, %45 : vector<64x128xf32>
    %cst_39 = arith.constant -7.34990637E-4 : f32
    %60 = vector.broadcast %cst_39 : f32 to vector<64x128xf32>
    %61 = arith.addf %59, %60 : vector<64x128xf32>
    %62 = arith.mulf %61, %45 : vector<64x128xf32>
    %cst_40 = arith.constant -2.954600e-03 : f32
    %63 = vector.broadcast %cst_40 : f32 to vector<64x128xf32>
    %64 = arith.addf %62, %63 : vector<64x128xf32>
    %65 = arith.mulf %64, %45 : vector<64x128xf32>
    %cst_41 = arith.constant -0.0160960332 : f32
    %66 = vector.broadcast %cst_41 : f32 to vector<64x128xf32>
    %67 = arith.addf %65, %66 : vector<64x128xf32>
    %cst_42 = arith.constant 0.000000e+00 : f32
    %68 = vector.broadcast %cst_42 : f32 to vector<64x128xf32>
    %69 = arith.mulf %68, %45 : vector<64x128xf32>
    %cst_43 = arith.constant -1.45660715E-5 : f32
    %70 = vector.broadcast %cst_43 : f32 to vector<64x128xf32>
    %71 = arith.addf %69, %70 : vector<64x128xf32>
    %72 = arith.mulf %71, %45 : vector<64x128xf32>
    %cst_44 = arith.constant -2.13374049E-4 : f32
    %73 = vector.broadcast %cst_44 : f32 to vector<64x128xf32>
    %74 = arith.addf %72, %73 : vector<64x128xf32>
    %75 = arith.mulf %74, %45 : vector<64x128xf32>
    %cst_45 = arith.constant -0.00168282702 : f32
    %76 = vector.broadcast %cst_45 : f32 to vector<64x128xf32>
    %77 = arith.addf %75, %76 : vector<64x128xf32>
    %78 = arith.mulf %77, %45 : vector<64x128xf32>
    %cst_46 = arith.constant -0.00737332925 : f32
    %79 = vector.broadcast %cst_46 : f32 to vector<64x128xf32>
    %80 = arith.addf %78, %79 : vector<64x128xf32>
    %81 = arith.mulf %80, %45 : vector<64x128xf32>
    %cst_47 = arith.constant -0.0142647391 : f32
    %82 = vector.broadcast %cst_47 : f32 to vector<64x128xf32>
    %83 = arith.addf %81, %82 : vector<64x128xf32>
    %84 = tpu.reciprocal %83 {approx = true} : vector<64x128xf32> -> vector<64x128xf32>
    %85 = arith.mulf %83, %84 : vector<64x128xf32>
    %cst_48 = arith.constant 2.000000e+00 : f32
    %86 = vector.broadcast %cst_48 : f32 to vector<64x128xf32>
    %87 = arith.subf %86, %85 : vector<64x128xf32>
    %88 = arith.mulf %84, %87 : vector<64x128xf32>
    %89 = arith.mulf %44, %67 : vector<64x128xf32>
    %90 = arith.mulf %89, %88 : vector<64x128xf32>
    %cst_49 = arith.constant 1.000000e+00 : f32
    %91 = vector.broadcast %cst_49 : f32 to vector<64x128xf32>
    %92 = arith.addf %91, %90 : vector<64x128xf32>
    %93 = arith.mulf %38, %92 : vector<64x128xf32>
    %94 = arith.mulf %93, %93 : vector<64x128xf32>
    %c0_50 = arith.constant 0 : index
    %c0_51 = arith.constant 0 : index
    %95 = vector.load %arg6[%c0_50, %c0_51] : memref<2x64xf32, #tpu.memory_space<vmem>>, vector<2x64xf32>
    %cst_52 = arith.constant dense<0.000000e+00> : vector<2x128xf32>
    %96 = tpu.matmul %95, %94, %cst_52 {dimension_numbers = #tpu.dot_dimension_numbers<[1], [0], [0], [1], [0, 0, 1, 1], [], []>} : vector<2x64xf32>, vector<64x128xf32>, vector<2x128xf32> -> vector<2x128xf32>
    %c0_53 = arith.constant 0 : index
    %c0_54 = arith.constant 0 : index
    %97 = vector.load %arg8[%c0_53, %c0_54] : memref<128x128xf32, #tpu.memory_space<vmem>>, vector<128x128xf32>
    %cst_55 = arith.constant dense<0.000000e+00> : vector<2x128xf32>
    %98 = tpu.matmul %96, %97, %cst_55 {dimension_numbers = #tpu.dot_dimension_numbers<[1], [0], [0], [1], [0, 0, 1, 1], [], []>} : vector<2x128xf32>, vector<128x128xf32>, vector<2x128xf32> -> vector<2x128xf32>
    %99 = math.sqrt %98 : vector<2x128xf32>
    %cst_56 = arith.constant 9.99999974E-6 : f32
    %100 = vector.broadcast %cst_56 : f32 to vector<2x128xf32>
    %101 = arith.maximumf %99, %100 : vector<2x128xf32>
    %102 = arith.divf %99, %101 : vector<2x128xf32>
    %c0_57 = arith.constant 0 : index
    %c0_58 = arith.constant 0 : index
    %103 = vector.load %arg11[%c0_57, %c0_58] : memref<1x128xf32, #tpu.memory_space<vmem>>, vector<1x128xf32>
    %104 = vector.broadcast %103 : vector<1x128xf32> to vector<2x128xf32>
    %105 = arith.mulf %102, %104 : vector<2x128xf32>
    %c0_59 = arith.constant 0 : index
    %c0_60 = arith.constant 0 : index
    %106 = vector.load %arg7[%c0_59, %c0_60] : memref<64x2xf32, #tpu.memory_space<vmem>>, vector<64x2xf32>
    %cst_61 = arith.constant dense<0.000000e+00> : vector<64x128xf32>
    %107 = tpu.matmul %106, %105, %cst_61 {dimension_numbers = #tpu.dot_dimension_numbers<[1], [0], [0], [1], [0, 0, 1, 1], [], []>} : vector<64x2xf32>, vector<2x128xf32>, vector<64x128xf32> -> vector<64x128xf32>
    %108 = arith.mulf %93, %107 : vector<64x128xf32>
    %c0_62 = arith.constant 0 : index
    %c0_63 = arith.constant 0 : index
    %109 = vector.load %arg12[%c0_62, %c0_63] : memref<1x128xf32, #tpu.memory_space<vmem>>, vector<1x128xf32>
    %110 = vector.broadcast %109 : vector<1x128xf32> to vector<64x128xf32>
    %111 = arith.addf %108, %110 : vector<64x128xf32>
    %112 = arith.addf %111, %93 : vector<64x128xf32>
    %c0_64 = arith.constant 0 : index
    %c0_65 = arith.constant 0 : index
    %c0_66 = arith.constant 0 : index
    %113 = vector.load %arg4[%c0_64, %c0_65, %c0_66] : memref<3x128x64xf32, #tpu.memory_space<vmem>>, vector<1x128x64xf32>
    %114 = vector.shape_cast %113 : vector<1x128x64xf32> to vector<128x64xf32>
    %cst_67 = arith.constant dense<0.000000e+00> : vector<64x64xf32>
    %115 = tpu.matmul %112, %114, %cst_67 {dimension_numbers = #tpu.dot_dimension_numbers<[1], [0], [0], [1], [0, 0, 1, 1], [], []>} : vector<64x128xf32>, vector<128x64xf32>, vector<64x64xf32> -> vector<64x64xf32>
    %c1_68 = arith.constant 1 : index
    %c0_69 = arith.constant 0 : index
    %c0_70 = arith.constant 0 : index
    %116 = vector.load %arg4[%c1_68, %c0_69, %c0_70] : memref<3x128x64xf32, #tpu.memory_space<vmem>>, vector<1x128x64xf32>
    %117 = vector.shape_cast %116 : vector<1x128x64xf32> to vector<128x64xf32>
    %cst_71 = arith.constant dense<0.000000e+00> : vector<64x64xf32>
    %118 = tpu.matmul %112, %117, %cst_71 {dimension_numbers = #tpu.dot_dimension_numbers<[1], [0], [0], [1], [0, 0, 1, 1], [], []>} : vector<64x128xf32>, vector<128x64xf32>, vector<64x64xf32> -> vector<64x64xf32>
    %c2_72 = arith.constant 2 : index
    %c0_73 = arith.constant 0 : index
    %c0_74 = arith.constant 0 : index
    %119 = vector.load %arg4[%c2_72, %c0_73, %c0_74] : memref<3x128x64xf32, #tpu.memory_space<vmem>>, vector<1x128x64xf32>
    %120 = vector.shape_cast %119 : vector<1x128x64xf32> to vector<128x64xf32>
    %cst_75 = arith.constant dense<0.000000e+00> : vector<64x64xf32>
    %121 = tpu.matmul %112, %120, %cst_75 {dimension_numbers = #tpu.dot_dimension_numbers<[1], [0], [0], [1], [0, 0, 1, 1], [], []>} : vector<64x128xf32>, vector<128x64xf32>, vector<64x64xf32> -> vector<64x64xf32>
    %c0_76 = arith.constant 0 : index
    %c0_77 = arith.constant 0 : index
    %c0_78 = arith.constant 0 : index
    %122 = vector.load %arg5[%c0_76, %c0_77, %c0_78] : memref<2x64x64xf32, #tpu.memory_space<vmem>>, vector<1x64x64xf32>
    %123 = vector.shape_cast %122 : vector<1x64x64xf32> to vector<64x64xf32>
    %cst_79 = arith.constant dense<0.000000e+00> : vector<64x64xf32>
    %124 = tpu.matmul %123, %115, %cst_79 {dimension_numbers = #tpu.dot_dimension_numbers<[1], [0], [0], [1], [0, 0, 1, 1], [], []>} : vector<64x64xf32>, vector<64x64xf32>, vector<64x64xf32> -> vector<64x64xf32>
    %125 = arith.addf %118, %124 : vector<64x64xf32>
    %c1_80 = arith.constant 1 : index
    %c0_81 = arith.constant 0 : index
    %c0_82 = arith.constant 0 : index
    %126 = vector.load %arg5[%c1_80, %c0_81, %c0_82] : memref<2x64x64xf32, #tpu.memory_space<vmem>>, vector<1x64x64xf32>
    %127 = vector.shape_cast %126 : vector<1x64x64xf32> to vector<64x64xf32>
    %cst_83 = arith.constant dense<0.000000e+00> : vector<64x64xf32>
    %128 = tpu.matmul %127, %121, %cst_83 {dimension_numbers = #tpu.dot_dimension_numbers<[1], [0], [0], [1], [0, 0, 1, 1], [], []>} : vector<64x64xf32>, vector<64x64xf32>, vector<64x64xf32> -> vector<64x64xf32>
    %129 = arith.addf %125, %128 : vector<64x64xf32>
    %130 = arith.addf %129, %7 : vector<64x64xf32>
    %c0_84 = arith.constant 0 : index
    %c0_85 = arith.constant 0 : index
    %131 = vector.load %arg13[%c0_84, %c0_85] : memref<1x64xf32, #tpu.memory_space<vmem>>, vector<1x64xf32>
    %132 = vector.broadcast %131 : vector<1x64xf32> to vector<64x64xf32>
    %133 = arith.addf %130, %132 : vector<64x64xf32>
    %c0_86 = arith.constant 0 : index
    %c0_87 = arith.constant 0 : index
    %134 = vector.load %arg14[%c0_86, %c0_87] : memref<64x64xf32, #tpu.memory_space<vmem>>, vector<64x64xf32>
    tpu.vector_store %arg14[%c0_86, %c0_87], %133 {strides = array<i32>} : memref<64x64xf32, #tpu.memory_space<vmem>>, vector<64x64xf32>,
    return
  }
}

</mosaic_0001>

<bundles_post_ra>
// kernel: tpu_custom_call.1
= control target key start
LH: loop header
LB: loop body
LE: loop exit
PB: predicated region body
PF: predicated region fallthrough
CT: control target
= control target key end

     0   :  { %s7317_s0 = inlined_call_operand.vmem [shape: f32[64,1232], index: 0, kind: input, shape index: {}]   ;;  %s7318_s1 = inlined_call_operand.vmem [shape: f32[1232,192], index: 1, kind: input, shape index: {}]   ;;  %s7319_s2 = inlined_call_operand.vmem [shape: f32[128,128], index: 2, kind: input, shape index: {}]   ;;  %s7320_s3 = inlined_call_operand.vmem [shape: f32[3,128,128], index: 3, kind: input, shape index: {}]   ;;  %s7321_s4 = inlined_call_operand.vmem [shape: f32[3,128,64], index: 4, kind: input, shape index: {}]   ;;  %s7322_s5 = inlined_call_operand.vmem [shape: f32[2,64,64], index: 5, kind: input, shape index: {}]   ;;  %s7323_s6 = inlined_call_operand.vmem [shape: f32[2,64], index: 6, kind: input, shape index: {}]   ;;  %s7324_s7 = inlined_call_operand.vmem [shape: f32[64,2], index: 7, kind: input, shape index: {}]   ;;  %s7325_s8 = inlined_call_operand.vmem [shape: f32[128,128], index: 8, kind: input, shape index: {}]   ;;  %s7326_s9 = inlined_call_operand.vmem [shape: f32[1,128], index: 9, kind: input, shape index: {}]   ;;  %s7327_s10 = inlined_call_operand.vmem [shape: f32[1,128], index: 10, kind: input, shape index: {}]   ;;  %s7328_s11 = inlined_call_operand.vmem [shape: f32[1,128], index: 11, kind: input, shape index: {}]   ;;  %s7329_s12 = inlined_call_operand.vmem [shape: f32[1,128], index: 12, kind: input, shape index: {}]   ;;  %s7330_s13 = inlined_call_operand.vmem [shape: f32[1,64], index: 13, kind: input, shape index: {}]   ;;  %s7331_s14 = inlined_call_operand.hbm [shape: f32[64,64], index: 14, kind: output, shape index: {}]  }
   0x1   :  { %v129_v0 = vld [vmem:[%s7318_s1 + $0x8] sm:$0xff]  ;;  %v131_v1 = vld [vmem:[%s7318_s1 + $0x18] sm:$0xff]  ;;  %v128_v2 = vld [vmem:[%s7318_s1] sm:$0xff] }
   0x2   :  { %v4198_v3 = vpack.c.bf16 %v131_v1, %v129_v0  ;;  %v130_v4 = vld [vmem:[%s7318_s1 + $0x10] sm:$0xff]  ;;  %v133_v5 = vld [vmem:[%s7318_s1 + $0x28] sm:$0xff]  ;;  %v135_v6 = vld [vmem:[%s7318_s1 + $0x38] sm:$0xff] }
   0x3   :  { %v4200_v7 = vpack.c.bf16 %v130_v4, %v128_v2  ;;  %v4202_v8 = vpack.c.bf16 %v135_v6, %v133_v5  ;;  %v132_v9 = vld [vmem:[%s7318_s1 + $0x20] sm:$0xff]  ;;  %v134_v10 = vld [vmem:[%s7318_s1 + $0x30] sm:$0xff]  ;;  %v137_v11 = vld [vmem:[%s7318_s1 + $0x48] sm:$0xff] }
   0x4   :  { %4199 = vmatprep.subr.bf16.mxu0 %v4198_v3  ;;  %v139_v12 = vld [vmem:[%s7318_s1 + $0x58] sm:$0xff]  ;;  %v4204_v13 = vpack.c.bf16 %v134_v10, %v132_v9  ;;  %v136_v15 = vld [vmem:[%s7318_s1 + $0x40] sm:$0xff]  ;;  %v138_v16 = vld [vmem:[%s7318_s1 + $0x50] sm:$0xff] }
   0x5   :  { %4201 = vmatpush1.bf16.msra.mxu0 %v4200_v7  ;;  %v4206_v14 = vpack.c.bf16 %v139_v12, %v137_v11  ;;  %v141_v17 = vld [vmem:[%s7318_s1 + $0x68] sm:$0xff]  ;;  %v143_v18 = vld [vmem:[%s7318_s1 + $0x78] sm:$0xff]  ;;  %v4208_v19 = vpack.c.bf16 %v138_v16, %v136_v15  ;;  %v140_v21 = vld [vmem:[%s7318_s1 + $0x60] sm:$0xff] }
   0x6   :  { %4203 = vmatprep.subr.bf16.mxu0 %v4202_v8  ;;  %v4210_v20 = vpack.c.bf16 %v143_v18, %v141_v17  ;;  %v142_v22 = vld [vmem:[%s7318_s1 + $0x70] sm:$0xff]  ;;  %v145_v23 = vld [vmem:[%s7318_s1 + $0x88] sm:$0xff]  ;;  %v147_v24 = vld [vmem:[%s7318_s1 + $0x98] sm:$0xff] }
   0x7   :  { %v4212_v25 = vpack.c.bf16 %v142_v22, %v140_v21  ;;  %v4214_v26 = vpack.c.bf16 %v147_v24, %v145_v23  ;;  %v144_v27 = vld [vmem:[%s7318_s1 + $0x80] sm:$0xff]  ;;  %v146_v28 = vld [vmem:[%s7318_s1 + $0x90] sm:$0xff]  ;;  %v149_v29 = vld [vmem:[%s7318_s1 + $0xa8] sm:$0xff] }
   0x8   :  { %v151_v30 = vld [vmem:[%s7318_s1 + $0xb8] sm:$0xff]  ;;  %v4216_v31 = vpack.c.bf16 %v146_v28, %v144_v27  ;;  %v148_v33 = vld [vmem:[%s7318_s1 + $0xa0] sm:$0xff]  ;;  %v150_v34 = vld [vmem:[%s7318_s1 + $0xb0] sm:$0xff] }
   0x9   :  { %4205 = vmatpush1.bf16.msra.mxu0 %v4204_v13  ;;  %v4218_v32 = vpack.c.bf16 %v151_v30, %v149_v29  ;;  %v153_v35 = vld [vmem:[%s7318_s1 + $0xc8] sm:$0xff]  ;;  %v155_v36 = vld [vmem:[%s7318_s1 + $0xd8] sm:$0xff]  ;;  %v4220_v37 = vpack.c.bf16 %v150_v34, %v148_v33  ;;  %v152_v39 = vld [vmem:[%s7318_s1 + $0xc0] sm:$0xff] }
   0xa   :  { %4207 = vmatprep.subr.bf16.mxu0 %v4206_v14  ;;  %v4222_v38 = vpack.c.bf16 %v155_v36, %v153_v35  ;;  %v154_v40 = vld [vmem:[%s7318_s1 + $0xd0] sm:$0xff]  ;;  %v49_v41 = vld [vmem:[%s7317_s0 + $0x8] sm:$0xff]  ;;  %v159_v43 = vld [vmem:[%s7318_s1 + $0xf8] sm:$0xff] }
   0xb   :  { %v157_v42 = vld [vmem:[%s7318_s1 + $0xe8] sm:$0xff]  ;;  %525 = vmatprep.mubr.f32.mxu0 %v49_v41  ;;  %v4224_v44 = vpack.c.bf16 %v154_v40, %v152_v39  ;;  %v156_v46 = vld [vmem:[%s7318_s1 + $0xe0] sm:$0xff]  ;;  %v158_v47 = vld [vmem:[%s7318_s1 + $0xf0] sm:$0xff] }
   0xc   :  { %v4226_v45 = vpack.c.bf16 %v159_v43, %v157_v42  ;;  %v161_v48 = vld [vmem:[%s7318_s1 + $0x108] sm:$0xff]  ;;  %v163_v49 = vld [vmem:[%s7318_s1 + $0x118] sm:$0xff]  ;;  %v4228_v50 = vpack.c.bf16 %v158_v47, %v156_v46  ;;  %v160_v52 = vld [vmem:[%s7318_s1 + $0x100] sm:$0xff] }
   0xd   :  { %4209 = vmatpush1.bf16.msra.mxu0 %v4208_v19  ;;  %v4230_v51 = vpack.c.bf16 %v163_v49, %v161_v48  ;;  %v162_v53 = vld [vmem:[%s7318_s1 + $0x110] sm:$0xff]  ;;  %v165_v54 = vld [vmem:[%s7318_s1 + $0x128] sm:$0xff]  ;;  %v167_v55 = vld [vmem:[%s7318_s1 + $0x138] sm:$0xff] }
   0xe   :  { %4211 = vmatprep.subr.bf16.mxu0 %v4210_v20  ;;  %v4232_v56 = vpack.c.bf16 %v162_v53, %v160_v52  ;;  %v4234_v57 = vpack.c.bf16 %v167_v55, %v165_v54  ;;  %v164_v58 = vld [vmem:[%s7318_s1 + $0x120] sm:$0xff]  ;;  %v166_v59 = vld [vmem:[%s7318_s1 + $0x130] sm:$0xff]  ;;  %v169_v60 = vld [vmem:[%s7318_s1 + $0x148] sm:$0xff] }
   0xf   :  { %v171_v61 = vld [vmem:[%s7318_s1 + $0x158] sm:$0xff]  ;;  %v4236_v62 = vpack.c.bf16 %v166_v59, %v164_v58  ;;  %v168_v0 = vld [vmem:[%s7318_s1 + $0x140] sm:$0xff]  ;;  %v170_v1 = vld [vmem:[%s7318_s1 + $0x150] sm:$0xff] }
  0x10   :  { %v4238_v63 = vpack.c.bf16 %v171_v61, %v169_v60  ;;  %v173_v2 = vld [vmem:[%s7318_s1 + $0x168] sm:$0xff]  ;;  %v175_v3 = vld [vmem:[%s7318_s1 + $0x178] sm:$0xff]  ;;  %v4240_v4 = vpack.c.bf16 %v170_v1, %v168_v0  ;;  %v172_v6 = vld [vmem:[%s7318_s1 + $0x160] sm:$0xff] }
  0x11   :  { %4213 = vmatpush1.bf16.msra.mxu0 %v4212_v25  ;;  %v4242_v5 = vpack.c.bf16 %v175_v3, %v173_v2  ;;  %v174_v7 = vld [vmem:[%s7318_s1 + $0x170] sm:$0xff]  ;;  %v177_v8 = vld [vmem:[%s7318_s1 + $0x188] sm:$0xff]  ;;  %v179_v9 = vld [vmem:[%s7318_s1 + $0x198] sm:$0xff] }
  0x12   :  { %4215 = vmatprep.subr.bf16.mxu0 %v4214_v26  ;;  %v4244_v10 = vpack.c.bf16 %v174_v7, %v172_v6  ;;  %v4246_v11 = vpack.c.bf16 %v179_v9, %v177_v8  ;;  %v176_v12 = vld [vmem:[%s7318_s1 + $0x180] sm:$0xff]  ;;  %v178_v13 = vld [vmem:[%s7318_s1 + $0x190] sm:$0xff]  ;;  %v181_v14 = vld [vmem:[%s7318_s1 + $0x1a8] sm:$0xff] }
  0x13   :  { %v183_v15 = vld [vmem:[%s7318_s1 + $0x1b8] sm:$0xff]  ;;  %v4248_v16 = vpack.c.bf16 %v178_v13, %v176_v12  ;;  %v180_v18 = vld [vmem:[%s7318_s1 + $0x1a0] sm:$0xff]  ;;  %v182_v19 = vld [vmem:[%s7318_s1 + $0x1b0] sm:$0xff] }
  0x14   :  { %v4250_v17 = vpack.c.bf16 %v183_v15, %v181_v14  ;;  %v185_v20 = vld [vmem:[%s7318_s1 + $0x1c8] sm:$0xff]  ;;  %v187_v21 = vld [vmem:[%s7318_s1 + $0x1d8] sm:$0xff]  ;;  %v4252_v22 = vpack.c.bf16 %v182_v19, %v180_v18  ;;  %v184_v24 = vld [vmem:[%s7318_s1 + $0x1c0] sm:$0xff] }
  0x15   :  { %4217 = vmatpush1.bf16.msra.mxu0 %v4216_v31  ;;  %v4254_v23 = vpack.c.bf16 %v187_v21, %v185_v20  ;;  %v186_v25 = vld [vmem:[%s7318_s1 + $0x1d0] sm:$0xff]  ;;  %v189_v26 = vld [vmem:[%s7318_s1 + $0x1e8] sm:$0xff]  ;;  %v191_v27 = vld [vmem:[%s7318_s1 + $0x1f8] sm:$0xff] }
  0x16   :  { %4219 = vmatprep.subr.bf16.mxu0 %v4218_v32  ;;  %v4256_v28 = vpack.c.bf16 %v186_v25, %v184_v24  ;;  %v4258_v29 = vpack.c.bf16 %v191_v27, %v189_v26  ;;  %v188_v30 = vld [vmem:[%s7318_s1 + $0x1e0] sm:$0xff]  ;;  %v190_v31 = vld [vmem:[%s7318_s1 + $0x1f0] sm:$0xff]  ;;  %v193_v32 = vld [vmem:[%s7318_s1 + $0x208] sm:$0xff] }
  0x17   :  { %v195_v33 = vld [vmem:[%s7318_s1 + $0x218] sm:$0xff]  ;;  %v4260_v34 = vpack.c.bf16 %v190_v31, %v188_v30  ;;  %v192_v36 = vld [vmem:[%s7318_s1 + $0x200] sm:$0xff]  ;;  %v201_v46 = vld [vmem:[%s7318_s1 + $0x248] sm:$0xff] }
  0x18   :  { %v4262_v35 = vpack.c.bf16 %v195_v33, %v193_v32  ;;  %v199_v39 = vld [vmem:[%s7318_s1 + $0x238] sm:$0xff]  ;;  %v48_v40 = vld [vmem:[%s7317_s0] sm:$0xff]  ;;  %v58_v49 = vld [vmem:[%s7317_s0 + $0x50] sm:$0xff] }
  0x19   :  { %4221 = vmatpush1.bf16.msra.mxu0 %v4220_v37  ;;  %v194_v37 = vld [vmem:[%s7318_s1 + $0x210] sm:$0xff]  ;;  %v196_v43 = vld [vmem:[%s7318_s1 + $0x220] sm:$0xff]  ;;  %v203_v47 = vld [vmem:[%s7318_s1 + $0x258] sm:$0xff] }
  0x1a   :  { %4223 = vmatprep.subr.bf16.mxu0 %v4222_v38  ;;  %v197_v38 = vld [vmem:[%s7318_s1 + $0x228] sm:$0xff]  ;;  %v4264_v41 = vpack.c.bf16 %v194_v37, %v192_v36  ;;  %v202_v52 = vld [vmem:[%s7318_s1 + $0x250] sm:$0xff]  ;;  %v207_v55 = vld [vmem:[%s7318_s1 + $0x278] sm:$0xff] }
  0x1b   :  { %v4266_v42 = vpack.c.bf16 %v199_v39, %v197_v38  ;;  %v69_v53 = vld [vmem:[%s7317_s0 + $0xa8] sm:$0xff]  ;;  %v204_v59 = vld [vmem:[%s7318_s1 + $0x260] sm:$0xff]  ;;  %v206_v60 = vld [vmem:[%s7318_s1 + $0x270] sm:$0xff] }
  0x1c   :  { %v205_v54 = vld [vmem:[%s7318_s1 + $0x268] sm:$0xff]  ;;  %v79_v61 = vld [vmem:[%s7317_s0 + $0xf8] sm:$0xff]  ;;  %v4276_v0 = vpack.c.bf16 %v206_v60, %v204_v59  ;;  %v78_v1 = vld [vmem:[%s7317_s0 + $0xf0] sm:$0xff] }
  0x1d   :  { %4225 = vmatpush1.bf16.msra.mxu0 %v4224_v44  ;;  %v198_v44 = vld [vmem:[%s7318_s1 + $0x230] sm:$0xff]  ;;  %v4274_v58 = vpack.c.bf16 %v207_v55, %v205_v54  ;;  %v208_v3 = vld [vmem:[%s7318_s1 + $0x280] sm:$0xff]  ;;  %v213_v6 = vld [vmem:[%s7318_s1 + $0x2a8] sm:$0xff] }
  0x1e   :  { %4227 = vmatprep.subr.bf16.mxu0 %v4226_v45  ;;  %v59_v45 = vld [vmem:[%s7317_s0 + $0x58] sm:$0xff]  ;;  %v4268_v48 = vpack.c.bf16 %v198_v44, %v196_v43  ;;  %v88_v9 = vld [vmem:[%s7317_s0 + $0x140] sm:$0xff]  ;;  %v214_v12 = vld [vmem:[%s7318_s1 + $0x2b0] sm:$0xff] }
  0x1f   :  { %v215_v7 = vld [vmem:[%s7318_s1 + $0x2b8] sm:$0xff]  ;;  %v217_v14 = vld [vmem:[%s7318_s1 + $0x2c8] sm:$0xff] }
  0x20   :  { %v99_v13 = vld [vmem:[%s7317_s0 + $0x198] sm:$0xff] }
  0x21   :  { %4229 = vmatpush1.bf16.msra.mxu0 %v4228_v50  ;;  %v4270_v50 = vpack.c.bf16 %v203_v47, %v201_v46  ;;  %v219_v15 = vld [vmem:[%s7318_s1 + $0x2d8] sm:$0xff] }
  0x22   :  { %4231 = vmatprep.subr.bf16.mxu0 %v4230_v51  ;;  %v200_v51 = vld [vmem:[%s7318_s1 + $0x240] sm:$0xff] }
  0x25   :  { %4233 = vmatpush1.bf16.msra.mxu0 %v4232_v56  ;;  %v4272_v56 = vpack.c.bf16 %v202_v52, %v200_v51 }
  0x26   :  { %4235 = vmatprep.subr.bf16.mxu0 %v4234_v57  ;;  %v68_v57 = vld [vmem:[%s7317_s0 + $0xa0] sm:$0xff] }
  0x29   :  { %4237 = vmatpush1.bf16.msra.mxu0 %v4236_v62  ;;  %v209_v62 = vld [vmem:[%s7318_s1 + $0x288] sm:$0xff] }
  0x2a   :  { %4239 = vmatprep.subr.bf16.mxu0 %v4238_v63  ;;  %v211_v63 = vld [vmem:[%s7318_s1 + $0x298] sm:$0xff] }
  0x2b   :  { %v4278_v2 = vpack.c.bf16 %v211_v63, %v209_v62 }
  0x2d   :  { %4241 = vmatpush1.bf16.msra.mxu0 %v4240_v4  ;;  %v210_v4 = vld [vmem:[%s7318_s1 + $0x290] sm:$0xff] }
  0x2e   :  { %4243 = vmatprep.subr.bf16.mxu0 %v4242_v5  ;;  %v89_v5 = vld [vmem:[%s7317_s0 + $0x148] sm:$0xff]  ;;  %v4280_v8 = vpack.c.bf16 %v210_v4, %v208_v3 }
  0x31   :  { %4245 = vmatpush1.bf16.msra.mxu0 %v4244_v10  ;;  %v4282_v10 = vpack.c.bf16 %v215_v7, %v213_v6 }
  0x32   :  { %4247 = vmatprep.subr.bf16.mxu0 %v4246_v11  ;;  %v212_v11 = vld [vmem:[%s7318_s1 + $0x2a0] sm:$0xff] }
  0x35   :  { %4249 = vmatpush1.bf16.msra.mxu0 %v4248_v16 }
  0x36   :  { %4251 = vmatprep.subr.bf16.mxu0 %v4250_v17 }
  0x39   :  { %4253 = vmatpush1.bf16.msra.mxu0 %v4252_v22 }
  0x3a   :  { %4255 = vmatprep.subr.bf16.mxu0 %v4254_v23 }
  0x3d   :  { %4257 = vmatpush1.bf16.msra.mxu0 %v4256_v28 }
  0x3e   :  { %4259 = vmatprep.subr.bf16.mxu0 %v4258_v29 }
  0x41   :  { %4261 = vmatpush1.bf16.msra.mxu0 %v4260_v34 }
  0x42   :  { %4263 = vmatprep.subr.bf16.mxu0 %v4262_v35 }
  0x44   :  { %526 = vmatmul.mubr.f32.vlgmr.msra.gmra.mrb[0].mxu0 %v48_v40 }
  0x45   :  { %4265 = vmatpush1.bf16.msra.mxu0 %v4264_v41  ;;  %531 = vmatprep.mubr.f32.mxu0 %v59_v45 }
  0x46   :  { %4267 = vmatprep.subr.bf16.mxu0 %v4266_v42 }
  0x48   :  { %532 = vmatmul.mubr.f32.gmra.mrb[2].mxu0 %v58_v49 }
  0x49   :  { %4269 = vmatpush1.bf16.msra.mxu0 %v4268_v48  ;;  %537 = vmatprep.mubr.f32.mxu0 %v69_v53 }
  0x4a   :  { %4271 = vmatprep.subr.bf16.mxu0 %v4270_v50 }
  0x4c   :  { %538 = vmatmul.mubr.f32.gmra.mrb[4].mxu0 %v68_v57 }
  0x4d   :  { %4273 = vmatpush1.bf16.msra.mxu0 %v4272_v56  ;;  %543 = vmatprep.mubr.f32.mxu0 %v79_v61 }
  0x4e   :  { %4275 = vmatprep.subr.bf16.mxu0 %v4274_v58 }
  0x50   :  { %544 = vmatmul.mubr.f32.gmra.mrb[6].mxu0 %v78_v1 }
  0x51   :  { %4277 = vmatpush1.bf16.msra.mxu0 %v4276_v0  ;;  %549 = vmatprep.mubr.f32.mxu0 %v89_v5 }
  0x52   :  { %4279 = vmatprep.subr.bf16.mxu0 %v4278_v2 }
  0x53   :  { %19 = vsyncpa [#allocation3], 0  ;;  %v4284_v16 = vpack.c.bf16 %v214_v12, %v212_v11  ;;  %v98_v17 = vld [vmem:[%s7317_s0 + $0x190] sm:$0xff]  ;;  %v4286_v18 = vpack.c.bf16 %v219_v15, %v217_v14  ;;  %v216_v19 = vld [vmem:[%s7318_s1 + $0x2c0] sm:$0xff]  ;;  %vm436_vm0 = vcmask 654336   ;;  %vm1567_vm1 = vcmask 523264  }
  0x54   :  { %550 = vmatmul.mubr.f32.gmra.mrb[8].mxu0 %v88_v9  ;;  %v218_v20 = vld [vmem:[%s7318_s1 + $0x2d0] sm:$0xff]  ;;  %v109_v21 = vld [vmem:[%s7317_s0 + $0x1e8] sm:$0xff]  ;;  %v223_v23 = vld [vmem:[%s7318_s1 + $0x2f8] sm:$0xff]  ;;  %vm5041_vm2 = vmmov 0   ;;  %vm2445_vm3 = vcmask 15360   ;;  %vm2470_vm6 = vcmask 1041408  }
  0x55   :  { %4281 = vmatpush1.bf16.msra.mxu0 %v4280_v8  ;;  %555 = vmatprep.mubr.f32.mxu0 %v99_v13  ;;  %v221_v22 = vld [vmem:[%s7318_s1 + $0x2e8] sm:$0xff]  ;;  %v4288_v24 = vpack.c.bf16 %v218_v20, %v216_v19  ;;  %v108_v25 = vld [vmem:[%s7317_s0 + $0x1e0] sm:$0xff]  ;;  %v222_v28 = vld [vmem:[%s7318_s1 + $0x2f0] sm:$0xff] }
  0x56   :  { %4283 = vmatprep.subr.bf16.mxu0 %v4282_v10  ;;  %v4290_v26 = vpack.c.bf16 %v223_v23, %v221_v22  ;;  %v220_v27 = vld [vmem:[%s7318_s1 + $0x2e0] sm:$0xff]  ;;  %v119_v29 = vld [vmem:[%s7317_s0 + $0x238] sm:$0xff]  ;;  %v225_v30 = vld [vmem:[%s7318_s1 + $0x308] sm:$0xff] }
  0x57   :  { %v227_v31 = vld [vmem:[%s7318_s1 + $0x318] sm:$0xff]  ;;  %v4292_v32 = vpack.c.bf16 %v222_v28, %v220_v27  ;;  %v118_v33 = vld [vmem:[%s7317_s0 + $0x230] sm:$0xff]  ;;  %v224_v35 = vld [vmem:[%s7318_s1 + $0x300] sm:$0xff] }
  0x58   :  { %556 = vmatmul.mubr.f32.gmra.mrb[10].mxu0 %v98_v17  ;;  %v4294_v34 = vpack.c.bf16 %v227_v31, %v225_v30  ;;  %v226_v36 = vld [vmem:[%s7318_s1 + $0x310] sm:$0xff]  ;;  %v51_v37 = vld [vmem:[%s7317_s0 + $0x18] sm:$0xff]  ;;  %v229_v38 = vld [vmem:[%s7318_s1 + $0x328] sm:$0xff] }
  0x59   :  { %4285 = vmatpush1.bf16.msra.mxu0 %v4284_v16  ;;  %561 = vmatprep.mubr.f32.mxu0 %v109_v21  ;;  %v231_v39 = vld [vmem:[%s7318_s1 + $0x338] sm:$0xff]  ;;  %v4296_v40 = vpack.c.bf16 %v226_v36, %v224_v35  ;;  %v228_v42 = vld [vmem:[%s7318_s1 + $0x320] sm:$0xff]  ;;  %v230_v43 = vld [vmem:[%s7318_s1 + $0x330] sm:$0xff] }
  0x5a   :  { %4287 = vmatprep.subr.bf16.mxu0 %v4286_v18  ;;  %v4298_v41 = vpack.c.bf16 %v231_v39, %v229_v38  ;;  %v233_v44 = vld [vmem:[%s7318_s1 + $0x348] sm:$0xff]  ;;  %v235_v45 = vld [vmem:[%s7318_s1 + $0x358] sm:$0xff]  ;;  %v4300_v46 = vpack.c.bf16 %v230_v43, %v228_v42  ;;  %v232_v48 = vld [vmem:[%s7318_s1 + $0x340] sm:$0xff] }
  0x5b   :  { %v4302_v47 = vpack.c.bf16 %v235_v45, %v233_v44  ;;  %v234_v49 = vld [vmem:[%s7318_s1 + $0x350] sm:$0xff]  ;;  %v237_v50 = vld [vmem:[%s7318_s1 + $0x368] sm:$0xff]  ;;  %v239_v51 = vld [vmem:[%s7318_s1 + $0x378] sm:$0xff] }
  0x5c   :  { %562 = vmatmul.mubr.f32.gmra.mrb[12].mxu0 %v108_v25  ;;  %v4304_v52 = vpack.c.bf16 %v234_v49, %v232_v48  ;;  %v4306_v53 = vpack.c.bf16 %v239_v51, %v237_v50  ;;  %v236_v54 = vld [vmem:[%s7318_s1 + $0x360] sm:$0xff]  ;;  %v238_v55 = vld [vmem:[%s7318_s1 + $0x370] sm:$0xff]  ;;  %v241_v56 = vld [vmem:[%s7318_s1 + $0x388] sm:$0xff] }
  0x5d   :  { %4289 = vmatpush1.bf16.msra.mxu0 %v4288_v24  ;;  %567 = vmatprep.mubr.f32.mxu0 %v119_v29  ;;  %v243_v57 = vld [vmem:[%s7318_s1 + $0x398] sm:$0xff]  ;;  %v4308_v58 = vpack.c.bf16 %v238_v55, %v236_v54  ;;  %v240_v60 = vld [vmem:[%s7318_s1 + $0x380] sm:$0xff]  ;;  %v242_v61 = vld [vmem:[%s7318_s1 + $0x390] sm:$0xff] }
  0x5e   :  { %4291 = vmatprep.subr.bf16.mxu0 %v4290_v26  ;;  %v4310_v59 = vpack.c.bf16 %v243_v57, %v241_v56  ;;  %v245_v62 = vld [vmem:[%s7318_s1 + $0x3a8] sm:$0xff]  ;;  %v247_v63 = vld [vmem:[%s7318_s1 + $0x3b8] sm:$0xff]  ;;  %v4312_v0 = vpack.c.bf16 %v242_v61, %v240_v60  ;;  %v244_v2 = vld [vmem:[%s7318_s1 + $0x3a0] sm:$0xff] }
  0x5f   :  { %v4314_v1 = vpack.c.bf16 %v247_v63, %v245_v62  ;;  %v246_v3 = vld [vmem:[%s7318_s1 + $0x3b0] sm:$0xff]  ;;  %v249_v4 = vld [vmem:[%s7318_s1 + $0x3c8] sm:$0xff]  ;;  %v251_v5 = vld [vmem:[%s7318_s1 + $0x3d8] sm:$0xff] }
  0x60   :  { %568 = vmatmul.mubr.f32.gmra.mrb[14].mxu0 %v118_v33  ;;  %v4316_v6 = vpack.c.bf16 %v246_v3, %v244_v2  ;;  %v4318_v7 = vpack.c.bf16 %v251_v5, %v249_v4  ;;  %v248_v8 = vld [vmem:[%s7318_s1 + $0x3c0] sm:$0xff]  ;;  %v250_v9 = vld [vmem:[%s7318_s1 + $0x3d0] sm:$0xff]  ;;  %v253_v10 = vld [vmem:[%s7318_s1 + $0x3e8] sm:$0xff] }
  0x61   :  { %4293 = vmatpush1.bf16.msra.mxu0 %v4292_v32  ;;  %638 = vmatprep.mubr.f32.mxu0 %v51_v37  ;;  %v255_v11 = vld [vmem:[%s7318_s1 + $0x3f8] sm:$0xff]  ;;  %v4320_v12 = vpack.c.bf16 %v250_v9, %v248_v8  ;;  %v252_v14 = vld [vmem:[%s7318_s1 + $0x3e0] sm:$0xff]  ;;  %v254_v15 = vld [vmem:[%s7318_s1 + $0x3f0] sm:$0xff] }
  0x62   :  { %4295 = vmatprep.subr.bf16.mxu0 %v4294_v34  ;;  %v4322_v13 = vpack.c.bf16 %v255_v11, %v253_v10  ;;  %v257_v16 = vld [vmem:[%s7318_s1 + $0x408] sm:$0xff]  ;;  %v259_v17 = vld [vmem:[%s7318_s1 + $0x418] sm:$0xff]  ;;  %v4324_v18 = vpack.c.bf16 %v254_v15, %v252_v14  ;;  %v256_v20 = vld [vmem:[%s7318_s1 + $0x400] sm:$0xff] }
  0x63   :  { %v4326_v19 = vpack.c.bf16 %v259_v17, %v257_v16  ;;  %v258_v21 = vld [vmem:[%s7318_s1 + $0x410] sm:$0xff]  ;;  %v261_v22 = vld [vmem:[%s7318_s1 + $0x428] sm:$0xff]  ;;  %v263_v23 = vld [vmem:[%s7318_s1 + $0x438] sm:$0xff] }
  0x64   :  { %v50_v24 = vld [vmem:[%s7317_s0 + $0x10] sm:$0xff]  ;;  %v4328_v25 = vpack.c.bf16 %v258_v21, %v256_v20  ;;  %v4330_v26 = vpack.c.bf16 %v263_v23, %v261_v22  ;;  %v260_v27 = vld [vmem:[%s7318_s1 + $0x420] sm:$0xff]  ;;  %v61_v29 = vld [vmem:[%s7317_s0 + $0x68] sm:$0xff] }
  0x65   :  { %4297 = vmatpush1.bf16.msra.mxu0 %v4296_v40  ;;  %v262_v28 = vld [vmem:[%s7318_s1 + $0x430] sm:$0xff]  ;;  %v265_v30 = vld [vmem:[%s7318_s1 + $0x448] sm:$0xff]  ;;  %v267_v31 = vld [vmem:[%s7318_s1 + $0x458] sm:$0xff] }
  0x66   :  { %4299 = vmatprep.subr.bf16.mxu0 %v4298_v41  ;;  %v4332_v32 = vpack.c.bf16 %v262_v28, %v260_v27  ;;  %v60_v33 = vld [vmem:[%s7317_s0 + $0x60] sm:$0xff]  ;;  %v4334_v34 = vpack.c.bf16 %v267_v31, %v265_v30  ;;  %v266_v36 = vld [vmem:[%s7318_s1 + $0x450] sm:$0xff]  ;;  %v71_v37 = vld [vmem:[%s7317_s0 + $0xb8] sm:$0xff] }
  0x67   :  { %v264_v35 = vld [vmem:[%s7318_s1 + $0x440] sm:$0xff]  ;;  %v269_v38 = vld [vmem:[%s7318_s1 + $0x468] sm:$0xff]  ;;  %v271_v39 = vld [vmem:[%s7318_s1 + $0x478] sm:$0xff] }
  0x68   :  { %v4336_v40 = vpack.c.bf16 %v266_v36, %v264_v35  ;;  %v70_v41 = vld [vmem:[%s7317_s0 + $0xb0] sm:$0xff]  ;;  %v4338_v42 = vpack.c.bf16 %v271_v39, %v269_v38  ;;  %v268_v43 = vld [vmem:[%s7318_s1 + $0x460] sm:$0xff]  ;;  %v81_v45 = vld [vmem:[%s7317_s0 + $0x108] sm:$0xff] }
  0x69   :  { %4301 = vmatpush1.bf16.msra.mxu0 %v4300_v46  ;;  %v270_v44 = vld [vmem:[%s7318_s1 + $0x470] sm:$0xff]  ;;  %v273_v46 = vld [vmem:[%s7318_s1 + $0x488] sm:$0xff]  ;;  %v80_v49 = vld [vmem:[%s7317_s0 + $0x100] sm:$0xff] }
  0x6a   :  { %4303 = vmatprep.subr.bf16.mxu0 %v4302_v47  ;;  %v275_v47 = vld [vmem:[%s7318_s1 + $0x498] sm:$0xff]  ;;  %v4340_v48 = vpack.c.bf16 %v270_v44, %v268_v43  ;;  %v272_v51 = vld [vmem:[%s7318_s1 + $0x480] sm:$0xff]  ;;  %v277_v54 = vld [vmem:[%s7318_s1 + $0x4a8] sm:$0xff] }
  0x6b   :  { %v4342_v50 = vpack.c.bf16 %v275_v47, %v273_v46  ;;  %v279_v55 = vld [vmem:[%s7318_s1 + $0x4b8] sm:$0xff]  ;;  %v90_v57 = vld [vmem:[%s7317_s0 + $0x150] sm:$0xff]  ;;  %v101_v61 = vld [vmem:[%s7317_s0 + $0x1a8] sm:$0xff] }
  0x6c   :  { %v278_v60 = vld [vmem:[%s7318_s1 + $0x4b0] sm:$0xff]  ;;  %v281_v62 = vld [vmem:[%s7318_s1 + $0x4c8] sm:$0xff]  ;;  %v283_v63 = vld [vmem:[%s7318_s1 + $0x4d8] sm:$0xff] }
  0x6d   :  { %4305 = vmatpush1.bf16.msra.mxu0 %v4304_v52  ;;  %v274_v52 = vld [vmem:[%s7318_s1 + $0x490] sm:$0xff]  ;;  %v4350_v2 = vpack.c.bf16 %v283_v63, %v281_v62  ;;  %v280_v3 = vld [vmem:[%s7318_s1 + $0x4c0] sm:$0xff]  ;;  %v111_v5 = vld [vmem:[%s7317_s0 + $0x1f8] sm:$0xff] }
  0x6e   :  { %4307 = vmatprep.subr.bf16.mxu0 %v4306_v53  ;;  %v91_v53 = vld [vmem:[%s7317_s0 + $0x158] sm:$0xff]  ;;  %v4344_v56 = vpack.c.bf16 %v274_v52, %v272_v51  ;;  %v282_v4 = vld [vmem:[%s7318_s1 + $0x4d0] sm:$0xff]  ;;  %v284_v11 = vld [vmem:[%s7318_s1 + $0x4e0] sm:$0xff] }
  0x6f   :  { %v4352_v8 = vpack.c.bf16 %v282_v4, %v280_v3  ;;  %v110_v9 = vld [vmem:[%s7317_s0 + $0x1f0] sm:$0xff]  ;;  %v289_v14 = vld [vmem:[%s7318_s1 + $0x508] sm:$0xff]  ;;  %v291_v15 = vld [vmem:[%s7318_s1 + $0x518] sm:$0xff] }
  0x70   :  { %v120_v17 = vld [vmem:[%s7317_s0 + $0x240] sm:$0xff]  ;;  %v290_v20 = vld [vmem:[%s7318_s1 + $0x510] sm:$0xff]  ;;  %v53_v21 = vld [vmem:[%s7317_s0 + $0x28] sm:$0xff] }
  0x71   :  { %4309 = vmatpush1.bf16.msra.mxu0 %v4308_v58  ;;  %v4346_v58 = vpack.c.bf16 %v279_v55, %v277_v54  ;;  %v293_v22 = vld [vmem:[%s7318_s1 + $0x528] sm:$0xff]  ;;  %v295_v23 = vld [vmem:[%s7318_s1 + $0x538] sm:$0xff]  ;;  %v294_v27 = vld [vmem:[%s7318_s1 + $0x530] sm:$0xff] }
  0x72   :  { %4311 = vmatprep.subr.bf16.mxu0 %v4310_v59  ;;  %v276_v59 = vld [vmem:[%s7318_s1 + $0x4a0] sm:$0xff]  ;;  %v297_v28 = vld [vmem:[%s7318_s1 + $0x548] sm:$0xff]  ;;  %v303_v35 = vld [vmem:[%s7318_s1 + $0x578] sm:$0xff] }
  0x73   :  { %v300_v38 = vld [vmem:[%s7318_s1 + $0x560] sm:$0xff]  ;;  %v302_v39 = vld [vmem:[%s7318_s1 + $0x570] sm:$0xff]  ;;  %v309_v46 = vld [vmem:[%s7318_s1 + $0x5a8] sm:$0xff] }
  0x74   :  { %v304_v44 = vld [vmem:[%s7318_s1 + $0x580] sm:$0xff]  ;;  %v311_v47 = vld [vmem:[%s7318_s1 + $0x5b8] sm:$0xff]  ;;  %v310_v51 = vld [vmem:[%s7318_s1 + $0x5b0] sm:$0xff] }
  0x75   :  { %4313 = vmatpush1.bf16.msra.mxu0 %v4312_v0  ;;  %v4348_v0 = vpack.c.bf16 %v278_v60, %v276_v59  ;;  %v313_v52 = vld [vmem:[%s7318_s1 + $0x5c8] sm:$0xff]  ;;  %v319_v59 = vld [vmem:[%s7318_s1 + $0x5f8] sm:$0xff]  ;;  %v316_v62 = vld [vmem:[%s7318_s1 + $0x5e0] sm:$0xff] }
  0x76   :  { %4315 = vmatprep.subr.bf16.mxu0 %v4314_v1  ;;  %v100_v1 = vld [vmem:[%s7317_s0 + $0x1a0] sm:$0xff]  ;;  %v318_v63 = vld [vmem:[%s7318_s1 + $0x5f0] sm:$0xff] }
  0x77   :  { %v320_v4 = vld [vmem:[%s7318_s1 + $0x600] sm:$0xff] }
  0x79   :  { %4317 = vmatpush1.bf16.msra.mxu0 %v4316_v6  ;;  %v285_v6 = vld [vmem:[%s7318_s1 + $0x4e8] sm:$0xff] }
  0x7a   :  { %4319 = vmatprep.subr.bf16.mxu0 %v4318_v7  ;;  %v287_v7 = vld [vmem:[%s7318_s1 + $0x4f8] sm:$0xff] }
  0x7b   :  { %v4354_v10 = vpack.c.bf16 %v287_v7, %v285_v6  ;;  %v325_v6 = vld [vmem:[%s7318_s1 + $0x628] sm:$0xff]  ;;  %v327_v7 = vld [vmem:[%s7318_s1 + $0x638] sm:$0xff] }
  0x7d   :  { %4321 = vmatpush1.bf16.msra.mxu0 %v4320_v12  ;;  %v286_v12 = vld [vmem:[%s7318_s1 + $0x4f0] sm:$0xff] }
  0x7e   :  { %4323 = vmatprep.subr.bf16.mxu0 %v4322_v13  ;;  %v121_v13 = vld [vmem:[%s7317_s0 + $0x248] sm:$0xff]  ;;  %v4356_v16 = vpack.c.bf16 %v286_v12, %v284_v11  ;;  %v324_v11 = vld [vmem:[%s7318_s1 + $0x620] sm:$0xff]  ;;  %v326_v12 = vld [vmem:[%s7318_s1 + $0x630] sm:$0xff] }
  0x81   :  { %4325 = vmatpush1.bf16.msra.mxu0 %v4324_v18  ;;  %v4358_v18 = vpack.c.bf16 %v291_v15, %v289_v14  ;;  %v329_v14 = vld [vmem:[%s7318_s1 + $0x648] sm:$0xff]  ;;  %v331_v15 = vld [vmem:[%s7318_s1 + $0x658] sm:$0xff] }
  0x82   :  { %4327 = vmatprep.subr.bf16.mxu0 %v4326_v19  ;;  %v288_v19 = vld [vmem:[%s7318_s1 + $0x500] sm:$0xff] }
  0x84   :  { %639 = vmatmul.mubr.f32.vlgmr.msra.gmra.mrb[0].mxu0 %v50_v24  ;;  %v4360_v24 = vpack.c.bf16 %v290_v20, %v288_v19  ;;  %v328_v19 = vld [vmem:[%s7318_s1 + $0x640] sm:$0xff]  ;;  %v330_v20 = vld [vmem:[%s7318_s1 + $0x650] sm:$0xff] }
  0x85   :  { %4329 = vmatpush1.bf16.msra.mxu0 %v4328_v25  ;;  %644 = vmatprep.mubr.f32.mxu0 %v61_v29  ;;  %v4362_v25 = vpack.c.bf16 %v295_v23, %v293_v22  ;;  %v299_v29 = vld [vmem:[%s7318_s1 + $0x558] sm:$0xff]  ;;  %v333_v22 = vld [vmem:[%s7318_s1 + $0x668] sm:$0xff] }
  0x86   :  { %4331 = vmatprep.subr.bf16.mxu0 %v4330_v26  ;;  %v292_v26 = vld [vmem:[%s7318_s1 + $0x520] sm:$0xff]  ;;  %v4366_v31 = vpack.c.bf16 %v299_v29, %v297_v28  ;;  %v335_v23 = vld [vmem:[%s7318_s1 + $0x678] sm:$0xff]  ;;  %v334_v28 = vld [vmem:[%s7318_s1 + $0x670] sm:$0xff] }
  0x87   :  { %v4364_v30 = vpack.c.bf16 %v294_v27, %v292_v26  ;;  %v4402_v26 = vpack.c.bf16 %v335_v23, %v333_v22  ;;  %v332_v27 = vld [vmem:[%s7318_s1 + $0x660] sm:$0xff]  ;;  %v83_v29 = vld [vmem:[%s7317_s0 + $0x118] sm:$0xff] }
  0x88   :  { %645 = vmatmul.mubr.f32.gmra.mrb[2].mxu0 %v60_v33  ;;  %v298_v33 = vld [vmem:[%s7318_s1 + $0x550] sm:$0xff] }
  0x89   :  { %4333 = vmatpush1.bf16.msra.mxu0 %v4332_v32  ;;  %650 = vmatprep.mubr.f32.mxu0 %v71_v37  ;;  %v296_v32 = vld [vmem:[%s7318_s1 + $0x540] sm:$0xff] }
  0x8a   :  { %4335 = vmatprep.subr.bf16.mxu0 %v4334_v34  ;;  %v301_v34 = vld [vmem:[%s7318_s1 + $0x568] sm:$0xff]  ;;  %v4368_v36 = vpack.c.bf16 %v298_v33, %v296_v32  ;;  %v4404_v32 = vpack.c.bf16 %v334_v28, %v332_v27  ;;  %v82_v33 = vld [vmem:[%s7317_s0 + $0x110] sm:$0xff]  ;;  %v363_v27 = vld [vmem:[%s7318_s1 + $0x758] sm:$0xff] }
  0x8b   :  { %v4370_v37 = vpack.c.bf16 %v303_v35, %v301_v34  ;;  %v336_v35 = vld [vmem:[%s7318_s1 + $0x680] sm:$0xff] }
  0x8c   :  { %651 = vmatmul.mubr.f32.gmra.mrb[4].mxu0 %v70_v41  ;;  %v307_v41 = vld [vmem:[%s7318_s1 + $0x598] sm:$0xff] }
  0x8d   :  { %4337 = vmatpush1.bf16.msra.mxu0 %v4336_v40  ;;  %656 = vmatprep.mubr.f32.mxu0 %v81_v45  ;;  %v305_v40 = vld [vmem:[%s7318_s1 + $0x588] sm:$0xff]  ;;  %v306_v45 = vld [vmem:[%s7318_s1 + $0x590] sm:$0xff] }
  0x8e   :  { %4339 = vmatprep.subr.bf16.mxu0 %v4338_v42  ;;  %v4372_v42 = vpack.c.bf16 %v302_v39, %v300_v38  ;;  %v4374_v43 = vpack.c.bf16 %v307_v41, %v305_v40  ;;  %v341_v38 = vld [vmem:[%s7318_s1 + $0x6a8] sm:$0xff]  ;;  %v343_v39 = vld [vmem:[%s7318_s1 + $0x6b8] sm:$0xff]  ;;  %v92_v41 = vld [vmem:[%s7317_s0 + $0x160] sm:$0xff] }
  0x90   :  { %657 = vmatmul.mubr.f32.gmra.mrb[6].mxu0 %v80_v49  ;;  %v4378_v49 = vpack.c.bf16 %v311_v47, %v309_v46  ;;  %v345_v46 = vld [vmem:[%s7318_s1 + $0x6c8] sm:$0xff]  ;;  %v347_v47 = vld [vmem:[%s7318_s1 + $0x6d8] sm:$0xff] }
  0x91   :  { %4341 = vmatpush1.bf16.msra.mxu0 %v4340_v48  ;;  %662 = vmatprep.mubr.f32.mxu0 %v91_v53  ;;  %v4376_v48 = vpack.c.bf16 %v306_v45, %v304_v44  ;;  %v315_v53 = vld [vmem:[%s7318_s1 + $0x5d8] sm:$0xff]  ;;  %v342_v44 = vld [vmem:[%s7318_s1 + $0x6b0] sm:$0xff] }
  0x92   :  { %4343 = vmatprep.subr.bf16.mxu0 %v4342_v50  ;;  %v308_v50 = vld [vmem:[%s7318_s1 + $0x5a0] sm:$0xff]  ;;  %v4382_v55 = vpack.c.bf16 %v315_v53, %v313_v52  ;;  %v103_v45 = vld [vmem:[%s7317_s0 + $0x1b8] sm:$0xff]  ;;  %v1043_v53 = vld [vmem:[%s7319_s2 + $0x10] sm:$0xff] }
  0x93   :  { %v4380_v54 = vpack.c.bf16 %v310_v51, %v308_v50  ;;  %v102_v51 = vld [vmem:[%s7317_s0 + $0x1b0] sm:$0xff] }
  0x94   :  { %663 = vmatmul.mubr.f32.gmra.mrb[8].mxu0 %v90_v57  ;;  %v314_v57 = vld [vmem:[%s7318_s1 + $0x5d0] sm:$0xff] }
  0x95   :  { %4345 = vmatpush1.bf16.msra.mxu0 %v4344_v56  ;;  %668 = vmatprep.mubr.f32.mxu0 %v101_v61  ;;  %v312_v56 = vld [vmem:[%s7318_s1 + $0x5c0] sm:$0xff] }
  0x96   :  { %4347 = vmatprep.subr.bf16.mxu0 %v4346_v58  ;;  %v317_v58 = vld [vmem:[%s7318_s1 + $0x5e8] sm:$0xff]  ;;  %v4384_v60 = vpack.c.bf16 %v314_v57, %v312_v56  ;;  %v344_v56 = vld [vmem:[%s7318_s1 + $0x6c0] sm:$0xff]  ;;  %v346_v57 = vld [vmem:[%s7318_s1 + $0x6d0] sm:$0xff] }
  0x97   :  { %v4386_v61 = vpack.c.bf16 %v319_v59, %v317_v58  ;;  %v113_v58 = vld [vmem:[%s7317_s0 + $0x208] sm:$0xff] }
  0x98   :  { %669 = vmatmul.mubr.f32.gmra.mrb[10].mxu0 %v100_v1  ;;  %v323_v1 = vld [vmem:[%s7318_s1 + $0x618] sm:$0xff]  ;;  %v349_v59 = vld [vmem:[%s7318_s1 + $0x6e8] sm:$0xff] }
  0x99   :  { %4349 = vmatpush1.bf16.msra.mxu0 %v4348_v0  ;;  %674 = vmatprep.mubr.f32.mxu0 %v111_v5  ;;  %v321_v0 = vld [vmem:[%s7318_s1 + $0x608] sm:$0xff]  ;;  %v322_v5 = vld [vmem:[%s7318_s1 + $0x610] sm:$0xff] }
  0x9a   :  { %4351 = vmatprep.subr.bf16.mxu0 %v4350_v2  ;;  %v4388_v2 = vpack.c.bf16 %v318_v63, %v316_v62  ;;  %v4390_v3 = vpack.c.bf16 %v323_v1, %v321_v0  ;;  %v4416_v62 = vpack.c.bf16 %v346_v57, %v344_v56  ;;  %v112_v63 = vld [vmem:[%s7317_s0 + $0x200] sm:$0xff]  ;;  %v1046_v1 = vld [vmem:[%s7319_s2 + $0x28] sm:$0xff]  ;;  %v374_v57 = vld [vmem:[%s7318_s1 + $0x7b0] sm:$0xff] }
  0x9b   :  { %v1045_v0 = vld [vmem:[%s7319_s2 + $0x20] sm:$0xff] }
  0x9c   :  { %675 = vmatmul.mubr.f32.gmra.mrb[12].mxu0 %v110_v9  ;;  %v4392_v9 = vpack.c.bf16 %v322_v5, %v320_v4  ;;  %v350_v4 = vld [vmem:[%s7318_s1 + $0x6f0] sm:$0xff]  ;;  %v123_v5 = vld [vmem:[%s7317_s0 + $0x258] sm:$0xff]  ;;  %v372_v56 = vld [vmem:[%s7318_s1 + $0x7a0] sm:$0xff] }
  0x9d   :  { %4353 = vmatpush1.bf16.msra.mxu0 %v4352_v8  ;;  %680 = vmatprep.mubr.f32.mxu0 %v121_v13  ;;  %v52_v8 = vld [vmem:[%s7317_s0 + $0x20] sm:$0xff]  ;;  %v63_v13 = vld [vmem:[%s7317_s0 + $0x78] sm:$0xff] }
  0x9e   :  { %4355 = vmatprep.subr.bf16.mxu0 %v4354_v10  ;;  %v4394_v10 = vpack.c.bf16 %v327_v7, %v325_v6  ;;  %v353_v6 = vld [vmem:[%s7318_s1 + $0x708] sm:$0xff]  ;;  %v355_v7 = vld [vmem:[%s7318_s1 + $0x718] sm:$0xff] }
  0xa0   :  { %681 = vmatmul.mubr.f32.gmra.mrb[14].mxu0 %v120_v17  ;;  %v62_v17 = vld [vmem:[%s7317_s0 + $0x70] sm:$0xff] }
  0xa1   :  { %4357 = vmatpush1.bf16.msra.mxu0 %v4356_v16  ;;  %751 = vmatprep.mubr.f32.mxu0 %v53_v21  ;;  %v4396_v16 = vpack.c.bf16 %v326_v12, %v324_v11  ;;  %v73_v21 = vld [vmem:[%s7317_s0 + $0xc8] sm:$0xff]  ;;  %v1047_v11 = vld [vmem:[%s7319_s2 + $0x30] sm:$0xff]  ;;  %v1048_v12 = vld [vmem:[%s7319_s2 + $0x38] sm:$0xff] }
  0xa2   :  { %4359 = vmatprep.subr.bf16.mxu0 %v4358_v18  ;;  %v4398_v18 = vpack.c.bf16 %v331_v15, %v329_v14  ;;  %v352_v14 = vld [vmem:[%s7318_s1 + $0x700] sm:$0xff]  ;;  %v354_v15 = vld [vmem:[%s7318_s1 + $0x710] sm:$0xff] }
  0xa3   :  { %v4424_v22 = vpack.c.bf16 %v354_v15, %v352_v14  ;;  %v389_v14 = vld [vmem:[%s7318_s1 + $0x828] sm:$0xff]  ;;  %v391_v15 = vld [vmem:[%s7318_s1 + $0x838] sm:$0xff] }
  0xa5   :  { %4361 = vmatpush1.bf16.msra.mxu0 %v4360_v24  ;;  %v4400_v24 = vpack.c.bf16 %v330_v20, %v328_v19  ;;  %v5993_v19 = vpack.c.bf16 %v1048_v12, %v1047_v11  ;;  %v1049_v20 = vld [vmem:[%s7319_s2 + $0x40] sm:$0xff] }
  0xa6   :  { %4363 = vmatprep.subr.bf16.mxu0 %v4362_v25  ;;  %v72_v25 = vld [vmem:[%s7317_s0 + $0xc0] sm:$0xff] }
  0xa7   :  { %v384_v12 = vld [vmem:[%s7318_s1 + $0x800] sm:$0xff] }
  0xa9   :  { %4365 = vmatpush1.bf16.msra.mxu0 %v4364_v30  ;;  %v337_v30 = vld [vmem:[%s7318_s1 + $0x688] sm:$0xff] }
  0xaa   :  { %4367 = vmatprep.subr.bf16.mxu0 %v4366_v31  ;;  %v339_v31 = vld [vmem:[%s7318_s1 + $0x698] sm:$0xff] }
  0xab   :  { %v4406_v34 = vpack.c.bf16 %v339_v31, %v337_v30  ;;  %v1052_v30 = vld [vmem:[%s7319_s2 + $0x58] sm:$0xff] }
  0xad   :  { %4369 = vmatpush1.bf16.msra.mxu0 %v4368_v36  ;;  %v338_v36 = vld [vmem:[%s7318_s1 + $0x690] sm:$0xff] }
  0xae   :  { %4371 = vmatprep.subr.bf16.mxu0 %v4370_v37  ;;  %v93_v37 = vld [vmem:[%s7317_s0 + $0x168] sm:$0xff]  ;;  %v4408_v40 = vpack.c.bf16 %v338_v36, %v336_v35  ;;  %v367_v36 = vld [vmem:[%s7318_s1 + $0x778] sm:$0xff] }
  0xaf   :  { %v365_v35 = vld [vmem:[%s7318_s1 + $0x768] sm:$0xff] }
  0xb1   :  { %4373 = vmatpush1.bf16.msra.mxu0 %v4372_v42  ;;  %v4410_v42 = vpack.c.bf16 %v343_v39, %v341_v38  ;;  %v1053_v38 = vld [vmem:[%s7319_s2 + $0x60] sm:$0xff]  ;;  %v1054_v39 = vld [vmem:[%s7319_s2 + $0x68] sm:$0xff] }
  0xb2   :  { %4375 = vmatprep.subr.bf16.mxu0 %v4374_v43  ;;  %v340_v43 = vld [vmem:[%s7318_s1 + $0x6a0] sm:$0xff] }
  0xb3   :  { %v4412_v50 = vpack.c.bf16 %v342_v44, %v340_v43  ;;  %v366_v43 = vld [vmem:[%s7318_s1 + $0x770] sm:$0xff]  ;;  %v369_v44 = vld [vmem:[%s7318_s1 + $0x788] sm:$0xff] }
  0xb5   :  { %4377 = vmatpush1.bf16.msra.mxu0 %v4376_v48  ;;  %v1041_v48 = vld [vmem:[%s7319_s2] sm:$0xff] }
  0xb6   :  { %4379 = vmatprep.subr.bf16.mxu0 %v4378_v49  ;;  %v1042_v49 = vld [vmem:[%s7319_s2 + $0x8] sm:$0xff] }
  0xb7   :  { %v5913_v52 = vpack.c.bf16 %v1042_v49, %v1041_v48  ;;  %v368_v49 = vld [vmem:[%s7318_s1 + $0x780] sm:$0xff] }
  0xb9   :  { %4381 = vmatpush1.bf16.msra.mxu0 %v4380_v54  ;;  %v1044_v54 = vld [vmem:[%s7319_s2 + $0x18] sm:$0xff]  ;;  %4539 = vmatprep.subr.bf16.mxu1 %v5913_v52 }
  0xba   :  { %4383 = vmatprep.subr.bf16.mxu0 %v4382_v55  ;;  %v4414_v55 = vpack.c.bf16 %v347_v47, %v345_v46  ;;  %4541 = vmatpush3.bf16.msra.mxu1 %v5913_v52  ;;  %v6059_v46 = vpack.c.bf16 %v1054_v39, %v1053_v38  ;;  %v396_v38 = vld [vmem:[%s7318_s1 + $0x860] sm:$0xff]  ;;  %v398_v39 = vld [vmem:[%s7318_s1 + $0x870] sm:$0xff] }
  0xbd   :  { %4385 = vmatpush1.bf16.msra.mxu0 %v4384_v60  ;;  %v351_v60 = vld [vmem:[%s7318_s1 + $0x6f8] sm:$0xff] }
  0xbe   :  { %4387 = vmatprep.subr.bf16.mxu0 %v4386_v61  ;;  %v5937_v61 = vpack.c.bf16 %v1044_v54, %v1043_v53  ;;  %v375_v53 = vld [vmem:[%s7318_s1 + $0x7b8] sm:$0xff] }
  0xc0   :  { %4543 = vmatprep.subr.bf16.mxu1 %v5937_v61 }
  0xc1   :  { %4389 = vmatpush1.bf16.msra.mxu0 %v4388_v2  ;;  %v4418_v2 = vpack.c.bf16 %v351_v60, %v349_v59  ;;  %4545 = vmatpush3.bf16.msra.mxu1 %v5937_v61  ;;  %v379_v59 = vld [vmem:[%s7318_s1 + $0x7d8] sm:$0xff]  ;;  %v4444_v60 = vpack.c.bf16 %v374_v57, %v372_v56  ;;  %v404_v56 = vld [vmem:[%s7318_s1 + $0x8a0] sm:$0xff]  ;;  %v406_v57 = vld [vmem:[%s7318_s1 + $0x8b0] sm:$0xff] }
  0xc2   :  { %4391 = vmatprep.subr.bf16.mxu0 %v4390_v3  ;;  %v348_v3 = vld [vmem:[%s7318_s1 + $0x6e0] sm:$0xff] }
  0xc4   :  { %752 = vmatmul.mubr.f32.vlgmr.msra.gmra.mrb[0].mxu0 %v52_v8  ;;  %v5965_v8 = vpack.c.bf16 %v1046_v1, %v1045_v0  ;;  %v378_v0 = vld [vmem:[%s7318_s1 + $0x7d0] sm:$0xff]  ;;  %v381_v1 = vld [vmem:[%s7318_s1 + $0x7e8] sm:$0xff] }
  0xc5   :  { %4393 = vmatpush1.bf16.msra.mxu0 %v4392_v9  ;;  %757 = vmatprep.mubr.f32.mxu0 %v63_v13  ;;  %v4420_v9 = vpack.c.bf16 %v350_v4, %v348_v3  ;;  %v4422_v13 = vpack.c.bf16 %v355_v7, %v353_v6  ;;  %v382_v6 = vld [vmem:[%s7318_s1 + $0x7f0] sm:$0xff]  ;;  %v385_v7 = vld [vmem:[%s7318_s1 + $0x808] sm:$0xff] }
  0xc6   :  { %4395 = vmatprep.subr.bf16.mxu0 %v4394_v10  ;;  %v122_v10 = vld [vmem:[%s7317_s0 + $0x250] sm:$0xff]  ;;  %4547 = vmatprep.subr.bf16.mxu1 %v5965_v8 }
  0xc7   :  { %4549 = vmatpush3.bf16.msra.mxu1 %v5965_v8 }
  0xc8   :  { %758 = vmatmul.mubr.f32.gmra.mrb[2].mxu0 %v62_v17  ;;  %v357_v17 = vld [vmem:[%s7318_s1 + $0x728] sm:$0xff]  ;;  %4551 = vmatprep.subr.bf16.mxu1 %v5993_v19 }
  0xc9   :  { %4397 = vmatpush1.bf16.msra.mxu0 %v4396_v16  ;;  %763 = vmatprep.mubr.f32.mxu0 %v73_v21  ;;  %v55_v16 = vld [vmem:[%s7317_s0 + $0x38] sm:$0xff]  ;;  %v1050_v21 = vld [vmem:[%s7319_s2 + $0x48] sm:$0xff] }
  0xca   :  { %4399 = vmatprep.subr.bf16.mxu0 %v4398_v18  ;;  %v359_v18 = vld [vmem:[%s7318_s1 + $0x738] sm:$0xff]  ;;  %v6015_v28 = vpack.c.bf16 %v1050_v21, %v1049_v20  ;;  %v388_v20 = vld [vmem:[%s7318_s1 + $0x820] sm:$0xff]  ;;  %v390_v21 = vld [vmem:[%s7318_s1 + $0x830] sm:$0xff] }
  0xcb   :  { %v4426_v23 = vpack.c.bf16 %v359_v18, %v357_v17  ;;  %4553 = vmatpush3.bf16.msra.mxu1 %v5993_v19  ;;  %v4458_v18 = vpack.c.bf16 %v391_v15, %v389_v14  ;;  %v419_v14 = vld [vmem:[%s7318_s1 + $0x918] sm:$0xff] }
  0xcc   :  { %764 = vmatmul.mubr.f32.gmra.mrb[4].mxu0 %v72_v25  ;;  %v358_v25 = vld [vmem:[%s7318_s1 + $0x730] sm:$0xff]  ;;  %4555 = vmatprep.subr.bf16.mxu1 %v6015_v28 }
  0xcd   :  { %4401 = vmatpush1.bf16.msra.mxu0 %v4400_v24  ;;  %769 = vmatprep.mubr.f32.mxu0 %v83_v29  ;;  %v356_v24 = vld [vmem:[%s7318_s1 + $0x720] sm:$0xff]  ;;  %v1051_v29 = vld [vmem:[%s7319_s2 + $0x50] sm:$0xff] }
  0xce   :  { %4403 = vmatprep.subr.bf16.mxu0 %v4402_v26  ;;  %v361_v26 = vld [vmem:[%s7318_s1 + $0x748] sm:$0xff]  ;;  %v4428_v31 = vpack.c.bf16 %v358_v25, %v356_v24  ;;  %v395_v24 = vld [vmem:[%s7318_s1 + $0x858] sm:$0xff]  ;;  %v4460_v25 = vpack.c.bf16 %v390_v21, %v388_v20  ;;  %v418_v20 = vld [vmem:[%s7318_s1 + $0x910] sm:$0xff] }
  0xcf   :  { %4557 = vmatpush3.bf16.msra.mxu1 %v6015_v28  ;;  %v57_v21 = vld [vmem:[%s7317_s0 + $0x48] sm:$0xff] }
  0xd0   :  { %770 = vmatmul.mubr.f32.gmra.mrb[6].mxu0 %v82_v33  ;;  %v360_v33 = vld [vmem:[%s7318_s1 + $0x740] sm:$0xff] }
  0xd1   :  { %4405 = vmatpush1.bf16.msra.mxu0 %v4404_v32  ;;  %775 = vmatprep.mubr.f32.mxu0 %v93_v37  ;;  %v4430_v32 = vpack.c.bf16 %v363_v27, %v361_v26  ;;  %v6037_v37 = vpack.c.bf16 %v1052_v30, %v1051_v29  ;;  %v64_v26 = vld [vmem:[%s7317_s0 + $0x80] sm:$0xff]  ;;  %v394_v30 = vld [vmem:[%s7318_s1 + $0x850] sm:$0xff] }
  0xd2   :  { %4407 = vmatprep.subr.bf16.mxu0 %v4406_v34  ;;  %v362_v34 = vld [vmem:[%s7318_s1 + $0x750] sm:$0xff]  ;;  %v392_v29 = vld [vmem:[%s7318_s1 + $0x840] sm:$0xff] }
  0xd3   :  { %4559 = vmatprep.subr.bf16.mxu1 %v6037_v37 }
  0xd4   :  { %776 = vmatmul.mubr.f32.gmra.mrb[8].mxu0 %v92_v41  ;;  %v4434_v41 = vpack.c.bf16 %v367_v36, %v365_v35  ;;  %4561 = vmatpush3.bf16.msra.mxu1 %v6037_v37  ;;  %v74_v35 = vld [vmem:[%s7317_s0 + $0xd0] sm:$0xff] }
  0xd5   :  { %4409 = vmatpush1.bf16.msra.mxu0 %v4408_v40  ;;  %781 = vmatprep.mubr.f32.mxu0 %v103_v45  ;;  %v4432_v40 = vpack.c.bf16 %v362_v34, %v360_v33  ;;  %v371_v45 = vld [vmem:[%s7318_s1 + $0x798] sm:$0xff]  ;;  %v4464_v34 = vpack.c.bf16 %v394_v30, %v392_v29  ;;  %v425_v29 = vld [vmem:[%s7318_s1 + $0x948] sm:$0xff] }
  0xd6   :  { %4411 = vmatprep.subr.bf16.mxu0 %v4410_v42  ;;  %v364_v42 = vld [vmem:[%s7318_s1 + $0x760] sm:$0xff]  ;;  %4563 = vmatprep.subr.bf16.mxu1 %v6059_v46  ;;  %v4438_v48 = vpack.c.bf16 %v371_v45, %v369_v44  ;;  %v399_v33 = vld [vmem:[%s7318_s1 + $0x878] sm:$0xff] }
  0xd7   :  { %v4436_v47 = vpack.c.bf16 %v366_v43, %v364_v42  ;;  %v403_v42 = vld [vmem:[%s7318_s1 + $0x898] sm:$0xff]  ;;  %v4468_v43 = vpack.c.bf16 %v398_v39, %v396_v38  ;;  %v84_v44 = vld [vmem:[%s7317_s0 + $0x120] sm:$0xff] }
  0xd8   :  { %782 = vmatmul.mubr.f32.gmra.mrb[10].mxu0 %v102_v51  ;;  %v373_v51 = vld [vmem:[%s7318_s1 + $0x7a8] sm:$0xff]  ;;  %4565 = vmatpush3.bf16.msra.mxu1 %v6059_v46  ;;  %v427_v30 = vld [vmem:[%s7318_s1 + $0x958] sm:$0xff] }
  0xd9   :  { %4413 = vmatpush1.bf16.msra.mxu0 %v4412_v50  ;;  %787 = vmatprep.mubr.f32.mxu0 %v113_v58  ;;  %v370_v50 = vld [vmem:[%s7318_s1 + $0x790] sm:$0xff]  ;;  %v377_v58 = vld [vmem:[%s7318_s1 + $0x7c8] sm:$0xff] }
  0xda   :  { %4415 = vmatprep.subr.bf16.mxu0 %v4414_v55  ;;  %v4440_v54 = vpack.c.bf16 %v370_v50, %v368_v49  ;;  %v4442_v55 = vpack.c.bf16 %v375_v53, %v373_v51  ;;  %v95_v49 = vld [vmem:[%s7317_s0 + $0x178] sm:$0xff]  ;;  %v405_v50 = vld [vmem:[%s7318_s1 + $0x8a8] sm:$0xff] }
  0xdb   :  { %v407_v51 = vld [vmem:[%s7318_s1 + $0x8b8] sm:$0xff] }
  0xdc   :  { %788 = vmatmul.mubr.f32.gmra.mrb[12].mxu0 %v112_v63  ;;  %v376_v63 = vld [vmem:[%s7318_s1 + $0x7c0] sm:$0xff] }
  0xdd   :  { %4417 = vmatpush1.bf16.msra.mxu0 %v4416_v62  ;;  %793 = vmatprep.mubr.f32.mxu0 %v123_v5  ;;  %v4446_v62 = vpack.c.bf16 %v379_v59, %v377_v58  ;;  %v4448_v3 = vpack.c.bf16 %v378_v0, %v376_v63  ;;  %v380_v5 = vld [vmem:[%s7318_s1 + $0x7e0] sm:$0xff]  ;;  %v105_v58 = vld [vmem:[%s7317_s0 + $0x1c8] sm:$0xff] }
  0xde   :  { %4419 = vmatprep.subr.bf16.mxu0 %v4418_v2  ;;  %v383_v2 = vld [vmem:[%s7318_s1 + $0x7f8] sm:$0xff]  ;;  %v409_v59 = vld [vmem:[%s7318_s1 + $0x8c8] sm:$0xff]  ;;  %v104_v63 = vld [vmem:[%s7317_s0 + $0x1c0] sm:$0xff] }
  0xdf   :  { %v4450_v4 = vpack.c.bf16 %v383_v2, %v381_v1  ;;  %v408_v1 = vld [vmem:[%s7318_s1 + $0x8c0] sm:$0xff]  ;;  %v410_v2 = vld [vmem:[%s7318_s1 + $0x8d0] sm:$0xff] }
  0xe0   :  { %794 = vmatmul.mubr.f32.gmra.mrb[14].mxu0 %v122_v10  ;;  %v4452_v10 = vpack.c.bf16 %v382_v6, %v380_v5  ;;  %v415_v5 = vld [vmem:[%s7318_s1 + $0x8f8] sm:$0xff]  ;;  %v4480_v6 = vpack.c.bf16 %v410_v2, %v408_v1 }
  0xe1   :  { %4421 = vmatpush1.bf16.msra.mxu0 %v4420_v9  ;;  %864 = vmatprep.mubr.f32.mxu0 %v55_v16  ;;  %v387_v9 = vld [vmem:[%s7318_s1 + $0x818] sm:$0xff]  ;;  %v54_v16 = vld [vmem:[%s7317_s0 + $0x30] sm:$0xff] }
  0xe2   :  { %4423 = vmatprep.subr.bf16.mxu0 %v4422_v13  ;;  %v4454_v11 = vpack.c.bf16 %v387_v9, %v385_v7  ;;  %v386_v13 = vld [vmem:[%s7318_s1 + $0x810] sm:$0xff] }
  0xe3   :  { %v4456_v17 = vpack.c.bf16 %v386_v13, %v384_v12  ;;  %v114_v7 = vld [vmem:[%s7317_s0 + $0x210] sm:$0xff]  ;;  %v125_v12 = vld [vmem:[%s7317_s0 + $0x268] sm:$0xff] }
  0xe4   :  { %v417_v13 = vld [vmem:[%s7318_s1 + $0x908] sm:$0xff] }
  0xe5   :  { %4425 = vmatpush1.bf16.msra.mxu0 %v4424_v22  ;;  %v65_v22 = vld [vmem:[%s7317_s0 + $0x88] sm:$0xff] }
  0xe6   :  { %4427 = vmatprep.subr.bf16.mxu0 %v4426_v23  ;;  %v393_v23 = vld [vmem:[%s7318_s1 + $0x848] sm:$0xff] }
  0xe7   :  { %v4462_v27 = vpack.c.bf16 %v395_v24, %v393_v23  ;;  %v423_v23 = vld [vmem:[%s7318_s1 + $0x938] sm:$0xff] }
  0xe9   :  { %4429 = vmatpush1.bf16.msra.mxu0 %v4428_v31  ;;  %v75_v31 = vld [vmem:[%s7317_s0 + $0xd8] sm:$0xff] }
  0xea   :  { %4431 = vmatprep.subr.bf16.mxu0 %v4430_v32  ;;  %v397_v32 = vld [vmem:[%s7318_s1 + $0x868] sm:$0xff] }
  0xeb   :  { %v4466_v36 = vpack.c.bf16 %v399_v33, %v397_v32  ;;  %v4494_v32 = vpack.c.bf16 %v427_v30, %v425_v29  ;;  %v424_v33 = vld [vmem:[%s7318_s1 + $0x940] sm:$0xff] }
  0xed   :  { %4433 = vmatpush1.bf16.msra.mxu0 %v4432_v40  ;;  %v85_v40 = vld [vmem:[%s7317_s0 + $0x128] sm:$0xff] }
  0xee   :  { %4435 = vmatprep.subr.bf16.mxu0 %v4434_v41  ;;  %v401_v41 = vld [vmem:[%s7318_s1 + $0x888] sm:$0xff] }
  0xef   :  { %v4470_v45 = vpack.c.bf16 %v403_v42, %v401_v41  ;;  %v430_v41 = vld [vmem:[%s7318_s1 + $0x970] sm:$0xff]  ;;  %v433_v42 = vld [vmem:[%s7318_s1 + $0x988] sm:$0xff] }
  0xf1   :  { %4437 = vmatpush1.bf16.msra.mxu0 %v4436_v47  ;;  %v400_v47 = vld [vmem:[%s7318_s1 + $0x880] sm:$0xff] }
  0xf2   :  { %4439 = vmatprep.subr.bf16.mxu0 %v4438_v48  ;;  %v402_v48 = vld [vmem:[%s7318_s1 + $0x890] sm:$0xff] }
  0xf3   :  { %v4472_v53 = vpack.c.bf16 %v402_v48, %v400_v47  ;;  %v432_v47 = vld [vmem:[%s7318_s1 + $0x980] sm:$0xff]  ;;  %v434_v48 = vld [vmem:[%s7318_s1 + $0x990] sm:$0xff] }
  0xf5   :  { %4441 = vmatpush1.bf16.msra.mxu0 %v4440_v54  ;;  %v94_v54 = vld [vmem:[%s7317_s0 + $0x170] sm:$0xff] }
  0xf6   :  { %4443 = vmatprep.subr.bf16.mxu0 %v4442_v55  ;;  %v4474_v55 = vpack.c.bf16 %v407_v51, %v405_v50  ;;  %v56_v50 = vld [vmem:[%s7317_s0 + $0x40] sm:$0xff]  ;;  %v67_v51 = vld [vmem:[%s7317_s0 + $0x98] sm:$0xff] }
  0xf9   :  { %4445 = vmatpush1.bf16.msra.mxu0 %v4444_v60  ;;  %v411_v60 = vld [vmem:[%s7318_s1 + $0x8d8] sm:$0xff] }
  0xfa   :  { %4447 = vmatprep.subr.bf16.mxu0 %v4446_v62  ;;  %v4476_v62 = vpack.c.bf16 %v406_v57, %v404_v56  ;;  %v4478_v0 = vpack.c.bf16 %v411_v60, %v409_v59  ;;  %v87_v56 = vld [vmem:[%s7317_s0 + $0x138] sm:$0xff]  ;;  %v97_v57 = vld [vmem:[%s7317_s0 + $0x188] sm:$0xff] }
  0xfb   :  { %v117_v59 = vld [vmem:[%s7317_s0 + $0x228] sm:$0xff]  ;;  %v127_v60 = vld [vmem:[%s7317_s0 + $0x278] sm:$0xff] }
  0xfd   :  { %4449 = vmatpush1.bf16.msra.mxu0 %v4448_v3  ;;  %v115_v3 = vld [vmem:[%s7317_s0 + $0x218] sm:$0xff] }
  0xfe   :  { %4451 = vmatprep.subr.bf16.mxu0 %v4450_v4  ;;  %v413_v4 = vld [vmem:[%s7318_s1 + $0x8e8] sm:$0xff] }
  0xff   :  { %v4482_v9 = vpack.c.bf16 %v415_v5, %v413_v4 }
 0x101   :  { %4453 = vmatpush1.bf16.msra.mxu0 %v4452_v10  ;;  %v412_v10 = vld [vmem:[%s7318_s1 + $0x8e0] sm:$0xff] }
 0x102   :  { %4455 = vmatprep.subr.bf16.mxu0 %v4454_v11  ;;  %v414_v11 = vld [vmem:[%s7318_s1 + $0x8f0] sm:$0xff] }
 0x103   :  { %v4484_v15 = vpack.c.bf16 %v414_v11, %v412_v10 }
 0x104   :  { %865 = vmatmul.mubr.f32.vlgmr.msra.gmra.mrb[0].mxu0 %v54_v16  ;;  %v124_v16 = vld [vmem:[%s7317_s0 + $0x260] sm:$0xff] }
 0x105   :  { %4457 = vmatpush1.bf16.msra.mxu0 %v4456_v17  ;;  %870 = vmatprep.mubr.f32.mxu0 %v65_v22  ;;  %v4486_v17 = vpack.c.bf16 %v419_v14, %v417_v13  ;;  %v421_v22 = vld [vmem:[%s7318_s1 + $0x928] sm:$0xff] }
 0x106   :  { %4459 = vmatprep.subr.bf16.mxu0 %v4458_v18  ;;  %v416_v18 = vld [vmem:[%s7318_s1 + $0x900] sm:$0xff] }
 0x107   :  { %v4488_v24 = vpack.c.bf16 %v418_v20, %v416_v18 }
 0x108   :  { %871 = vmatmul.mubr.f32.gmra.mrb[2].mxu0 %v64_v26  ;;  %v420_v26 = vld [vmem:[%s7318_s1 + $0x920] sm:$0xff] }
 0x109   :  { %4461 = vmatpush1.bf16.msra.mxu0 %v4460_v25  ;;  %876 = vmatprep.mubr.f32.mxu0 %v75_v31  ;;  %v4490_v25 = vpack.c.bf16 %v423_v23, %v421_v22 }
 0x10a   :  { %4463 = vmatprep.subr.bf16.mxu0 %v4462_v27  ;;  %v422_v27 = vld [vmem:[%s7318_s1 + $0x930] sm:$0xff] }
 0x10b   :  { %v4492_v31 = vpack.c.bf16 %v422_v27, %v420_v26  ;;  %v1299_v26 = vld [vmem:[%s7320_s3] sm:$0xff]  ;;  %v1300_v27 = vld [vmem:[%s7320_s3 + $0x8] sm:$0xff] }
 0x10c   :  { %877 = vmatmul.mubr.f32.gmra.mrb[4].mxu0 %v74_v35  ;;  %v429_v35 = vld [vmem:[%s7318_s1 + $0x968] sm:$0xff]  ;;  %v4570_v29 = vpack.c.bf16 %v1300_v27, %v1299_v26 }
 0x10d   :  { %4465 = vmatpush1.bf16.msra.mxu0 %v4464_v34  ;;  %882 = vmatprep.mubr.f32.mxu0 %v85_v40  ;;  %v426_v34 = vld [vmem:[%s7318_s1 + $0x950] sm:$0xff]  ;;  %v428_v40 = vld [vmem:[%s7318_s1 + $0x960] sm:$0xff] }
 0x10e   :  { %4467 = vmatprep.subr.bf16.mxu0 %v4466_v36  ;;  %v431_v36 = vld [vmem:[%s7318_s1 + $0x978] sm:$0xff]  ;;  %v4496_v38 = vpack.c.bf16 %v426_v34, %v424_v33  ;;  %v1301_v34 = vld [vmem:[%s7320_s3 + $0x10] sm:$0xff] }
 0x10f   :  { %v4498_v39 = vpack.c.bf16 %v431_v36, %v429_v35  ;;  %v1302_v35 = vld [vmem:[%s7320_s3 + $0x18] sm:$0xff] }
 0x110   :  { %883 = vmatmul.mubr.f32.gmra.mrb[6].mxu0 %v84_v44  ;;  %v4500_v44 = vpack.c.bf16 %v430_v41, %v428_v40  ;;  %v1303_v40 = vld [vmem:[%s7320_s3 + $0x20] sm:$0xff]  ;;  %v1304_v41 = vld [vmem:[%s7320_s3 + $0x28] sm:$0xff] }
 0x111   :  { %4469 = vmatpush1.bf16.msra.mxu0 %v4468_v43  ;;  %888 = vmatprep.mubr.f32.mxu0 %v95_v49  ;;  %v435_v43 = vld [vmem:[%s7318_s1 + $0x998] sm:$0xff]  ;;  %v4504_v49 = vpack.c.bf16 %v434_v48, %v432_v47  ;;  %v1305_v48 = vld [vmem:[%s7320_s3 + $0x30] sm:$0xff] }
 0x112   :  { %4471 = vmatprep.subr.bf16.mxu0 %v4470_v45  ;;  %v4502_v45 = vpack.c.bf16 %v435_v43, %v433_v42 }
 0x114   :  { %889 = vmatmul.mubr.f32.gmra.mrb[8].mxu0 %v94_v54  ;;  %v77_v54 = vld [vmem:[%s7317_s0 + $0xe8] sm:$0xff] }
 0x115   :  { %4473 = vmatpush1.bf16.msra.mxu0 %v4472_v53  ;;  %894 = vmatprep.mubr.f32.mxu0 %v105_v58  ;;  %v66_v53 = vld [vmem:[%s7317_s0 + $0x90] sm:$0xff]  ;;  %v107_v58 = vld [vmem:[%s7317_s0 + $0x1d8] sm:$0xff] }
 0x116   :  { %4475 = vmatprep.subr.bf16.mxu0 %v4474_v55  ;;  %v76_v55 = vld [vmem:[%s7317_s0 + $0xe0] sm:$0xff] }
 0x118   :  { %895 = vmatmul.mubr.f32.gmra.mrb[10].mxu0 %v104_v63 }
 0x119   :  { %4477 = vmatpush1.bf16.msra.mxu0 %v4476_v62  ;;  %900 = vmatprep.mubr.f32.mxu0 %v115_v3  ;;  %v1056_v62 = vld [vmem:[%s7319_s2 + $0x78] sm:$0xff] }
 0x11a   :  { %4479 = vmatprep.subr.bf16.mxu0 %v4478_v0  ;;  %v3248_v0 = vld [vmem:[%s7326_s9] ss:$0 sm:$0xff] }
 0x11c   :  { %901 = vmatmul.mubr.f32.gmra.mrb[12].mxu0 %v114_v7 }
 0x11d   :  { %4481 = vmatpush1.bf16.msra.mxu0 %v4480_v6  ;;  %906 = vmatprep.mubr.f32.mxu0 %v125_v12 }
 0x11e   :  { %4483 = vmatprep.subr.bf16.mxu0 %v4482_v9 }
 0x120   :  { %907 = vmatmul.mubr.f32.gmra.mrb[14].mxu0 %v124_v16 }
 0x121   :  { %4485 = vmatpush1.bf16.msra.mxu0 %v4484_v15  ;;  %3240 = vmatprep.mubr.msk.f32.mxu0 %vm436_vm0, %v57_v21 }
 0x122   :  { %4487 = vmatprep.subr.bf16.mxu0 %v4486_v17 }
 0x125   :  { %4489 = vmatpush1.bf16.msra.mxu0 %v4488_v24 }
 0x126   :  { %4491 = vmatprep.subr.bf16.mxu0 %v4490_v25 }
 0x129   :  { %4493 = vmatpush1.bf16.msra.mxu0 %v4492_v31 }
 0x12a   :  { %4495 = vmatprep.subr.bf16.mxu0 %v4494_v32 }
 0x12d   :  { %4497 = vmatpush1.bf16.msra.mxu0 %v4496_v38 }
 0x12e   :  { %4499 = vmatprep.subr.bf16.mxu0 %v4498_v39  ;;  %v4574_v39 = vpack.c.bf16 %v1302_v35, %v1301_v34  ;;  %v3268_v34 = vld [vmem:[%s7320_s3 + $0x118] sm:$0xff] }
 0x131   :  { %4501 = vmatpush1.bf16.msra.mxu0 %v4500_v44 }
 0x132   :  { %4503 = vmatprep.subr.bf16.mxu0 %v4502_v45  ;;  %v4578_v45 = vpack.c.bf16 %v1304_v41, %v1303_v40 }
 0x135   :  { %4505 = vmatpush1.bf16.msra.mxu0 %v4504_v49  ;;  %v1306_v49 = vld [vmem:[%s7320_s3 + $0x38] sm:$0xff] }
 0x136   :  { %4507 = vmatprep.subr.bf16.mxu0 %v5913_v52 }
 0x138   :  { %978 = vmatmul.mubr.f32.vlgmr.msra.gmra.mrb[0].mxu0 %v56_v50 }
 0x139   :  { %3241 = vmatprep.mubr.msk.f32.mxu0 %vm436_vm0, %v67_v51  ;;  %4509 = vmatpush3.bf16.msra.mxu0 %v5913_v52  ;;  %v86_v52 = vld [vmem:[%s7317_s0 + $0x130] sm:$0xff] }
 0x13a   :  { %4511 = vmatprep.subr.bf16.mxu0 %v5937_v61 }
 0x13c   :  { %984 = vmatmul.mubr.f32.gmra.mrb[2].mxu0 %v66_v53  ;;  %v4582_v53 = vpack.c.bf16 %v1306_v49, %v1305_v48  ;;  %v3271_v49 = vld [vmem:[%s7320_s3 + $0x130] sm:$0xff] }
 0x13d   :  { %3242 = vmatprep.mubr.msk.f32.mxu0 %vm436_vm0, %v77_v54  ;;  %4513 = vmatpush3.bf16.msra.mxu0 %v5937_v61  ;;  %v96_v61 = vld [vmem:[%s7317_s0 + $0x180] sm:$0xff] }
 0x13e   :  { %4515 = vmatprep.subr.bf16.mxu0 %v5965_v8 }
 0x140   :  { %990 = vmatmul.mubr.f32.gmra.mrb[4].mxu0 %v76_v55 }
 0x141   :  { %3243 = vmatprep.mubr.msk.f32.mxu0 %vm436_vm0, %v87_v56  ;;  %4517 = vmatpush3.bf16.msra.mxu0 %v5965_v8  ;;  %v106_v8 = vld [vmem:[%s7317_s0 + $0x1d0] sm:$0xff] }
 0x142   :  { %4519 = vmatprep.subr.bf16.mxu0 %v5993_v19 }
 0x144   :  { %996 = vmatmul.mubr.f32.gmra.mrb[6].mxu0 %v86_v52 }
 0x145   :  { %3244 = vmatprep.mubr.msk.f32.mxu0 %vm436_vm0, %v97_v57  ;;  %4521 = vmatpush3.bf16.msra.mxu0 %v5993_v19  ;;  %v116_v19 = vld [vmem:[%s7317_s0 + $0x220] sm:$0xff] }
 0x146   :  { %4523 = vmatprep.subr.bf16.mxu0 %v6015_v28 }
 0x148   :  { %1002 = vmatmul.mubr.f32.gmra.mrb[8].mxu0 %v96_v61 }
 0x149   :  { %3245 = vmatprep.mubr.msk.f32.mxu0 %vm436_vm0, %v107_v58  ;;  %4525 = vmatpush3.bf16.msra.mxu0 %v6015_v28  ;;  %v126_v28 = vld [vmem:[%s7317_s0 + $0x270] sm:$0xff] }
 0x14a   :  { %4527 = vmatprep.subr.bf16.mxu0 %v6037_v37 }
 0x14c   :  { %1008 = vmatmul.mubr.f32.gmra.mrb[10].mxu0 %v106_v8 }
 0x14d   :  { %3246 = vmatprep.mubr.msk.f32.mxu0 %vm436_vm0, %v117_v59  ;;  %4529 = vmatpush3.bf16.msra.mxu0 %v6037_v37  ;;  %v1055_v37 = vld [vmem:[%s7319_s2 + $0x70] sm:$0xff] }
 0x14e   :  { %4531 = vmatprep.subr.bf16.mxu0 %v6059_v46  ;;  %v4534_v63 = vpack.c.bf16 %v1056_v62, %v1055_v37  ;;  %v1307_v37 = vld [vmem:[%s7320_s3 + $0x40] sm:$0xff]  ;;  %v1308_v62 = vld [vmem:[%s7320_s3 + $0x48] sm:$0xff] }
 0x150   :  { %1014 = vmatmul.mubr.f32.gmra.mrb[12].mxu0 %v116_v19  ;;  %4567 = vmatprep.subr.bf16.mxu1 %v4534_v63 }
 0x151   :  { %3247 = vmatprep.mubr.msk.f32.mxu0 %vm436_vm0, %v127_v60  ;;  %4533 = vmatpush3.bf16.msra.mxu0 %v6059_v46 }
 0x152   :  { %4535 = vmatprep.subr.bf16.mxu0 %v4534_v63  ;;  %4569 = vmatpush3.bf16.msra.mxu1 %v4534_v63 }
 0x153   :  { %4571 = vmatprep.subr.bf16.mxu1 %v4570_v29 }
 0x154   :  { %1020 = vmatmul.mubr.f32.gmra.mrb[14].mxu0 %v126_v28 }
 0x155   :  { %4537 = vmatpush3.bf16.msra.mxu0 %v4534_v63  ;;  %v4586_v63 = vpack.c.bf16 %v1308_v62, %v1307_v37  ;;  %v3275_v37 = vld [vmem:[%s7320_s3 + $0x150] sm:$0xff]  ;;  %v3276_v62 = vld [vmem:[%s7320_s3 + $0x158] sm:$0xff] }
 0x20b   :  { %v979_v1 = vpop.f32.mrb[0].mxu0 }
 0x20c   :  { %v1033_v46 = vadd.f32 %v3248_v0, %v979_v1  ;;  %v6386_v2 = vpop.f32.mrb[1].mxu0  ;;  %v1310_v1 = vld [vmem:[%s7320_s3 + $0x58] sm:$0xff] }
 0x20e   :  { %3698 = vmatprep.mubr.f32.mxu0 %v1033_v46 }
 0x20f   :  { %v985_v3 = vpop.f32.mrb[2].mxu0 }
 0x210   :  { %v1034_v4 = vadd.f32 %v3248_v0, %v985_v3  ;;  %v6388_v5 = vpop.f32.mrb[3].mxu0  ;;  %v1311_v3 = vld [vmem:[%s7320_s3 + $0x60] sm:$0xff] }
 0x212   :  { %3699 = vmatmul.mubr.f32.vlgmr.msra.gmra.mrb[16].mxu0 %v1034_v4 }
 0x213   :  { %v991_v6 = vpop.f32.mrb[4].mxu0 }
 0x214   :  { %v1035_v7 = vadd.f32 %v3248_v0, %v991_v6  ;;  %v6390_v9 = vpop.f32.mrb[5].mxu0 }
 0x216   :  { %3701 = vmatprep.mubr.f32.mxu0 %v1035_v7 }
 0x217   :  { %v997_v10 = vpop.f32.mrb[6].mxu0 }
 0x218   :  { %v1036_v11 = vadd.f32 %v3248_v0, %v997_v10  ;;  %v6392_v12 = vpop.f32.mrb[7].mxu0  ;;  %v1314_v10 = vld [vmem:[%s7320_s3 + $0x78] sm:$0xff] }
 0x21a   :  { %3702 = vmatmul.mubr.f32.gmra.mrb[18].mxu0 %v1036_v11 }
 0x21b   :  { %v1003_v13 = vpop.f32.mrb[8].mxu0 }
 0x21c   :  { %v1037_v14 = vadd.f32 %v3248_v0, %v1003_v13  ;;  %v6394_v15 = vpop.f32.mrb[9].mxu0  ;;  %v3265_v13 = vld [vmem:[%s7320_s3 + $0x100] sm:$0xff] }
 0x21e   :  { %3704 = vmatprep.mubr.f32.mxu0 %v1037_v14 }
 0x21f   :  { %v1009_v16 = vpop.f32.mrb[10].mxu0 }
 0x220   :  { %v1038_v17 = vadd.f32 %v3248_v0, %v1009_v16  ;;  %v6396_v18 = vpop.f32.mrb[11].mxu0 }
 0x222   :  { %3705 = vmatmul.mubr.f32.gmra.mrb[20].mxu0 %v1038_v17 }
 0x223   :  { %v1015_v20 = vpop.f32.mrb[12].mxu0 }
 0x224   :  { %v1039_v21 = vadd.f32 %v3248_v0, %v1015_v20  ;;  %v6398_v22 = vpop.f32.mrb[13].mxu0 }
 0x226   :  { %3707 = vmatprep.mubr.f32.mxu0 %v1039_v21 }
 0x227   :  { %v1021_v23 = vpop.f32.mrb[14].mxu0 }
 0x228   :  { %v1040_v24 = vadd.f32 %v3248_v0, %v1021_v23  ;;  %v6400_v25 = vpop.f32.mrb[15].mxu0  ;;  %v1309_v0 = vld [vmem:[%s7320_s3 + $0x50] sm:$0xff] }
 0x22a   :  { %3708 = vmatmul.mubr.f32.gmra.mrb[22].mxu0 %v1040_v24 }
 0x2e5   :  { %v3700_v30 = vpop.f32.mrb[16].mxu0 }
 0x2e6   :  { %v6408_v31 = vsub.f32 %v1034_v4, %v3700_v30  ;;  %v1123_v32 = vpop.f32.mrb[17].mxu0  ;;  %v1312_v4 = vld [vmem:[%s7320_s3 + $0x68] sm:$0xff] }
 0x2e7   :  { %v6410_v33 = vsub.f32 %v1033_v46, %v1123_v32  ;;  %v4590_v46 = vpack.c.bf16 %v1310_v1, %v1309_v0  ;;  %v4594_v6 = vpack.c.bf16 %v1312_v4, %v1311_v3  ;;  %v3267_v32 = vld [vmem:[%s7320_s3 + $0x110] sm:$0xff]  ;;  %v3277_v3 = vld [vmem:[%s7320_s3 + $0x160] sm:$0xff]  ;;  %v3278_v4 = vld [vmem:[%s7320_s3 + $0x168] sm:$0xff] }
 0x2e8   :  { %v1171_v38 = vmul.f32 %v6408_v31, %v6408_v31  ;;  %v4606_v40 = vpack.c.bf16 %v3268_v34, %v3267_v32 }
 0x2e9   :  { %v1170_v36 = vmul.f32 %v6410_v33, %v6410_v33 }
 0x2eb   :  { %3742 = vmatprep.mubr.f32.mxu1 %v1170_v36 }
 0x2ec   :  { %3743 = vmatmul.mubr.f32.vlgmr.msra.gmra.mrb[0].mxu1 %v1171_v38 }
 0x2ed   :  { %v3703_v42 = vpop.f32.mrb[18].mxu0  ;;  %4573 = vmatpush3.bf16.msra.mxu1 %v4570_v29 }
 0x2ee   :  { %v6428_v43 = vsub.f32 %v1036_v11, %v3703_v42  ;;  %v1133_v44 = vpop.f32.mrb[19].mxu0  ;;  %4575 = vmatprep.subr.bf16.mxu1 %v4574_v39 }
 0x2ef   :  { %v6430_v47 = vsub.f32 %v1035_v7, %v1133_v44  ;;  %v1313_v7 = vld [vmem:[%s7320_s3 + $0x70] sm:$0xff]  ;;  %v3269_v44 = vld [vmem:[%s7320_s3 + $0x120] sm:$0xff] }
 0x2f0   :  { %v1173_v51 = vmul.f32 %v6428_v43, %v6428_v43  ;;  %v4598_v11 = vpack.c.bf16 %v1314_v10, %v1313_v7  ;;  %v3280_v7 = vld [vmem:[%s7320_s3 + $0x178] sm:$0xff] }
 0x2f1   :  { %v1172_v50 = vmul.f32 %v6430_v47, %v6430_v47  ;;  %4577 = vmatpush3.bf16.msra.mxu1 %v4574_v39 }
 0x2f2   :  { %4579 = vmatprep.subr.bf16.mxu1 %v4578_v45 }
 0x2f3   :  { %3745 = vmatprep.mubr.f32.mxu1 %v1172_v50  ;;  %v3272_v50 = vld [vmem:[%s7320_s3 + $0x138] sm:$0xff] }
 0x2f4   :  { %3746 = vmatmul.mubr.f32.gmra.mrb[2].mxu1 %v1173_v51 }
 0x2f5   :  { %v3706_v54 = vpop.f32.mrb[20].mxu0  ;;  %4581 = vmatpush3.bf16.msra.mxu1 %v4578_v45  ;;  %v3270_v45 = vld [vmem:[%s7320_s3 + $0x128] sm:$0xff] }
 0x2f6   :  { %v6442_v55 = vsub.f32 %v1038_v17, %v3706_v54  ;;  %v1143_v56 = vpop.f32.mrb[21].mxu0  ;;  %4583 = vmatprep.subr.bf16.mxu1 %v4582_v53 }
 0x2f7   :  { %v6444_v52 = vsub.f32 %v1037_v14, %v1143_v56  ;;  %v3266_v14 = vld [vmem:[%s7320_s3 + $0x108] sm:$0xff] }
 0x2f8   :  { %v1175_v61 = vmul.f32 %v6442_v55, %v6442_v55  ;;  %v4602_v16 = vpack.c.bf16 %v3266_v14, %v3265_v13 }
 0x2f9   :  { %v1174_v57 = vmul.f32 %v6444_v52, %v6444_v52  ;;  %4585 = vmatpush3.bf16.msra.mxu1 %v4582_v53 }
 0x2fa   :  { %4587 = vmatprep.subr.bf16.mxu1 %v4586_v63 }
 0x2fb   :  { %3748 = vmatprep.mubr.f32.mxu1 %v1174_v57  ;;  %v4614_v57 = vpack.c.bf16 %v3272_v50, %v3271_v49  ;;  %v1562_v50 = vld [vmem:[%s7322_s5 + $0x18] sm:$0xff] }
 0x2fc   :  { %3749 = vmatmul.mubr.f32.gmra.mrb[4].mxu1 %v1175_v61 }
 0x2fd   :  { %v3709_v58 = vpop.f32.mrb[22].mxu0  ;;  %4589 = vmatpush3.bf16.msra.mxu1 %v4586_v63 }
 0x2fe   :  { %v6450_v8 = vsub.f32 %v1040_v24, %v3709_v58  ;;  %v1153_v59 = vpop.f32.mrb[23].mxu0  ;;  %4591 = vmatprep.subr.bf16.mxu1 %v4590_v46 }
 0x2ff   :  { %v6452_v19 = vsub.f32 %v1039_v21, %v1153_v59  ;;  %v3273_v59 = vld [vmem:[%s7320_s3 + $0x140] sm:$0xff] }
 0x300   :  { %v1177_v28 = vmul.f32 %v6450_v8, %v6450_v8 }
 0x301   :  { %v1176_v60 = vmul.f32 %v6452_v19, %v6452_v19  ;;  %4593 = vmatpush3.bf16.msra.mxu1 %v4590_v46  ;;  %v4622_v46 = vpack.c.bf16 %v3276_v62, %v3275_v37  ;;  %v3257_v62 = vld [vmem:[%s7320_s3 + $0xc0] sm:$0xff] }
 0x302   :  { %4595 = vmatprep.subr.bf16.mxu1 %v4594_v6 }
 0x303   :  { %3751 = vmatprep.mubr.f32.mxu1 %v1176_v60  ;;  %v3274_v60 = vld [vmem:[%s7320_s3 + $0x148] sm:$0xff] }
 0x304   :  { %3752 = vmatmul.mubr.f32.gmra.mrb[6].mxu1 %v1177_v28 }
 0x305   :  { %4597 = vmatpush3.bf16.msra.mxu1 %v4594_v6 }
 0x306   :  { %4599 = vmatprep.subr.bf16.mxu1 %v4598_v11 }
 0x309   :  { %4601 = vmatpush3.bf16.msra.mxu1 %v4598_v11 }
 0x30a   :  { %4603 = vmatprep.subr.bf16.mxu1 %v4602_v16 }
 0x3bf   :  { %v3744_v17 = vpop.f32.mrb[0].mxu1 }
 0x3c0   :  { %v1250_v20 = vadd.f32 1e-05, %v3744_v17  ;;  %v1244_v21 = vpop.f32.mrb[1].mxu1 }
 0x3c1   :  { %v1245_v23 = vadd.f32 1e-05, %v1244_v21 }
 0x3c2   :  { %4964 = vrsqrt.f32 %v1250_v20 }
 0x3c3   :  { %4966 = vrsqrt.f32 %v1245_v23 }
 0x3c7   :  { %v3747_v24 = vpop.f32.mrb[2].mxu1 }
 0x3c8   :  { %v1260_v26 = vadd.f32 1e-05, %v3747_v24  ;;  %v1254_v27 = vpop.f32.mrb[3].mxu1 }
 0x3c9   :  { %v1255_v29 = vadd.f32 1e-05, %v1254_v27 }
 0x3ca   :  { %4968 = vrsqrt.f32 %v1260_v26 }
 0x3cb   :  { %4970 = vrsqrt.f32 %v1255_v29  ;;  %v3249_v29 = vld [vmem:[%s7320_s3 + $0x80] sm:$0xff] }
 0x3cc   :  { %v4965_v30 = vpop.eup %4964 }
 0x3cd   :  { %v4967_v35 = vpop.eup %4966  ;;  %v6498_v39 = vmul.f32 %v4965_v30, %v6408_v31  ;;  %v4610_v31 = vpack.c.bf16 %v3270_v45, %v3269_v44  ;;  %v3250_v30 = vld [vmem:[%s7320_s3 + $0x88] sm:$0xff]  ;;  %v1561_v44 = vld [vmem:[%s7322_s5 + $0x10] sm:$0xff] }
 0x3ce   :  { %v6495_v36 = vmul.f32 %v4967_v35, %v6410_v33 }
 0x3cf   :  { %v3750_v38 = vpop.f32.mrb[4].mxu1 }
 0x3d0   :  { %v1270_v41 = vadd.f32 1e-05, %v3750_v38  ;;  %v1264_v42 = vpop.f32.mrb[5].mxu1  ;;  %3786 = vmatprep.mubr.f32.mxu1 %v6495_v36  ;;  %v4650_v38 = vpack.c.bf16 %v3250_v30, %v3249_v29  ;;  %v6696_v29 = vld [vmem:[%s7327_s10] ss:$0 sm:$0xff] }
 0x3d1   :  { %v1265_v48 = vadd.f32 1e-05, %v1264_v42  ;;  %3787 = vmatmul.mubr.f32.vlgmr.msra.gmra.mrb[8].mxu1 %v6498_v39  ;;  %v1560_v42 = vld [vmem:[%s7322_s5 + $0x8] sm:$0xff] }
 0x3d2   :  { %4972 = vrsqrt.f32 %v1270_v41  ;;  %4605 = vmatpush3.bf16.msra.mxu1 %v4602_v16  ;;  %v3252_v41 = vld [vmem:[%s7320_s3 + $0x98] sm:$0xff] }
 0x3d3   :  { %4974 = vrsqrt.f32 %v1265_v48  ;;  %4607 = vmatprep.subr.bf16.mxu1 %v4606_v40  ;;  %v3253_v48 = vld [vmem:[%s7320_s3 + $0xa0] sm:$0xff] }
 0x3d4   :  { %v4969_v33 = vpop.eup %4968 }
 0x3d5   :  { %v4971_v51 = vpop.eup %4970  ;;  %v6518_v56 = vmul.f32 %v4969_v33, %v6428_v43  ;;  %v4618_v43 = vpack.c.bf16 %v3274_v60, %v3273_v59 }
 0x3d6   :  { %4609 = vmatpush3.bf16.msra.mxu1 %v4606_v40  ;;  %v6515_v53 = vmul.f32 %v4971_v51, %v6430_v47  ;;  %v3251_v40 = vld [vmem:[%s7320_s3 + $0x90] sm:$0xff] }
 0x3d7   :  { %v3753_v54 = vpop.f32.mrb[6].mxu1  ;;  %4611 = vmatprep.subr.bf16.mxu1 %v4610_v31  ;;  %v4654_v45 = vpack.c.bf16 %v3252_v41, %v3251_v40 }
 0x3d8   :  { %v1280_v61 = vadd.f32 1e-05, %v3753_v54  ;;  %v1274_v58 = vpop.f32.mrb[7].mxu1  ;;  %3789 = vmatprep.mubr.f32.mxu1 %v6515_v53  ;;  %v1563_v54 = vld [vmem:[%s7322_s5 + $0x20] sm:$0xff] }
 0x3d9   :  { %v1275_v47 = vadd.f32 1e-05, %v1274_v58  ;;  %3790 = vmatmul.mubr.f32.gmra.mrb[10].mxu1 %v6518_v56  ;;  %v3256_v58 = vld [vmem:[%s7320_s3 + $0xb8] sm:$0xff] }
 0x3da   :  { %4976 = vrsqrt.f32 %v1280_v61  ;;  %4613 = vmatpush3.bf16.msra.mxu1 %v4610_v31  ;;  %v3254_v31 = vld [vmem:[%s7320_s3 + $0xa8] sm:$0xff]  ;;  %v3255_v61 = vld [vmem:[%s7320_s3 + $0xb0] sm:$0xff] }
 0x3db   :  { %4978 = vrsqrt.f32 %v1275_v47  ;;  %4615 = vmatprep.subr.bf16.mxu1 %v4614_v57  ;;  %v1564_v47 = vld [vmem:[%s7322_s5 + $0x28] sm:$0xff]  ;;  %v4662_v37 = vpack.c.bf16 %v3256_v58, %v3255_v61 }
 0x3dc   :  { %v4973_v28 = vpop.eup %4972 }
 0x3dd   :  { %v4975_v63 = vpop.eup %4974  ;;  %v6538_v1 = vmul.f32 %v4973_v28, %v6442_v55  ;;  %v3279_v55 = vld [vmem:[%s7320_s3 + $0x170] sm:$0xff] }
 0x3de   :  { %4617 = vmatpush3.bf16.msra.mxu1 %v4614_v57  ;;  %v6535_v0 = vmul.f32 %v4975_v63, %v6444_v52  ;;  %v4626_v52 = vpack.c.bf16 %v3278_v4, %v3277_v3  ;;  %v4630_v14 = vpack.c.bf16 %v3280_v7, %v3279_v55  ;;  %v4658_v57 = vpack.c.bf16 %v3254_v31, %v3253_v48  ;;  %v1565_v28 = vld [vmem:[%s7322_s5 + $0x30] sm:$0xff]  ;;  %v3258_v63 = vld [vmem:[%s7320_s3 + $0xc8] sm:$0xff]  ;;  %v1566_v4 = vld [vmem:[%s7322_s5 + $0x38] sm:$0xff] }
 0x3df   :  { %4619 = vmatprep.subr.bf16.mxu1 %v4618_v43  ;;  %v3259_v55 = vld [vmem:[%s7320_s3 + $0xd0] sm:$0xff]  ;;  %v3260_v7 = vld [vmem:[%s7320_s3 + $0xd8] sm:$0xff] }
 0x3e0   :  { %3792 = vmatprep.mubr.f32.mxu1 %v6535_v0 }
 0x3e1   :  { %3793 = vmatmul.mubr.f32.gmra.mrb[12].mxu1 %v6538_v1 }
 0x3e2   :  { %4621 = vmatpush3.bf16.msra.mxu1 %v4618_v43 }
 0x3e3   :  { %4623 = vmatprep.subr.bf16.mxu1 %v4622_v46 }
 0x3e4   :  { %v4977_v6 = vpop.eup %4976 }
 0x3e5   :  { %v4979_v10 = vpop.eup %4978  ;;  %v6558_v13 = vmul.f32 %v4977_v6, %v6450_v8  ;;  %v1559_v8 = vld [vmem:[%s7322_s5] sm:$0xff]  ;;  %v4666_v6 = vpack.c.bf16 %v3258_v63, %v3257_v62 }
 0x3e6   :  { %4625 = vmatpush3.bf16.msra.mxu1 %v4622_v46  ;;  %v6555_v11 = vmul.f32 %v4979_v10, %v6452_v19 }
 0x3e7   :  { %4627 = vmatprep.subr.bf16.mxu1 %v4626_v52 }
 0x3e8   :  { %3795 = vmatprep.mubr.f32.mxu1 %v6555_v11 }
 0x3e9   :  { %3796 = vmatmul.mubr.f32.gmra.mrb[14].mxu1 %v6558_v13 }
 0x3ea   :  { %4629 = vmatpush3.bf16.msra.mxu1 %v4626_v52  ;;  %3830 = vmatprep.mubr.f32.mxu1 %v6495_v36 }
 0x3eb   :  { %4631 = vmatprep.subr.bf16.mxu1 %v4630_v14 }
 0x3ee   :  { %4633 = vmatpush3.bf16.msra.mxu1 %v4630_v14 }
 0x3f1   :  { %3831 = vmatmul.mubr.f32.vlgmr.msra.gmra.mrb[16].mxu1 %v6498_v39 }
 0x3f2   :  { %3833 = vmatprep.mubr.f32.mxu1 %v6515_v53 }
 0x3f5   :  { %3834 = vmatmul.mubr.f32.gmra.mrb[18].mxu1 %v6518_v56 }
 0x3f6   :  { %3836 = vmatprep.mubr.f32.mxu1 %v6535_v0 }
 0x3f9   :  { %3837 = vmatmul.mubr.f32.gmra.mrb[20].mxu1 %v6538_v1 }
 0x3fa   :  { %3839 = vmatprep.mubr.f32.mxu1 %v6555_v11 }
 0x3fd   :  { %3840 = vmatmul.mubr.f32.gmra.mrb[22].mxu1 %v6558_v13 }
 0x3fe   :  { %3858 = vmatprep.mubr.msk.f32.mxu1 %vm1567_vm1, %v1559_v8 }
 0x4a4   :  { %v3788_v19 = vpop.f32.mrb[8].mxu1 }
 0x4a5   :  { %v1381_v16 = vpop.f32.mrb[9].mxu1 }
 0x4a6   :  { %v4634_v17 = vpack.c.bf16 %v3788_v19, %v1381_v16  ;;  %v4670_v19 = vpack.c.bf16 %v3260_v7, %v3259_v55  ;;  %v3261_v16 = vld [vmem:[%s7320_s3 + $0xe0] sm:$0xff] }
 0x4a8   :  { %4635 = vmatprep.subr.bf16.mxu1 %v4634_v17 }
 0x4a9   :  { %4637 = vmatpush3.bf16.msra.mxu1 %v4634_v17  ;;  %v3262_v17 = vld [vmem:[%s7320_s3 + $0xe8] sm:$0xff] }
 0x4ac   :  { %v3791_v20 = vpop.f32.mrb[10].mxu1 }
 0x4ad   :  { %v1391_v21 = vpop.f32.mrb[11].mxu1 }
 0x4ae   :  { %v4638_v23 = vpack.c.bf16 %v3791_v20, %v1391_v21  ;;  %v4674_v20 = vpack.c.bf16 %v3262_v17, %v3261_v16  ;;  %v3263_v21 = vld [vmem:[%s7320_s3 + $0xf0] sm:$0xff] }
 0x4b0   :  { %4639 = vmatprep.subr.bf16.mxu1 %v4638_v23 }
 0x4b1   :  { %4641 = vmatpush3.bf16.msra.mxu1 %v4638_v23 }
 0x4b4   :  { %v3794_v24 = vpop.f32.mrb[12].mxu1 }
 0x4b5   :  { %v1401_v26 = vpop.f32.mrb[13].mxu1 }
 0x4b6   :  { %v4642_v27 = vpack.c.bf16 %v3794_v24, %v1401_v26  ;;  %v3296_v24 = vld [vmem:[%s7322_s5 + $0x78] sm:$0xff]  ;;  %v5040_v26 = vmov 0.0|0.0  }
 0x4b8   :  { %4643 = vmatprep.subr.bf16.mxu1 %v4642_v27 }
 0x4b9   :  { %4645 = vmatpush3.bf16.msra.mxu1 %v4642_v27  ;;  %v5042_v27 = vmov 0.0  }
 0x4bc   :  { %v3797_v32 = vpop.f32.mrb[14].mxu1 }
 0x4bd   :  { %v1411_v34 = vpop.f32.mrb[15].mxu1 }
 0x4be   :  { %v4646_v35 = vpack.c.bf16 %v3797_v32, %v1411_v34 }
 0x4c0   :  { %4647 = vmatprep.subr.bf16.mxu1 %v4646_v35 }
 0x4c1   :  { %4649 = vmatpush3.bf16.msra.mxu1 %v4646_v35 }
 0x4c2   :  { %4651 = vmatprep.subr.bf16.mxu1 %v4650_v38 }
 0x4c4   :  { %v3832_v33 = vpop.f32.mrb[16].mxu1  ;;  %3859 = vmatmul.mubr.msk.f32.vlgmr.msra.gmra.mrb[24].mxu1 %vm1567_vm1, %v1560_v42 }
 0x4c5   :  { %v1520_v49 = vpop.f32.mrb[17].mxu1  ;;  %4653 = vmatpush3.bf16.msra.mxu1 %v4650_v38  ;;  %3861 = vmatprep.mubr.msk.f32.mxu1 %vm1567_vm1, %v1561_v44 }
 0x4c6   :  { %v4682_v51 = vpack.c.bf16 %v3832_v33, %v1520_v49  ;;  %4655 = vmatprep.subr.bf16.mxu1 %v4654_v45 }
 0x4c8   :  { %v3835_v59 = vpop.f32.mrb[18].mxu1  ;;  %3862 = vmatmul.mubr.msk.f32.gmra.mrb[26].mxu1 %vm1567_vm1, %v1562_v50 }
 0x4c9   :  { %v1530_v60 = vpop.f32.mrb[19].mxu1  ;;  %4657 = vmatpush3.bf16.msra.mxu1 %v4654_v45  ;;  %3864 = vmatprep.mubr.msk.f32.mxu1 %vm1567_vm1, %v1563_v54 }
 0x4ca   :  { %v4686_v43 = vpack.c.bf16 %v3835_v59, %v1530_v60  ;;  %4659 = vmatprep.subr.bf16.mxu1 %v4658_v57 }
 0x4cc   :  { %v3838_v46 = vpop.f32.mrb[20].mxu1  ;;  %3865 = vmatmul.mubr.msk.f32.gmra.mrb[28].mxu1 %vm1567_vm1, %v1564_v47 }
 0x4cd   :  { %v1540_v3 = vpop.f32.mrb[21].mxu1  ;;  %4661 = vmatpush3.bf16.msra.mxu1 %v4658_v57  ;;  %3867 = vmatprep.mubr.msk.f32.mxu1 %vm1567_vm1, %v1565_v28 }
 0x4ce   :  { %v4690_v52 = vpack.c.bf16 %v3838_v46, %v1540_v3  ;;  %4663 = vmatprep.subr.bf16.mxu1 %v4662_v37 }
 0x4d0   :  { %v3841_v10 = vpop.f32.mrb[22].mxu1  ;;  %3868 = vmatmul.mubr.msk.f32.gmra.mrb[30].mxu1 %vm1567_vm1, %v1566_v4 }
 0x4d1   :  { %v1550_v14 = vpop.f32.mrb[23].mxu1  ;;  %4665 = vmatpush3.bf16.msra.mxu1 %v4662_v37  ;;  %3902 = vmatprep.mubr.f32.mxu1 %v6495_v36  ;;  %v3264_v36 = vld [vmem:[%s7320_s3 + $0xf8] sm:$0xff] }
 0x4d2   :  { %v4694_v8 = vpack.c.bf16 %v3841_v10, %v1550_v14  ;;  %4667 = vmatprep.subr.bf16.mxu1 %v4666_v6  ;;  %v4678_v23 = vpack.c.bf16 %v3264_v36, %v3263_v21 }
 0x4d5   :  { %4669 = vmatpush3.bf16.msra.mxu1 %v4666_v6 }
 0x4d6   :  { %4671 = vmatprep.subr.bf16.mxu1 %v4670_v19 }
 0x4d9   :  { %4673 = vmatpush3.bf16.msra.mxu1 %v4670_v19 }
 0x4da   :  { %4675 = vmatprep.subr.bf16.mxu1 %v4674_v20 }
 0x4dd   :  { %4677 = vmatpush3.bf16.msra.mxu1 %v4674_v20 }
 0x4de   :  { %4679 = vmatprep.subr.bf16.mxu1 %v4678_v23 }
 0x4e1   :  { %4681 = vmatpush3.bf16.msra.mxu1 %v4678_v23 }
 0x4e2   :  { %4683 = vmatprep.subr.bf16.mxu1 %v4682_v51 }
 0x4e4   :  { %3903 = vmatmul.mubr.f32.vlgmr.msra.gmra.mrb[24].mxu1 %v6498_v39  ;;  %v3289_v39 = vld [vmem:[%s7322_s5 + $0x40] sm:$0xff] }
 0x4e5   :  { %3905 = vmatprep.mubr.f32.mxu1 %v6515_v53  ;;  %4685 = vmatpush3.bf16.msra.mxu1 %v4682_v51  ;;  %v3290_v53 = vld [vmem:[%s7322_s5 + $0x48] sm:$0xff] }
 0x4e6   :  { %4687 = vmatprep.subr.bf16.mxu1 %v4686_v43 }
 0x4e8   :  { %3906 = vmatmul.mubr.f32.gmra.mrb[26].mxu1 %v6518_v56  ;;  %v3291_v56 = vld [vmem:[%s7322_s5 + $0x50] sm:$0xff] }
 0x4e9   :  { %3908 = vmatprep.mubr.f32.mxu1 %v6535_v0  ;;  %4689 = vmatpush3.bf16.msra.mxu1 %v4686_v43  ;;  %v3292_v0 = vld [vmem:[%s7322_s5 + $0x58] sm:$0xff] }
 0x4ea   :  { %4691 = vmatprep.subr.bf16.mxu1 %v4690_v52 }
 0x4ec   :  { %3909 = vmatmul.mubr.f32.gmra.mrb[28].mxu1 %v6538_v1  ;;  %v3293_v1 = vld [vmem:[%s7322_s5 + $0x60] sm:$0xff] }
 0x4ed   :  { %3911 = vmatprep.mubr.f32.mxu1 %v6555_v11  ;;  %4693 = vmatpush3.bf16.msra.mxu1 %v4690_v52  ;;  %v3294_v11 = vld [vmem:[%s7322_s5 + $0x68] sm:$0xff] }
 0x4ee   :  { %4695 = vmatprep.subr.bf16.mxu1 %v4694_v8 }
 0x4f0   :  { %3912 = vmatmul.mubr.f32.gmra.mrb[30].mxu1 %v6558_v13  ;;  %v3295_v13 = vld [vmem:[%s7322_s5 + $0x70] sm:$0xff] }
 0x4f1   :  { %4697 = vmatpush3.bf16.msra.mxu1 %v4694_v8  ;;  %3930 = vmatprep.mubr.msk.f32.mxu1 %vm1567_vm1, %v3289_v39 }
 0x4f2   :  { %4698 = vmatprep.subr.bf16.mxu1 %v5040_v26 }
 0x4f4   :  { %3931 = vmatmul.mubr.msk.f32.vlgmr.msra.gmra.mrb[24].mxu1 %vm1567_vm1, %v3290_v53 }
 0x4f5   :  { %3933 = vmatprep.mubr.msk.f32.mxu1 %vm1567_vm1, %v3291_v56 }
 0x4f8   :  { %3934 = vmatmul.mubr.msk.f32.gmra.mrb[26].mxu1 %vm1567_vm1, %v3292_v0 }
 0x4f9   :  { %3936 = vmatprep.mubr.msk.f32.mxu1 %vm1567_vm1, %v3293_v1 }
 0x4fc   :  { %3937 = vmatmul.mubr.msk.f32.gmra.mrb[28].mxu1 %vm1567_vm1, %v3294_v11 }
 0x4fd   :  { %3939 = vmatprep.mubr.msk.f32.mxu1 %vm1567_vm1, %v3295_v13 }
 0x500   :  { %3940 = vmatmul.mubr.msk.f32.gmra.mrb[30].mxu1 %vm1567_vm1, %v3296_v24 }
 0x501   :  { %3958 = vmatprep.mubr.msk.f32.mxu1 %vm5041_vm2, %v5042_v27 }
 0x5c7   :  { %v3932_v30 = vpop.f32.mrb[24].mxu1 }
 0x5c8   :  { %v1956_v32 = vadd.f32 %v3932_v30, %v6696_v29  ;;  %v1901_v34 = vpop.f32.mrb[25].mxu1 }
 0x5c9   :  { %v6700_v35 = vadd.f32 %v6696_v29, %v1901_v34 }
 0x5ca   :  { %v1972_v38 = vmul.f32 0.70710677, %v1956_v32  ;;  %v6732_v43 = vmul.f32 0.5, %v1956_v32 }
 0x5cb   :  { %v1971_v40 = vmul.f32 0.70710677, %v6700_v35  ;;  %v3935_v41 = vpop.f32.mrb[26].mxu1 }
 0x5cc   :  { %v6703_v42 = vclamps-f32 %v1972_v38, 4.0  ;;  %v6706_v44 = vadd.f32 %v3935_v41, %v6696_v29  ;;  %v1911_v45 = vpop.f32.mrb[27].mxu1 }
 0x5cd   :  { %v6708_v48 = vclamps-f32 %v1971_v40, 4.0  ;;  %v6711_v31 = vadd.f32 %v6696_v29, %v1911_v45 }
 0x5ce   :  { %v6715_v33 = vmul.f32 %v6703_v42, %v6703_v42  ;;  %v1974_v49 = vmul.f32 0.70710677, %v6706_v44 }
 0x5cf   :  { %v6720_v50 = vmul.f32 %v6708_v48, %v6708_v48  ;;  %v1973_v51 = vmul.f32 0.70710677, %v6711_v31  ;;  %v3938_v54 = vpop.f32.mrb[28].mxu1 }
 0x5d0   :  { %v2004_v57 = vmul.f32 0.0, %v6715_v33  ;;  %v6724_v61 = vclamps-f32 %v1974_v49, 4.0  ;;  %v6727_v58 = vadd.f32 %v3938_v54, %v6696_v29  ;;  %v1921_v59 = vpop.f32.mrb[29].mxu1 }
 0x5d1   :  { %v2003_v60 = vmul.f32 0.0, %v6720_v50  ;;  %v6730_v47 = vclamps-f32 %v1973_v51, 4.0  ;;  %v6747_v7 = vadd.f32 %v6696_v29, %v1921_v59 }
 0x5d2   :  { %v2012_v28 = vadd.f32 -2.7261424e-10, %v2004_v57  ;;  %v2116_v37 = vadd.f32 -1.45660715e-05, %v2004_v57  ;;  %v6736_v62 = vmul.f32 %v6724_v61, %v6724_v61  ;;  %v1976_v4 = vmul.f32 0.70710677, %v6727_v58 }
 0x5d3   :  { %v2011_v63 = vadd.f32 -2.7261424e-10, %v2003_v60  ;;  %v2115_v46 = vadd.f32 -1.45660715e-05, %v2003_v60  ;;  %v6740_v3 = vmul.f32 %v6730_v47, %v6730_v47  ;;  %v3941_v10 = vpop.f32.mrb[30].mxu1 }
 0x5d4   :  { %v2020_v52 = vmul.f32 %v2012_v28, %v6715_v33  ;;  %v2124_v6 = vmul.f32 %v2116_v37, %v6715_v33  ;;  %v2006_v55 = vmul.f32 0.0, %v6736_v62  ;;  %v6752_v16 = vclamps-f32 %v1976_v4, 4.0  ;;  %v6754_v17 = vpop.f32.mrb[31].mxu1 }
 0x5d5   :  { %v2019_v14 = vmul.f32 %v2011_v63, %v6720_v50  ;;  %v2123_v8 = vmul.f32 %v2115_v46, %v6720_v50  ;;  %v2005_v19 = vmul.f32 0.0, %v6740_v3  ;;  %v6757_v23 = vadd.f32 %v3941_v10, %v6696_v29 }
 0x5d6   :  { %v2028_v20 = vadd.f32 2.7706815e-08, %v2020_v52  ;;  %v2132_v21 = vadd.f32 -0.00021337405, %v2124_v6  ;;  %v2014_v36 = vadd.f32 -2.7261424e-10, %v2006_v55  ;;  %v6761_v0 = vmul.f32 %v6752_v16, %v6752_v16 }
 0x5d7   :  { %v2027_v39 = vadd.f32 2.7706815e-08, %v2019_v14  ;;  %v2131_v53 = vadd.f32 -0.00021337405, %v2123_v8  ;;  %v2118_v56 = vadd.f32 -1.45660715e-05, %v2006_v55 }
 0x5d8   :  { %v2036_v1 = vmul.f32 %v2028_v20, %v6715_v33  ;;  %v2140_v11 = vmul.f32 %v2132_v21, %v6715_v33  ;;  %v2022_v13 = vmul.f32 %v2014_v36, %v6736_v62  ;;  %v2013_v24 = vadd.f32 -2.7261424e-10, %v2005_v19 }
 0x5d9   :  { %v2035_v30 = vmul.f32 %v2027_v39, %v6720_v50  ;;  %v2139_v32 = vmul.f32 %v2131_v53, %v6720_v50  ;;  %v2126_v34 = vmul.f32 %v2118_v56, %v6736_v62  ;;  %v2117_v38 = vadd.f32 -1.45660715e-05, %v2005_v19 }
 0x5da   :  { %v2044_v40 = vadd.f32 -2.101024e-06, %v2036_v1  ;;  %v2148_v41 = vadd.f32 -0.001682827, %v2140_v11  ;;  %v2030_v45 = vadd.f32 2.7706815e-08, %v2022_v13  ;;  %v2021_v49 = vmul.f32 %v2013_v24, %v6740_v3 }
 0x5db   :  { %v2043_v51 = vadd.f32 -2.101024e-06, %v2035_v30  ;;  %v2147_v54 = vadd.f32 -0.001682827, %v2139_v32  ;;  %v2134_v57 = vadd.f32 -0.00021337405, %v2126_v34  ;;  %v2125_v59 = vmul.f32 %v2117_v38, %v6740_v3 }
 0x5dc   :  { %v2052_v60 = vmul.f32 %v2044_v40, %v6715_v33  ;;  %v2156_v28 = vmul.f32 %v2148_v41, %v6715_v33  ;;  %v2038_v37 = vmul.f32 %v2030_v45, %v6736_v62  ;;  %v2029_v63 = vadd.f32 2.7706815e-08, %v2021_v49 }
 0x5dd   :  { %v2051_v46 = vmul.f32 %v2043_v51, %v6720_v50  ;;  %v2155_v4 = vmul.f32 %v2147_v54, %v6720_v50  ;;  %v2142_v52 = vmul.f32 %v2134_v57, %v6736_v62  ;;  %v2133_v6 = vadd.f32 -0.00021337405, %v2125_v59 }
 0x5de   :  { %v2060_v55 = vadd.f32 -5.6925062e-05, %v2052_v60  ;;  %v2164_v10 = vadd.f32 -0.0073733293, %v2156_v28  ;;  %v2046_v14 = vadd.f32 -2.101024e-06, %v2038_v37  ;;  %v2037_v8 = vmul.f32 %v2029_v63, %v6740_v3 }
 0x5df   :  { %v2059_v19 = vadd.f32 -5.6925062e-05, %v2051_v46  ;;  %v2163_v20 = vadd.f32 -0.0073733293, %v2155_v4  ;;  %v2150_v21 = vadd.f32 -0.001682827, %v2142_v52  ;;  %v2141_v36 = vmul.f32 %v2133_v6, %v6740_v3 }
 0x5e0   :  { %v2068_v39 = vmul.f32 %v2060_v55, %v6715_v33  ;;  %v2172_v53 = vmul.f32 %v2164_v10, %v6715_v33  ;;  %v2054_v56 = vmul.f32 %v2046_v14, %v6736_v62  ;;  %v2045_v1 = vadd.f32 -2.101024e-06, %v2037_v8 }
 0x5e1   :  { %v2067_v11 = vmul.f32 %v2059_v19, %v6720_v50  ;;  %v2171_v13 = vmul.f32 %v2163_v20, %v6720_v50  ;;  %v2158_v24 = vmul.f32 %v2150_v21, %v6736_v62  ;;  %v2149_v30 = vadd.f32 -0.001682827, %v2141_v36 }
 0x5e2   :  { %v2076_v32 = vadd.f32 -0.00073499064, %v2068_v39  ;;  %v2180_v34 = vadd.f32 -0.014264739, %v2172_v53  ;;  %v2062_v38 = vadd.f32 -5.6925062e-05, %v2054_v56  ;;  %v2053_v40 = vmul.f32 %v2045_v1, %v6740_v3 }
 0x5e3   :  { %v2075_v41 = vadd.f32 -0.00073499064, %v2067_v11  ;;  %v2179_v45 = vadd.f32 -0.014264739, %v2171_v13  ;;  %v2166_v49 = vadd.f32 -0.0073733293, %v2158_v24  ;;  %v2157_v51 = vmul.f32 %v2149_v30, %v6740_v3 }
 0x5e4   :  { %v2084_v54 = vmul.f32 %v2076_v32, %v6715_v33  ;;  %4980 = vrcp.f32 %v2180_v34  ;;  %v2070_v57 = vmul.f32 %v2062_v38, %v6736_v62  ;;  %v2061_v59 = vadd.f32 -5.6925062e-05, %v2053_v40 }
 0x5e5   :  { %v2083_v60 = vmul.f32 %v2075_v41, %v6720_v50  ;;  %4982 = vrcp.f32 %v2179_v45  ;;  %v2174_v28 = vmul.f32 %v2166_v49, %v6736_v62  ;;  %v2165_v37 = vadd.f32 -0.0073733293, %v2157_v51 }
 0x5e6   :  { %v2092_v63 = vadd.f32 -0.0029546, %v2084_v54  ;;  %v2078_v46 = vadd.f32 -0.00073499064, %v2070_v57  ;;  %v2069_v4 = vmul.f32 %v2061_v59, %v6740_v3  ;;  %v2008_v52 = vmul.f32 0.0, %v6761_v0 }
 0x5e7   :  { %v2091_v6 = vadd.f32 -0.0029546, %v2083_v60  ;;  %v2182_v55 = vadd.f32 -0.014264739, %v2174_v28  ;;  %v2173_v10 = vmul.f32 %v2165_v37, %v6740_v3  ;;  %v1975_v14 = vmul.f32 0.70710677, %v6747_v7 }
 0x5e8   :  { %v2100_v8 = vmul.f32 %v2092_v63, %v6715_v33  ;;  %v2086_v19 = vmul.f32 %v2078_v46, %v6736_v62  ;;  %v2077_v20 = vadd.f32 -0.00073499064, %v2069_v4  ;;  %v2016_v21 = vadd.f32 -2.7261424e-10, %v2008_v52 }
 0x5e9   :  { %v2099_v36 = vmul.f32 %v2091_v6, %v6720_v50  ;;  %4984 = vrcp.f32 %v2182_v55  ;;  %v2181_v39 = vadd.f32 -0.014264739, %v2173_v10  ;;  %v2120_v53 = vadd.f32 -1.45660715e-05, %v2008_v52 }
 0x5ea   :  { %v2108_v56 = vadd.f32 -0.016096033, %v2100_v8  ;;  %v2094_v1 = vadd.f32 -0.0029546, %v2086_v19  ;;  %v2085_v11 = vmul.f32 %v2077_v20, %v6740_v3  ;;  %v2024_v13 = vmul.f32 %v2016_v21, %v6761_v0 }
 0x5eb   :  { %v2107_v24 = vadd.f32 -0.016096033, %v2099_v36  ;;  %4986 = vrcp.f32 %v2181_v39  ;;  %v2128_v30 = vmul.f32 %v2120_v53, %v6761_v0  ;;  %v6801_v33 = vclamps-f32 %v1975_v14, 4.0 }
 0x5ec   :  { %v1963_v32 = vmul.f32 0.5, %v6700_v35  ;;  %v2102_v38 = vmul.f32 %v2094_v1, %v6736_v62  ;;  %v2093_v50 = vadd.f32 -0.0029546, %v2085_v11  ;;  %v2032_v40 = vadd.f32 2.7706815e-08, %v2024_v13 }
 0x5ed   :  { %v2220_v41 = vmul.f32 %v6703_v42, %v2108_v56  ;;  %v6807_v49 = vmul.f32 0.5, %v6706_v44  ;;  %v2136_v51 = vadd.f32 -0.00021337405, %v2128_v30  ;;  %v6811_v54 = vmul.f32 %v6801_v33, %v6801_v33 }
 0x5ee   :  { %v4981_v57 = vpop.eup %4980  ;;  %v2110_v59 = vadd.f32 -0.016096033, %v2102_v38  ;;  %v2101_v60 = vmul.f32 %v2093_v50, %v6740_v3  ;;  %v2040_v35 = vmul.f32 %v2032_v40, %v6761_v0  ;;  %v1978_v62 = vmul.f32 0.70710677, %v6757_v23 }
 0x5ef   :  { %v4983_v28 = vpop.eup %4982  ;;  %v2196_v37 = vmul.f32 %v4981_v57, %v2180_v34  ;;  %v2219_v42 = vmul.f32 %v6708_v48, %v2107_v24  ;;  %v2144_v44 = vmul.f32 %v2136_v51, %v6761_v0  ;;  %v2007_v63 = vmul.f32 0.0, %v6811_v54 }
 0x5f0   :  { %v2195_v46 = vmul.f32 %v4983_v28, %v2179_v45  ;;  %v2222_v4 = vmul.f32 %v6724_v61, %v2110_v59  ;;  %v2109_v52 = vadd.f32 -0.016096033, %v2101_v60  ;;  %v2048_v6 = vadd.f32 -2.101024e-06, %v2040_v35 }
 0x5f1   :  { %v2204_v10 = vsub.f32 2.0, %v2196_v37  ;;  %v2152_v14 = vadd.f32 -0.001682827, %v2144_v44  ;;  %v2015_v3 = vadd.f32 -2.7261424e-10, %v2007_v63  ;;  %v6820_v8 = vclamps-f32 %v1978_v62, 4.0 }
 0x5f2   :  { %v2203_v19 = vsub.f32 2.0, %v2195_v46  ;;  %v2221_v20 = vmul.f32 %v6730_v47, %v2109_v52  ;;  %v2056_v34 = vmul.f32 %v2048_v6, %v6761_v0  ;;  %v2119_v48 = vadd.f32 -1.45660715e-05, %v2007_v63 }
 0x5f3   :  { %v4985_v21 = vpop.eup %4984  ;;  %v2212_v36 = vmul.f32 %v4981_v57, %v2204_v10  ;;  %v2160_v53 = vmul.f32 %v2152_v14, %v6761_v0  ;;  %v2023_v45 = vmul.f32 %v2015_v3, %v6811_v54  ;;  %v6828_v61 = vmul.f32 %v6820_v8, %v6820_v8 }
 0x5f4   :  { %v2211_v56 = vmul.f32 %v4983_v28, %v2203_v19  ;;  %v2198_v1 = vmul.f32 %v4985_v21, %v2182_v55  ;;  %v2064_v11 = vadd.f32 -5.6925062e-05, %v2056_v34  ;;  %v2127_v13 = vmul.f32 %v2119_v48, %v6811_v54 }
 0x5f5   :  { %v4987_v24 = vpop.eup %4986  ;;  %v2228_v47 = vmul.f32 %v2220_v41, %v2212_v36  ;;  %v2168_v30 = vadd.f32 -0.0073733293, %v2160_v53  ;;  %v2031_v38 = vadd.f32 2.7706815e-08, %v2023_v45  ;;  %v2010_v50 = vmul.f32 0.0, %v6828_v61 }
 0x5f6   :  { %v2227_v40 = vmul.f32 %v2219_v42, %v2211_v56  ;;  %v2206_v51 = vsub.f32 2.0, %v2198_v1  ;;  %v2197_v57 = vmul.f32 %v4987_v24, %v2181_v39  ;;  %v2072_v59 = vmul.f32 %v2064_v11, %v6761_v0 }
 0x5f7   :  { %v2236_v60 = vadd.f32 1.0, %v2228_v47  ;;  %v2176_v35 = vmul.f32 %v2168_v30, %v6761_v0  ;;  %v2039_v62 = vmul.f32 %v2031_v38, %v6811_v54  ;;  %v2135_v55 = vadd.f32 -0.00021337405, %v2127_v13 }
 0x5f8   :  { %v2235_v28 = vadd.f32 1.0, %v2227_v40  ;;  %v2214_v37 = vmul.f32 %v4985_v21, %v2206_v51  ;;  %v2205_v44 = vsub.f32 2.0, %v2197_v57  ;;  %v2080_v63 = vadd.f32 -0.00073499064, %v2072_v59 }
 0x5f9   :  { %v6836_v41 = vmul.f32 %v2236_v60, %v6732_v43  ;;  %v2184_v46 = vadd.f32 -0.014264739, %v2176_v35  ;;  %v2047_v52 = vadd.f32 -2.101024e-06, %v2039_v62  ;;  %v2143_v42 = vmul.f32 %v2135_v55, %v6811_v54 }
 0x5fa   :  { %v6839_v39 = vmul.f32 %v2235_v28, %v1963_v32  ;;  %v2230_v6 = vmul.f32 %v2222_v4, %v2214_v37  ;;  %v2213_v10 = vmul.f32 %v4987_v24, %v2205_v44  ;;  %v2088_v14 = vmul.f32 %v2080_v63, %v6761_v0 }
 0x5fb   :  { %v1965_v3 = vmul.f32 0.5, %v6711_v31  ;;  %4988 = vrcp.f32 %v2184_v46  ;;  %v2055_v19 = vmul.f32 %v2047_v52, %v6811_v54  ;;  %v2151_v34 = vadd.f32 -0.001682827, %v2143_v42 }
 0x5fc   :  { %v2252_v43 = vmul.f32 %v6836_v41, %v6836_v41  ;;  %v2238_v48 = vadd.f32 1.0, %v2230_v6  ;;  %v2229_v21 = vmul.f32 %v2221_v20, %v2213_v10  ;;  %v6848_v36 = vadd.f32 %v6696_v29, %v6754_v17 }
 0x5fd   :  { %v2063_v32 = vadd.f32 -5.6925062e-05, %v2055_v19  ;;  %v2159_v4 = vmul.f32 %v2151_v34, %v6811_v54  ;;  %v2018_v53 = vadd.f32 -2.7261424e-10, %v2010_v50  ;;  %v2122_v45 = vadd.f32 -1.45660715e-05, %v2010_v50 }
 0x5fe   :  { %v2251_v31 = vmul.f32 %v6839_v39, %v6839_v39  ;;  %v6854_v56 = vmul.f32 %v2238_v48, %v6807_v49  ;;  %v2237_v1 = vadd.f32 1.0, %v2229_v21  ;;  %v2096_v11 = vadd.f32 -0.0029546, %v2088_v14 }
 0x5ff   :  { %v2071_v13 = vmul.f32 %v2063_v32, %v6811_v54  ;;  %v2167_v20 = vadd.f32 -0.0073733293, %v2159_v4  ;;  %v2026_v24 = vmul.f32 %v2018_v53, %v6828_v61  ;;  %v2130_v29 = vmul.f32 %v2122_v45, %v6828_v61 }
 0x600   :  { %v2254_v17 = vmul.f32 %v6854_v56, %v6854_v56  ;;  %v6861_v47 = vmul.f32 %v2237_v1, %v1965_v3  ;;  %v1977_v30 = vmul.f32 0.70710677, %v6848_v36  ;;  %v2104_v57 = vmul.f32 %v2096_v11, %v6761_v0 }
 0x601   :  { %v2079_v38 = vadd.f32 -0.00073499064, %v2071_v13  ;;  %v2175_v49 = vmul.f32 %v2167_v20, %v6811_v54  ;;  %v2034_v50 = vadd.f32 2.7706815e-08, %v2026_v24  ;;  %v2138_v40 = vadd.f32 -0.00021337405, %v2130_v29 }
 0x602   :  { %v2253_v51 = vmul.f32 %v6861_v47, %v6861_v47  ;;  %v6868_v59 = vclamps-f32 %v1977_v30, 4.0  ;;  %v4699_v60 = vpack.c.bf16 %v2252_v43, %v2251_v31  ;;  %v2112_v10 = vadd.f32 -0.016096033, %v2104_v57 }
 0x603   :  { %v2087_v35 = vmul.f32 %v2079_v38, %v6811_v54  ;;  %v2183_v62 = vadd.f32 -0.014264739, %v2175_v49  ;;  %v2042_v55 = vmul.f32 %v2034_v50, %v6828_v61  ;;  %v2146_v28 = vmul.f32 %v2138_v40, %v6828_v61 }
 0x604   :  { %v6875_v37 = vmul.f32 %v6868_v59, %v6868_v59  ;;  %4700 = vmatpush3.bf16.msra.mxu1 %v4699_v60  ;;  %v4702_v44 = vpack.c.bf16 %v2254_v17, %v2253_v51  ;;  %v2224_v45 = vmul.f32 %v6752_v16, %v2112_v10 }
 0x605   :  { %v4989_v63 = vpop.eup %4988  ;;  %4990 = vrcp.f32 %v2183_v62  ;;  %v2050_v52 = vadd.f32 -2.101024e-06, %v2042_v55  ;;  %v2154_v0 = vadd.f32 -0.001682827, %v2146_v28  ;;  %4701 = vmatprep.subr.bf16.mxu1 %v5040_v26  ;;  %v2095_v14 = vadd.f32 -0.0029546, %v2087_v35 }
 0x606   :  { %v2200_v42 = vmul.f32 %v4989_v63, %v2184_v46  ;;  %v2009_v6 = vmul.f32 0.0, %v6875_v37  ;;  %v1968_v28 = vmul.f32 0.5, %v6727_v58 }
 0x607   :  { %v2058_v3 = vmul.f32 %v2050_v52, %v6828_v61  ;;  %v2162_v19 = vmul.f32 %v2154_v0, %v6828_v61  ;;  %v2103_v11 = vmul.f32 %v2095_v14, %v6811_v54 }
 0x608   :  { %v2208_v34 = vsub.f32 2.0, %v2200_v42  ;;  %v2017_v43 = vadd.f32 -2.7261424e-10, %v2009_v6  ;;  %v2121_v48 = vadd.f32 -1.45660715e-05, %v2009_v6  ;;  %4703 = vmatpush3.bf16.msra.mxu1 %v4702_v44 }
 0x609   :  { %v2066_v21 = vadd.f32 -5.6925062e-05, %v2058_v3  ;;  %v2170_v32 = vadd.f32 -0.0073733293, %v2162_v19  ;;  %4704 = vmatprep.subr.bf16.mxu1 %v5040_v26  ;;  %v2111_v50 = vadd.f32 -0.016096033, %v2103_v11 }
 0x60a   :  { %v2216_v4 = vmul.f32 %v4989_v63, %v2208_v34  ;;  %v2025_v53 = vmul.f32 %v2017_v43, %v6875_v37  ;;  %v2129_v46 = vmul.f32 %v2121_v48, %v6875_v37  ;;  %v1967_v3 = vmul.f32 0.5, %v6747_v7 }
 0x60b   :  { %v2074_v31 = vmul.f32 %v2066_v21, %v6828_v61  ;;  %v2178_v1 = vmul.f32 %v2170_v32, %v6828_v61  ;;  %v2223_v63 = vmul.f32 %v6801_v33, %v2111_v50 }
 0x60c   :  { %v2033_v13 = vadd.f32 2.7706815e-08, %v2025_v53  ;;  %v2137_v20 = vadd.f32 -0.00021337405, %v2129_v46  ;;  %v2232_v24 = vmul.f32 %v2224_v45, %v2216_v4 }
 0x60d   :  { %v2082_v29 = vadd.f32 -0.00073499064, %v2074_v31  ;;  %v2186_v17 = vadd.f32 -0.014264739, %v2178_v1 }
 0x60e   :  { %v2041_v30 = vmul.f32 %v2033_v13, %v6875_v37  ;;  %v2145_v38 = vmul.f32 %v2137_v20, %v6875_v37  ;;  %v2240_v57 = vadd.f32 1.0, %v2232_v24 }
 0x60f   :  { %v4991_v49 = vpop.eup %4990  ;;  %4992 = vrcp.f32 %v2186_v17  ;;  %v2090_v60 = vmul.f32 %v2082_v29, %v6828_v61 }
 0x610   :  { %v2199_v40 = vmul.f32 %v4991_v49, %v2183_v62  ;;  %v2049_v16 = vadd.f32 -2.101024e-06, %v2041_v30  ;;  %v2153_v51 = vadd.f32 -0.001682827, %v2145_v38  ;;  %v6895_v42 = vmul.f32 %v2240_v57, %v1968_v28  ;;  %v2336_v28 = vld [vmem:[%s7325_s8 + $0x18] sm:$0xff] }
 0x611   :  { %v2098_v62 = vadd.f32 -0.0029546, %v2090_v60  ;;  %v1970_v38 = vmul.f32 0.5, %v6757_v23  ;;  %v2333_v23 = vld [vmem:[%s7325_s8] sm:$0xff] }
 0x612   :  { %v2207_v35 = vsub.f32 2.0, %v2199_v40  ;;  %v2057_v54 = vmul.f32 %v2049_v16, %v6875_v37  ;;  %v2161_v55 = vmul.f32 %v2153_v51, %v6875_v37  ;;  %v2256_v58 = vmul.f32 %v6895_v42, %v6895_v42 }
 0x613   :  { %v2106_v33 = vmul.f32 %v2098_v62, %v6828_v61  ;;  %v2339_v62 = vld [vmem:[%s7325_s8 + $0x30] sm:$0xff] }
 0x614   :  { %v2215_v44 = vmul.f32 %v4991_v49, %v2207_v35  ;;  %v2065_v52 = vadd.f32 -5.6925062e-05, %v2057_v54  ;;  %v2169_v0 = vadd.f32 -0.0073733293, %v2161_v55  ;;  %v2335_v55 = vld [vmem:[%s7325_s8 + $0x10] sm:$0xff] }
 0x615   :  { %v2114_v7 = vadd.f32 -0.016096033, %v2106_v33 }
 0x616   :  { %v2231_v6 = vmul.f32 %v2223_v63, %v2215_v44  ;;  %v2073_v10 = vmul.f32 %v2065_v52, %v6875_v37  ;;  %v2177_v14 = vmul.f32 %v2169_v0, %v6875_v37  ;;  %v4714_v44 = vpack.c.bf16 %v2336_v28, %v2335_v55  ;;  %v2337_v63 = vld [vmem:[%s7325_s8 + $0x20] sm:$0xff]  ;;  %v2338_v52 = vld [vmem:[%s7325_s8 + $0x28] sm:$0xff]  ;;  %v2616_v28 = vld [vmem:[%s7321_s4 + $0x30] sm:$0xff] }
 0x617   :  { %v2226_v11 = vmul.f32 %v6820_v8, %v2114_v7  ;;  %v1969_v8 = vmul.f32 0.5, %v6848_v36  ;;  %v2259_v36 = vld [vmem:[%s7323_s6] sm:$0x3]  ;;  %v4717_v0 = vpack.c.bf16 %v2338_v52, %v2337_v63  ;;  %v2442_v63 = vld [vmem:[%s7324_s7 + $0x28] sm:$0xff]  ;;  %v2443_v52 = vld [vmem:[%s7324_s7 + $0x30] sm:$0xff] }
 0x618   :  { %v2239_v19 = vadd.f32 1.0, %v2231_v6  ;;  %v2081_v34 = vadd.f32 -0.00073499064, %v2073_v10  ;;  %v2185_v43 = vadd.f32 -0.014264739, %v2177_v14  ;;  %v2341_v10 = vld [vmem:[%s7325_s8 + $0x40] sm:$0xff] }
 0x619   :  { %v4993_v48 = vpop.eup %4992  ;;  %v2342_v14 = vld [vmem:[%s7325_s8 + $0x48] sm:$0xff] }
 0x61a   :  { %v6903_v21 = vmul.f32 %v2239_v19, %v1967_v3  ;;  %v2202_v32 = vmul.f32 %v4993_v48, %v2186_v17  ;;  %v2089_v4 = vmul.f32 %v2081_v34, %v6875_v37  ;;  %4994 = vrcp.f32 %v2185_v43  ;;  %v2343_v19 = vld [vmem:[%s7325_s8 + $0x50] sm:$0xff]  ;;  %v2344_v34 = vld [vmem:[%s7325_s8 + $0x58] sm:$0xff] }
 0x61b   :  { %v4723_v3 = vpack.c.bf16 %v2342_v14, %v2341_v10  ;;  %v2620_v14 = vld [vmem:[%s7321_s4 + $0x50] sm:$0xff] }
 0x61c   :  { %v2255_v53 = vmul.f32 %v6903_v21, %v6903_v21  ;;  %v2210_v46 = vsub.f32 2.0, %v2202_v32  ;;  %v2097_v45 = vadd.f32 -0.0029546, %v2089_v4  ;;  %v2347_v32 = vld [vmem:[%s7325_s8 + $0x70] sm:$0xff]  ;;  %v2348_v4 = vld [vmem:[%s7325_s8 + $0x78] sm:$0xff] }
 0x61e   :  { %v4705_v31 = vpack.c.bf16 %v2256_v58, %v2255_v53  ;;  %v2218_v1 = vmul.f32 %v4993_v48, %v2210_v46  ;;  %v2105_v13 = vmul.f32 %v2097_v45, %v6875_v37  ;;  %v2345_v48 = vld [vmem:[%s7325_s8 + $0x60] sm:$0xff]  ;;  %v2346_v58 = vld [vmem:[%s7325_s8 + $0x68] sm:$0xff]  ;;  %v4732_v53 = vpack.c.bf16 %v2348_v4, %v2347_v32 }
 0x61f   :  { %v4729_v33 = vpack.c.bf16 %v2346_v58, %v2345_v48  ;;  %v2437_v45 = vld [vmem:[%s7324_s7] sm:$0xff]  ;;  %v2624_v58 = vld [vmem:[%s7321_s4 + $0x70] sm:$0xff] }
 0x620   :  { %4706 = vmatpush3.bf16.msra.mxu1 %v4705_v31  ;;  %v2234_v61 = vmul.f32 %v2226_v11, %v2218_v1  ;;  %v2113_v24 = vadd.f32 -0.016096033, %v2105_v13  ;;  %v3342_v4 = vld [vmem:[%s7321_s4 + $0x100] sm:$0xff] }
 0x621   :  { %4707 = vmatprep.subr.bf16.mxu1 %v5040_v26 }
 0x622   :  { %v2242_v17 = vadd.f32 1.0, %v2234_v61  ;;  %v2225_v50 = vmul.f32 %v6868_v59, %v2113_v24  ;;  %v2334_v59 = vld [vmem:[%s7325_s8 + $0x8] sm:$0xff] }
 0x623   :  { %v4711_v54 = vpack.c.bf16 %v2334_v59, %v2333_v23  ;;  %v2614_v59 = vld [vmem:[%s7321_s4 + $0x20] sm:$0xff] }
 0x624   :  { %v4995_v20 = vpop.eup %4994  ;;  %v6913_v40 = vmul.f32 %v2242_v17, %v1970_v38  ;;  %v3315_v17 = vld [vmem:[%s7328_s11] ss:$0 sm:$0xff]  ;;  %v2611_v38 = vld [vmem:[%s7321_s4 + $0x8] sm:$0xff] }
 0x625   :  { %v2201_v29 = vmul.f32 %v4995_v20, %v2185_v43  ;;  %v4726_v43 = vpack.c.bf16 %v2344_v34, %v2343_v19  ;;  %v2622_v34 = vld [vmem:[%s7321_s4 + $0x60] sm:$0xff] }
 0x626   :  { %v2258_v37 = vmul.f32 %v6913_v40, %v6913_v40 }
 0x627   :  { %v2209_v30 = vsub.f32 2.0, %v2201_v29 }
 0x629   :  { %v2217_v49 = vmul.f32 %v4995_v20, %v2209_v30  ;;  %v2610_v30 = vld [vmem:[%s7321_s4] sm:$0xff] }
 0x62b   :  { %v2233_v16 = vmul.f32 %v2225_v50, %v2217_v49  ;;  %v2612_v50 = vld [vmem:[%s7321_s4 + $0x10] sm:$0xff] }
 0x62d   :  { %v2241_v51 = vadd.f32 1.0, %v2233_v16  ;;  %v2613_v16 = vld [vmem:[%s7321_s4 + $0x18] sm:$0xff] }
 0x62e   :  { %v4738_v23 = vpack.c.bf16 %v2613_v16, %v2612_v50 }
 0x62f   :  { %v6918_v57 = vmul.f32 %v2241_v51, %v1969_v8  ;;  %v4734_v51 = vpack.c.bf16 %v2611_v38, %v2610_v30 }
 0x631   :  { %v2257_v60 = vmul.f32 %v6918_v57, %v6918_v57 }
 0x633   :  { %v4708_v35 = vpack.c.bf16 %v2258_v37, %v2257_v60  ;;  %v2438_v37 = vld [vmem:[%s7324_s7 + $0x8] sm:$0xff]  ;;  %v2439_v60 = vld [vmem:[%s7324_s7 + $0x10] sm:$0xff] }
 0x635   :  { %4709 = vmatpush3.bf16.msra.mxu1 %v4708_v35  ;;  %v2615_v35 = vld [vmem:[%s7321_s4 + $0x28] sm:$0xff] }
 0x636   :  { %4710 = vmatprep.subr.bf16.mxu1 %v5040_v26  ;;  %v4742_v55 = vpack.c.bf16 %v2615_v35, %v2614_v59 }
 0x638   :  { %3959 = vmatmul.mubr.msk.f32.vlgmr.msra.gmra.mrb[32].mxu1 %vm1567_vm1, %v2259_v36  ;;  %v2440_v36 = vld [vmem:[%s7324_s7 + $0x18] sm:$0xff] }
 0x639   :  { %4712 = vmatpush3.bf16.msra.mxu1 %v4711_v54  ;;  %3993 = vmatprep.mubr.msk.f32.mxu1 %vm5041_vm2, %v5042_v27  ;;  %v2340_v27 = vld [vmem:[%s7325_s8 + $0x38] sm:$0xff]  ;;  %v2441_v54 = vld [vmem:[%s7324_s7 + $0x20] sm:$0xff] }
 0x63a   :  { %4713 = vmatprep.subr.bf16.mxu1 %v5040_v26  ;;  %v4720_v6 = vpack.c.bf16 %v2340_v27, %v2339_v62  ;;  %v2618_v62 = vld [vmem:[%s7321_s4 + $0x40] sm:$0xff]  ;;  %v2619_v27 = vld [vmem:[%s7321_s4 + $0x48] sm:$0xff] }
 0x63b   :  { %v4750_v10 = vpack.c.bf16 %v2619_v27, %v2618_v62 }
 0x63d   :  { %4715 = vmatpush3.bf16.msra.mxu1 %v4714_v44  ;;  %v2617_v44 = vld [vmem:[%s7321_s4 + $0x38] sm:$0xff] }
 0x63e   :  { %4716 = vmatprep.subr.bf16.mxu1 %v5040_v26 }
 0x641   :  { %4718 = vmatpush3.bf16.msra.mxu1 %v4717_v0  ;;  %v4746_v0 = vpack.c.bf16 %v2617_v44, %v2616_v28  ;;  %v3348_v44 = vld [vmem:[%s7321_s4 + $0x130] sm:$0xff] }
 0x642   :  { %4719 = vmatprep.subr.bf16.mxu1 %v5040_v26 }
 0x645   :  { %4721 = vmatpush3.bf16.msra.mxu1 %v4720_v6  ;;  %v2444_v6 = vld [vmem:[%s7324_s7 + $0x38] sm:$0xff] }
 0x646   :  { %4722 = vmatprep.subr.bf16.mxu1 %v5040_v26 }
 0x649   :  { %4724 = vmatpush3.bf16.msra.mxu1 %v4723_v3  ;;  %v2621_v3 = vld [vmem:[%s7321_s4 + $0x58] sm:$0xff] }
 0x64a   :  { %4725 = vmatprep.subr.bf16.mxu1 %v5040_v26  ;;  %v4754_v19 = vpack.c.bf16 %v2621_v3, %v2620_v14  ;;  %v3350_v14 = vld [vmem:[%s7321_s4 + $0x140] sm:$0xff]  ;;  %v3351_v3 = vld [vmem:[%s7321_s4 + $0x148] sm:$0xff] }
 0x64d   :  { %4727 = vmatpush3.bf16.msra.mxu1 %v4726_v43  ;;  %v2623_v43 = vld [vmem:[%s7321_s4 + $0x68] sm:$0xff] }
 0x64e   :  { %4728 = vmatprep.subr.bf16.mxu1 %v5040_v26  ;;  %v4758_v48 = vpack.c.bf16 %v2623_v43, %v2622_v34  ;;  %v3352_v34 = vld [vmem:[%s7321_s4 + $0x150] sm:$0xff]  ;;  %v3353_v43 = vld [vmem:[%s7321_s4 + $0x158] sm:$0xff] }
 0x651   :  { %4730 = vmatpush3.bf16.msra.mxu1 %v4729_v33  ;;  %v2625_v33 = vld [vmem:[%s7321_s4 + $0x78] sm:$0xff] }
 0x652   :  { %4731 = vmatprep.subr.bf16.mxu1 %v5040_v26  ;;  %v4762_v32 = vpack.c.bf16 %v2625_v33, %v2624_v58  ;;  %v3356_v33 = vld [vmem:[%s7321_s4 + $0x170] sm:$0xff] }
 0x655   :  { %4733 = vmatpush3.bf16.msra.mxu1 %v4732_v53  ;;  %v3343_v53 = vld [vmem:[%s7321_s4 + $0x108] sm:$0xff] }
 0x70b   :  { %v2329_v46 = vpop.f32.mrb[32].mxu1 }
 0x70c   :  { %v3960_v7 = vpop.f32.mrb[33].mxu1  ;;  %3994 = vmatmul.mubr.f32.vlgmr.msra.gmra.mrb[34].mxu1 %v2329_v46  ;;  %v4766_v46 = vpack.c.bf16 %v3343_v53, %v3342_v4  ;;  %v5000_v53 = vld [vmem:[%s7322_s5] sm:$0xff] }
 0x70d   :  { %3998 = vmatprep.mubr.msk.f32.mxu1 %vm2445_vm3, %v2437_v45  ;;  %v3325_v45 = vld [vmem:[%s7329_s12] ss:$0 sm:$0xff] }
 0x7df   :  { %v2415_v31 = vpop.f32.mrb[34].mxu1 }
 0x7e0   :  { %4996 = vrsqrt.f32 %v2415_v31  ;;  %v3995_v1 = vpop.f32.mrb[35].mxu1  ;;  %vm2421_vm4 = vcmp.eq.f32.partialorder %v2415_v31, inf  ;;  %v2424_v61 = vand.u32 2147483648, %v2415_v31  ;;  %vm2423_vm5 = vcmp.eq.f32.partialorder %v2415_v31, 0.0 }
 0x7ea   :  { %v4997_v11 = vpop.eup %4996 }
 0x7eb   :  { %v2420_v13 = vmul.f32 %v4997_v11, %v2415_v31 }
 0x7ed   :  { %v2422_v20 = vsel %vm2421_vm4, %v2415_v31, %v2420_v13 }
 0x7ee   :  { %v2425_v26 = vsel %vm2423_vm5, %v2424_v61, %v2422_v20 }
 0x7ef   :  { %v2426_v24 = vmax.f32 %v2425_v26, 1e-05 }
 0x7f1   :  { %4998 = vrcp.f32 %v2426_v24  ;;  %v3345_v24 = vld [vmem:[%s7321_s4 + $0x118] sm:$0xff] }
 0x7fb   :  { %v4999_v29 = vpop.eup %4998 }
 0x7fc   :  { %v2428_v49 = vmul.f32 %v4999_v29, %v2425_v26  ;;  %v3344_v26 = vld [vmem:[%s7321_s4 + $0x110] sm:$0xff] }
 0x7fd   :  { %v4770_v16 = vpack.c.bf16 %v3345_v24, %v3344_v26  ;;  %v3326_v26 = vld [vmem:[%s7321_s4 + $0x80] sm:$0xff]  ;;  %v3327_v24 = vld [vmem:[%s7321_s4 + $0x88] sm:$0xff] }
 0x7fe   :  { %v2436_v8 = vmul.f32 %v3315_v17, %v2428_v49 }
 0x800   :  { %3996 = vmatprep.subr.msk.mxu1 %vm2470_vm6, %v2436_v8 }
 0x801   :  { %3997 = vmatpush3.msk.msra.mxu1 %vm2470_vm6, %v2436_v8 }
 0x802   :  { %3999 = vmatmul.mubr.msk.f32.vlgmr.msra.gmra.mrb[36].mxu1 %vm2445_vm3, %v2438_v37  ;;  %4735 = vmatprep.subr.bf16.mxu1 %v4734_v51  ;;  %v3346_v37 = vld [vmem:[%s7321_s4 + $0x120] sm:$0xff] }
 0x803   :  { %4001 = vmatprep.mubr.msk.f32.mxu1 %vm2445_vm3, %v2439_v60  ;;  %4737 = vmatpush3.bf16.msra.mxu1 %v4734_v51  ;;  %v3347_v60 = vld [vmem:[%s7321_s4 + $0x128] sm:$0xff] }
 0x804   :  { %4739 = vmatprep.subr.bf16.mxu1 %v4738_v23 }
 0x806   :  { %4002 = vmatmul.mubr.msk.f32.gmra.mrb[38].mxu1 %vm2445_vm3, %v2440_v36 }
 0x807   :  { %4004 = vmatprep.mubr.msk.f32.mxu1 %vm2445_vm3, %v2441_v54  ;;  %4741 = vmatpush3.bf16.msra.mxu1 %v4738_v23  ;;  %v4774_v54 = vpack.c.bf16 %v3347_v60, %v3346_v37  ;;  %v3330_v37 = vld [vmem:[%s7321_s4 + $0xa0] sm:$0xff]  ;;  %v3331_v60 = vld [vmem:[%s7321_s4 + $0xa8] sm:$0xff] }
 0x808   :  { %4743 = vmatprep.subr.bf16.mxu1 %v4742_v55 }
 0x80a   :  { %4005 = vmatmul.mubr.msk.f32.gmra.mrb[40].mxu1 %vm2445_vm3, %v2442_v63  ;;  %v3349_v63 = vld [vmem:[%s7321_s4 + $0x138] sm:$0xff] }
 0x80b   :  { %4007 = vmatprep.mubr.msk.f32.mxu1 %vm2445_vm3, %v2443_v52  ;;  %4745 = vmatpush3.bf16.msra.mxu1 %v4742_v55 }
 0x80c   :  { %4747 = vmatprep.subr.bf16.mxu1 %v4746_v0 }
 0x80e   :  { %4008 = vmatmul.mubr.msk.f32.gmra.mrb[42].mxu1 %vm2445_vm3, %v2444_v6  ;;  %v4778_v6 = vpack.c.bf16 %v3349_v63, %v3348_v44  ;;  %v3334_v63 = vld [vmem:[%s7321_s4 + $0xc0] sm:$0xff] }
 0x80f   :  { %4749 = vmatpush3.bf16.msra.mxu1 %v4746_v0 }
 0x810   :  { %4751 = vmatprep.subr.bf16.mxu1 %v4750_v10 }
 0x813   :  { %4753 = vmatpush3.bf16.msra.mxu1 %v4750_v10 }
 0x814   :  { %4755 = vmatprep.subr.bf16.mxu1 %v4754_v19 }
 0x817   :  { %4757 = vmatpush3.bf16.msra.mxu1 %v4754_v19  ;;  %v4782_v19 = vpack.c.bf16 %v3351_v3, %v3350_v14  ;;  %v5007_v3 = vld [vmem:[%s7322_s5 + $0x38] sm:$0xff] }
 0x818   :  { %4759 = vmatprep.subr.bf16.mxu1 %v4758_v48 }
 0x81b   :  { %4761 = vmatpush3.bf16.msra.mxu1 %v4758_v48  ;;  %v3355_v48 = vld [vmem:[%s7321_s4 + $0x168] sm:$0xff] }
 0x81c   :  { %4763 = vmatprep.subr.bf16.mxu1 %v4762_v32 }
 0x81f   :  { %4765 = vmatpush3.bf16.msra.mxu1 %v4762_v32  ;;  %v3357_v32 = vld [vmem:[%s7321_s4 + $0x178] sm:$0xff] }
 0x820   :  { %4767 = vmatprep.subr.bf16.mxu1 %v4766_v46  ;;  %v4794_v4 = vpack.c.bf16 %v3357_v32, %v3356_v33 }
 0x8d5   :  { %v4000_v7 = vpop.f32.mrb[36].mxu1 }
 0x8d6   :  { %v2580_v31 = vmul.f32 %v4000_v7, %v6836_v41  ;;  %v2540_v1 = vpop.f32.mrb[37].mxu1 }
 0x8d7   :  { %v2579_v11 = vmul.f32 %v2540_v1, %v6839_v39 }
 0x8d8   :  { %v2595_v13 = vadd.f32 %v3325_v45, %v2580_v31 }
 0x8d9   :  { %v2594_v61 = vadd.f32 %v3325_v45, %v2579_v11  ;;  %v4003_v20 = vpop.f32.mrb[38].mxu1 }
 0x8da   :  { %v2582_v29 = vmul.f32 %v4003_v20, %v6854_v56  ;;  %v2550_v17 = vpop.f32.mrb[39].mxu1  ;;  %v7090_v49 = vadd.f32 %v2595_v13, %v6836_v41 }
 0x8db   :  { %v2581_v30 = vmul.f32 %v2550_v17, %v6861_v47  ;;  %v7087_v38 = vadd.f32 %v2594_v61, %v6839_v39 }
 0x8dc   :  { %v2597_v50 = vadd.f32 %v3325_v45, %v2582_v29 }
 0x8dd   :  { %v2596_v8 = vadd.f32 %v3325_v45, %v2581_v30  ;;  %v4006_v51 = vpop.f32.mrb[40].mxu1  ;;  %4042 = vmatprep.mubr.f32.mxu1 %v7087_v38 }
 0x8de   :  { %v2584_v39 = vmul.f32 %v4006_v51, %v6895_v42  ;;  %v2560_v23 = vpop.f32.mrb[41].mxu1  ;;  %4043 = vmatmul.mubr.f32.vlgmr.msra.gmra.mrb[44].mxu1 %v7090_v49  ;;  %v7106_v36 = vadd.f32 %v2597_v50, %v6854_v56  ;;  %v4814_v50 = vpack.c.bf16 %v3327_v24, %v3326_v26 }
 0x8df   :  { %v2583_v41 = vmul.f32 %v2560_v23, %v6903_v21  ;;  %4769 = vmatpush3.bf16.msra.mxu1 %v4766_v46  ;;  %v7103_v59 = vadd.f32 %v2596_v8, %v6861_v47  ;;  %v3329_v8 = vld [vmem:[%s7321_s4 + $0x98] sm:$0xff]  ;;  %v5002_v23 = vld [vmem:[%s7322_s5 + $0x10] sm:$0xff] }
 0x8e0   :  { %v2599_v35 = vadd.f32 %v3325_v45, %v2584_v39  ;;  %4771 = vmatprep.subr.bf16.mxu1 %v4770_v16  ;;  %v5001_v39 = vld [vmem:[%s7322_s5 + $0x8] sm:$0xff] }
 0x8e1   :  { %v2598_v55 = vadd.f32 %v3325_v45, %v2583_v41  ;;  %v4009_v28 = vpop.f32.mrb[42].mxu1  ;;  %4045 = vmatprep.mubr.f32.mxu1 %v7103_v59  ;;  %v4822_v41 = vpack.c.bf16 %v3331_v60, %v3330_v37 }
 0x8e2   :  { %v2586_v47 = vmul.f32 %v4009_v28, %v6913_v40  ;;  %v2570_v52 = vpop.f32.mrb[43].mxu1  ;;  %4046 = vmatmul.mubr.f32.gmra.mrb[46].mxu1 %v7106_v36  ;;  %v7122_v27 = vadd.f32 %v2599_v35, %v6895_v42  ;;  %v3332_v35 = vld [vmem:[%s7321_s4 + $0xb0] sm:$0xff]  ;;  %v5004_v28 = vld [vmem:[%s7322_s5 + $0x20] sm:$0xff] }
 0x8e3   :  { %v2585_v56 = vmul.f32 %v2570_v52, %v6918_v57  ;;  %4773 = vmatpush3.bf16.msra.mxu1 %v4770_v16  ;;  %v7119_v0 = vadd.f32 %v2598_v55, %v6903_v21  ;;  %v3328_v16 = vld [vmem:[%s7321_s4 + $0x90] sm:$0xff]  ;;  %v5003_v55 = vld [vmem:[%s7322_s5 + $0x18] sm:$0xff]  ;;  %v5005_v52 = vld [vmem:[%s7322_s5 + $0x28] sm:$0xff] }
 0x8e4   :  { %v2601_v62 = vadd.f32 %v3325_v45, %v2586_v47  ;;  %4775 = vmatprep.subr.bf16.mxu1 %v4774_v54  ;;  %v4818_v51 = vpack.c.bf16 %v3329_v8, %v3328_v16  ;;  %v3335_v47 = vld [vmem:[%s7321_s4 + $0xc8] sm:$0xff] }
 0x8e5   :  { %v2600_v10 = vadd.f32 %v3325_v45, %v2585_v56  ;;  %4048 = vmatprep.mubr.f32.mxu1 %v7119_v0  ;;  %v5006_v56 = vld [vmem:[%s7322_s5 + $0x30] sm:$0xff] }
 0x8e6   :  { %4049 = vmatmul.mubr.f32.gmra.mrb[48].mxu1 %v7122_v27  ;;  %v7136_v42 = vadd.f32 %v2601_v62, %v6913_v40  ;;  %v3354_v40 = vld [vmem:[%s7321_s4 + $0x160] sm:$0xff]  ;;  %v4830_v62 = vpack.c.bf16 %v3335_v47, %v3334_v63 }
 0x8e7   :  { %4777 = vmatpush3.bf16.msra.mxu1 %v4774_v54  ;;  %v7133_v21 = vadd.f32 %v2600_v10, %v6918_v57  ;;  %v4786_v57 = vpack.c.bf16 %v3353_v43, %v3352_v34  ;;  %v4790_v58 = vpack.c.bf16 %v3355_v48, %v3354_v40  ;;  %v3333_v54 = vld [vmem:[%s7321_s4 + $0xb8] sm:$0xff]  ;;  %v3339_v40 = vld [vmem:[%s7321_s4 + $0xe8] sm:$0xff] }
 0x8e8   :  { %4779 = vmatprep.subr.bf16.mxu1 %v4778_v6  ;;  %v4826_v44 = vpack.c.bf16 %v3333_v54, %v3332_v35  ;;  %v3337_v10 = vld [vmem:[%s7321_s4 + $0xd8] sm:$0xff] }
 0x8e9   :  { %4051 = vmatprep.mubr.f32.mxu1 %v7133_v21 }
 0x8ea   :  { %4052 = vmatmul.mubr.f32.gmra.mrb[50].mxu1 %v7136_v42 }
 0x8eb   :  { %4781 = vmatpush3.bf16.msra.mxu1 %v4778_v6  ;;  %4086 = vmatprep.mubr.f32.mxu1 %v7087_v38  ;;  %v3336_v6 = vld [vmem:[%s7321_s4 + $0xd0] sm:$0xff] }
 0x8ec   :  { %4783 = vmatprep.subr.bf16.mxu1 %v4782_v19  ;;  %v4834_v43 = vpack.c.bf16 %v3337_v10, %v3336_v6 }
 0x8ef   :  { %4785 = vmatpush3.bf16.msra.mxu1 %v4782_v19 }
 0x8f0   :  { %4787 = vmatprep.subr.bf16.mxu1 %v4786_v57 }
 0x8f3   :  { %4789 = vmatpush3.bf16.msra.mxu1 %v4786_v57  ;;  %v3338_v57 = vld [vmem:[%s7321_s4 + $0xe0] sm:$0xff] }
 0x8f4   :  { %4791 = vmatprep.subr.bf16.mxu1 %v4790_v58  ;;  %v4838_v32 = vpack.c.bf16 %v3339_v40, %v3338_v57 }
 0x8f7   :  { %4793 = vmatpush3.bf16.msra.mxu1 %v4790_v58 }
 0x8f8   :  { %4795 = vmatprep.subr.bf16.mxu1 %v4794_v4 }
 0x8fb   :  { %4797 = vmatpush3.bf16.msra.mxu1 %v4794_v4  ;;  %v3341_v4 = vld [vmem:[%s7321_s4 + $0xf8] sm:$0xff] }
 0x8fe   :  { %4087 = vmatmul.mubr.f32.vlgmr.msra.gmra.mrb[52].mxu1 %v7090_v49 }
 0x8ff   :  { %4089 = vmatprep.mubr.f32.mxu1 %v7103_v59 }
 0x902   :  { %4090 = vmatmul.mubr.f32.gmra.mrb[54].mxu1 %v7106_v36 }
 0x903   :  { %4092 = vmatprep.mubr.f32.mxu1 %v7119_v0 }
 0x906   :  { %4093 = vmatmul.mubr.f32.gmra.mrb[56].mxu1 %v7122_v27 }
 0x907   :  { %4095 = vmatprep.mubr.f32.mxu1 %v7133_v21 }
 0x90a   :  { %4096 = vmatmul.mubr.f32.gmra.mrb[58].mxu1 %v7136_v42 }
 0x90b   :  { %4114 = vmatprep.mubr.msk.f32.mxu1 %vm1567_vm1, %v5000_v53 }
 0x9b1   :  { %v4044_v46 = vpop.f32.mrb[44].mxu1 }
 0x9b2   :  { %v2692_v7 = vpop.f32.mrb[45].mxu1 }
 0x9b3   :  { %v4798_v45 = vpack.c.bf16 %v4044_v46, %v2692_v7 }
 0x9b5   :  { %v4047_v31 = vpop.f32.mrb[46].mxu1  ;;  %4799 = vmatprep.subr.bf16.mxu1 %v4798_v45 }
 0x9b6   :  { %v2702_v1 = vpop.f32.mrb[47].mxu1  ;;  %4801 = vmatpush3.bf16.msra.mxu1 %v4798_v45 }
 0x9b7   :  { %v4802_v11 = vpack.c.bf16 %v4047_v31, %v2702_v1 }
 0x9b9   :  { %v4050_v13 = vpop.f32.mrb[48].mxu1  ;;  %4803 = vmatprep.subr.bf16.mxu1 %v4802_v11 }
 0x9ba   :  { %v2712_v61 = vpop.f32.mrb[49].mxu1  ;;  %4805 = vmatpush3.bf16.msra.mxu1 %v4802_v11 }
 0x9bb   :  { %v4806_v20 = vpack.c.bf16 %v4050_v13, %v2712_v61  ;;  %v5015_v13 = vld [vmem:[%s7322_s5 + $0x78] sm:$0xff] }
 0x9bd   :  { %v4053_v29 = vpop.f32.mrb[50].mxu1  ;;  %4807 = vmatprep.subr.bf16.mxu1 %v4806_v20 }
 0x9be   :  { %v2722_v17 = vpop.f32.mrb[51].mxu1  ;;  %4809 = vmatpush3.bf16.msra.mxu1 %v4806_v20  ;;  %v3374_v20 = vld [vmem:[%s7330_s13] ss:$0 sm:$0xff] }
 0x9bf   :  { %v4810_v30 = vpack.c.bf16 %v4053_v29, %v2722_v17 }
 0x9c1   :  { %4811 = vmatprep.subr.bf16.mxu1 %v4810_v30 }
 0x9c2   :  { %4813 = vmatpush3.bf16.msra.mxu1 %v4810_v30 }
 0x9c3   :  { %4815 = vmatprep.subr.bf16.mxu1 %v4814_v50 }
 0x9c5   :  { %4115 = vmatmul.mubr.msk.f32.vlgmr.msra.gmra.mrb[60].mxu1 %vm1567_vm1, %v5001_v39 }
 0x9c6   :  { %4817 = vmatpush3.bf16.msra.mxu1 %v4814_v50  ;;  %4117 = vmatprep.mubr.msk.f32.mxu1 %vm1567_vm1, %v5002_v23 }
 0x9c7   :  { %4819 = vmatprep.subr.bf16.mxu1 %v4818_v51 }
 0x9c9   :  { %4118 = vmatmul.mubr.msk.f32.gmra.mrb[62].mxu1 %vm1567_vm1, %v5003_v55 }
 0x9ca   :  { %4821 = vmatpush3.bf16.msra.mxu1 %v4818_v51  ;;  %4120 = vmatprep.mubr.msk.f32.mxu1 %vm1567_vm1, %v5004_v28 }
 0x9cb   :  { %4823 = vmatprep.subr.bf16.mxu1 %v4822_v41 }
 0x9cd   :  { %4121 = vmatmul.mubr.msk.f32.gmra.mrb[64].mxu1 %vm1567_vm1, %v5005_v52 }
 0x9ce   :  { %4825 = vmatpush3.bf16.msra.mxu1 %v4822_v41  ;;  %4123 = vmatprep.mubr.msk.f32.mxu1 %vm1567_vm1, %v5006_v56 }
 0x9cf   :  { %4827 = vmatprep.subr.bf16.mxu1 %v4826_v44 }
 0x9d1   :  { %v4088_v14 = vpop.f32.mrb[52].mxu1  ;;  %4124 = vmatmul.mubr.msk.f32.gmra.mrb[66].mxu1 %vm1567_vm1, %v5007_v3 }
 0x9d2   :  { %v2831_v19 = vpop.f32.mrb[53].mxu1  ;;  %4829 = vmatpush3.bf16.msra.mxu1 %v4826_v44  ;;  %4158 = vmatprep.mubr.f32.mxu1 %v7087_v38  ;;  %v3340_v38 = vld [vmem:[%s7321_s4 + $0xf0] sm:$0xff] }
 0x9d3   :  { %v4846_v34 = vpack.c.bf16 %v4088_v14, %v2831_v19  ;;  %4831 = vmatprep.subr.bf16.mxu1 %v4830_v62  ;;  %v4842_v45 = vpack.c.bf16 %v3341_v4, %v3340_v38 }
 0x9d5   :  { %v4091_v48 = vpop.f32.mrb[54].mxu1 }
 0x9d6   :  { %v2841_v58 = vpop.f32.mrb[55].mxu1  ;;  %4833 = vmatpush3.bf16.msra.mxu1 %v4830_v62 }
 0x9d7   :  { %v4850_v33 = vpack.c.bf16 %v4091_v48, %v2841_v58  ;;  %4835 = vmatprep.subr.bf16.mxu1 %v4834_v43 }
 0x9d9   :  { %v4094_v53 = vpop.f32.mrb[56].mxu1 }
 0x9da   :  { %v2851_v46 = vpop.f32.mrb[57].mxu1  ;;  %4837 = vmatpush3.bf16.msra.mxu1 %v4834_v43 }
 0x9db   :  { %v4854_v7 = vpack.c.bf16 %v4094_v53, %v2851_v46  ;;  %4839 = vmatprep.subr.bf16.mxu1 %v4838_v32 }
 0x9dd   :  { %v4097_v31 = vpop.f32.mrb[58].mxu1 }
 0x9de   :  { %v2861_v1 = vpop.f32.mrb[59].mxu1  ;;  %4841 = vmatpush3.bf16.msra.mxu1 %v4838_v32 }
 0x9df   :  { %v4858_v11 = vpack.c.bf16 %v4097_v31, %v2861_v1  ;;  %4843 = vmatprep.subr.bf16.mxu1 %v4842_v45 }
 0x9e2   :  { %4845 = vmatpush3.bf16.msra.mxu1 %v4842_v45 }
 0x9e3   :  { %4847 = vmatprep.subr.bf16.mxu1 %v4846_v34 }
 0x9e5   :  { %4159 = vmatmul.mubr.f32.vlgmr.msra.gmra.mrb[60].mxu1 %v7090_v49  ;;  %v5008_v49 = vld [vmem:[%s7322_s5 + $0x40] sm:$0xff] }
 0x9e6   :  { %4161 = vmatprep.mubr.f32.mxu1 %v7103_v59  ;;  %4849 = vmatpush3.bf16.msra.mxu1 %v4846_v34  ;;  %v5009_v59 = vld [vmem:[%s7322_s5 + $0x48] sm:$0xff] }
 0x9e7   :  { %4851 = vmatprep.subr.bf16.mxu1 %v4850_v33 }
 0x9e9   :  { %4162 = vmatmul.mubr.f32.gmra.mrb[62].mxu1 %v7106_v36  ;;  %v5010_v36 = vld [vmem:[%s7322_s5 + $0x50] sm:$0xff] }
 0x9ea   :  { %4164 = vmatprep.mubr.f32.mxu1 %v7119_v0  ;;  %4853 = vmatpush3.bf16.msra.mxu1 %v4850_v33  ;;  %v5011_v0 = vld [vmem:[%s7322_s5 + $0x58] sm:$0xff] }
 0x9eb   :  { %4855 = vmatprep.subr.bf16.mxu1 %v4854_v7 }
 0x9ed   :  { %4165 = vmatmul.mubr.f32.gmra.mrb[64].mxu1 %v7122_v27  ;;  %v5012_v27 = vld [vmem:[%s7322_s5 + $0x60] sm:$0xff] }
 0x9ee   :  { %4167 = vmatprep.mubr.f32.mxu1 %v7133_v21  ;;  %4857 = vmatpush3.bf16.msra.mxu1 %v4854_v7  ;;  %v5013_v21 = vld [vmem:[%s7322_s5 + $0x68] sm:$0xff] }
 0x9ef   :  { %4859 = vmatprep.subr.bf16.mxu1 %v4858_v11 }
 0x9f1   :  { %4168 = vmatmul.mubr.f32.gmra.mrb[66].mxu1 %v7136_v42  ;;  %v5014_v42 = vld [vmem:[%s7322_s5 + $0x70] sm:$0xff]  ;;  %s5043_s5 = smov [#allocation2]  }
 0x9f2   :  { %4861 = vmatpush3.bf16.msra.mxu1 %v4858_v11  ;;  %4186 = vmatprep.mubr.msk.f32.mxu1 %vm1567_vm1, %v5008_v49  ;;  %s3229_s13 = sshll.u32 %s5043_s5, 4  ;;  %s3230_s13 = int_to_ptr.vmem [resolvable:$true] %s3229_s13 }
 0x9f3   :  { %s5016_s27 = scalar_lea.vmem %s3230_s13, 1024  ;;  %p5021_p1 = scmp.lt.s32.totalorder %s3230_s13, %s3230_s13 }
 0x9f4   :  { %p5017_p0 = scmp.ne.s32.totalorder %s3230_s13, %s5016_s27  ;;  %p5022_p2 = scmp.lt.s32.totalorder %s5016_s27, %s5016_s27 }
 0x9f5   :  { %4187 = vmatmul.mubr.msk.f32.vlgmr.msra.gmra.mrb[60].mxu1 %vm1567_vm1, %v5009_v59 }
 0x9f6   :  { %4189 = vmatprep.mubr.msk.f32.mxu1 %vm1567_vm1, %v5010_v36  ;;  %p5023_p3 = por %p5022_p2, %p5021_p1 }
 0x9f8   :  { %p5024_p4 = pnand %p5023_p3, %p5017_p0 }
 0x9f9   :  { %4190 = vmatmul.mubr.msk.f32.gmra.mrb[62].mxu1 %vm1567_vm1, %v5011_v0 }
 0x9fa   :  { %4192 = vmatprep.mubr.msk.f32.mxu1 %vm1567_vm1, %v5012_v27 }
 0x9fd   :  { %4193 = vmatmul.mubr.msk.f32.gmra.mrb[64].mxu1 %vm1567_vm1, %v5013_v21 }
 0x9fe   :  { %4195 = vmatprep.mubr.msk.f32.mxu1 %vm1567_vm1, %v5014_v42 }
 0xa01   :  { %4196 = vmatmul.mubr.msk.f32.gmra.mrb[66].mxu1 %vm1567_vm1, %v5015_v13 }
 0xac8   :  { %v4188_v61 = vpop.f32.mrb[60].mxu1 }
 0xac9   :  { %v3194_v26 = vadd.f32 %v4188_v61, %v6388_v5  ;;  %v3146_v24 = vpop.f32.mrb[61].mxu1 }
 0xaca   :  { %v3193_v29 = vadd.f32 %v3146_v24, %v6386_v2 }
 0xacb   :  { %v3209_v17 = vadd.f32 %v3374_v20, %v3194_v26 }
 0xacc   :  { %v3208_v30 = vadd.f32 %v3374_v20, %v3193_v29  ;;  %v4191_v50 = vpop.f32.mrb[62].mxu1 }
 0xacd   :  { %3217 = vst.msk [vmem:[#allocation2 + $0x8] sm:$0xff] %vm1567_vm1, %v3209_v17  ;;  %v3196_v16 = vadd.f32 %v4191_v50, %v6392_v12  ;;  %v3156_v8 = vpop.f32.mrb[63].mxu1 }
 0xace   :  { %3216 = vst.msk [vmem:[#allocation2] sm:$0xff] %vm1567_vm1, %v3208_v30  ;;  %v3195_v51 = vadd.f32 %v3156_v8, %v6390_v9 }
 0xacf   :  { %v3211_v37 = vadd.f32 %v3374_v20, %v3196_v16 }
 0xad0   :  { %v3210_v60 = vadd.f32 %v3374_v20, %v3195_v51  ;;  %v4194_v39 = vpop.f32.mrb[64].mxu1 }
 0xad1   :  { %3219 = vst.msk [vmem:[#allocation2 + $0x18] sm:$0xff] %vm1567_vm1, %v3211_v37  ;;  %v3198_v5 = vadd.f32 %v4194_v39, %v6396_v18  ;;  %v3166_v2 = vpop.f32.mrb[65].mxu1 }
 0xad2   :  { %3218 = vst.msk [vmem:[#allocation2 + $0x10] sm:$0xff] %vm1567_vm1, %v3210_v60  ;;  %v3197_v23 = vadd.f32 %v3166_v2, %v6394_v15 }
 0xad3   :  { %v3213_v41 = vadd.f32 %v3374_v20, %v3198_v5 }
 0xad4   :  { %v3212_v35 = vadd.f32 %v3374_v20, %v3197_v23  ;;  %v4197_v12 = vpop.f32.mrb[66].mxu1 }
 0xad5   :  { %3221 = vst.msk [vmem:[#allocation2 + $0x28] sm:$0xff] %vm1567_vm1, %v3213_v41  ;;  %v3200_v54 = vadd.f32 %v4197_v12, %v6400_v25  ;;  %v3176_v9 = vpop.f32.mrb[67].mxu1 }
 0xad6   :  { %3220 = vst.msk [vmem:[#allocation2 + $0x20] sm:$0xff] %vm1567_vm1, %v3212_v35  ;;  %v3199_v55 = vadd.f32 %v3176_v9, %v6398_v22 }
 0xad7   :  { %v3215_v18 = vadd.f32 %v3374_v20, %v3200_v54 }
 0xad8   :  { %v3214_v28 = vadd.f32 %v3374_v20, %v3199_v55 }
 0xad9   :  { %3223 = vst.msk [vmem:[#allocation2 + $0x38] sm:$0xff] %vm1567_vm1, %v3215_v18 }
 0xada   :  { %3222 = vst.msk [vmem:[#allocation2 + $0x30] sm:$0xff] %vm1567_vm1, %v3214_v28 }
 0xadb   :  { %5027 = shalt.err (!%p5024_p4)
}
 0xadc   :  { %s5028_s3 = scalar_lea.hbm %s7331_s14, 1024 }
 0xadd   :  { %p5029_p5 = scmp.ne.s32.totalorder %s7331_s14, %s5028_s3  ;;  %p5032_p6 = scmp.lt.u32.totalorder %s5028_s3, %s7331_s14 }
 0xadf   :  { %p5034_p7 = pnand %p5032_p6, %p5029_p5 }
 0xae1   :  { %5037 = shalt.err (!%p5034_p7)
}
 0xae2   :  { %s5044_s17 = smov 128   ;;  %s5045_s6 = smov 8  }
 0xae3   :  { %3235 = dma.vmem_to_hbm [thread:$0]  %s3230_s13, 1024, %s7331_s14, [#allocation3], %s5044_s17, %s5044_s17, %s5045_s6  }
 0xae4   :  { %5038 = dma.done.wait [#allocation3], 1024  }
 0xae5   :  { %5039 = vsyncadd [#allocation3], 4294966272 }
 0xae6   :  { %3239 = vsyncpa [#allocation3], 1 }

</bundles_post_ra>
